<compile_context>
chip_gen: v5e
topology: v5e:2x2
jax: 0.10.0
libtpu: 0.0.40
codegen_flags: <defaults>
</compile_context>

<pallas_src>
import functools

import jax
import jax.numpy as jnp
from jax.experimental import pallas as pl
from jax.experimental.pallas import tpu as pltpu

# Model dims (X_train.shape[1] is synthetic; pick a small feature count).
D_IN = 32
H1, H2, H3 = 50, 25, 12


def _stable_sigmoid(h):
    # Two-sided sigmoid: exp argument is always <= 0 (no overflow for very
    # negative pre-activations).  exp + exact reciprocal both go to the EUP.
    e = jnp.exp(-jnp.abs(h))
    num = jnp.where(h >= 0, 1.0, e)
    return num * pl.reciprocal(1.0 + e, approx=False)


def _autoencoder_kernel(x_ref,
                        w1_ref, b1_ref,
                        w2_ref, b2_ref,
                        w3_ref, b3_ref,
                        w4_ref, b4_ref,
                        w5_ref, b5_ref,
                        w6_ref, b6_ref,
                        o_ref):
    # Activations stay in natural (TB, features) layout throughout.
    h = x_ref[...]                                    # (TB, D)

    def linear(h, w_ref, b_ref):
        # w_ref: (in, out), b_ref: (1, out) -> broadcast over the batch rows.
        return jnp.dot(h, w_ref[...],
                       preferred_element_type=jnp.float32) + b_ref[...]

    # Encoder
    h = jnp.maximum(linear(h, w1_ref, b1_ref), 0.0)   # (TB, 50)  ReLU
    h = jnp.maximum(linear(h, w2_ref, b2_ref), 0.0)   # (TB, 25)  ReLU
    h = linear(h, w3_ref, b3_ref)                     # (TB, 12)  latent

    # Decoder
    h = jnp.maximum(linear(h, w4_ref, b4_ref), 0.0)   # (TB, 25)  ReLU
    h = jnp.maximum(linear(h, w5_ref, b5_ref), 0.0)   # (TB, 50)  ReLU
    h = linear(h, w6_ref, b6_ref)                     # (TB, D)

    o_ref[...] = _stable_sigmoid(h)


def _auto_tile(batch):
    """Pick the batch-tile height.

    The kernel is HBM-bandwidth bound, so the tile should be large (512-2048,
    ~85% of roofline) to amortize the ~0.35us per-grid-step overhead, but we
    keep at least two grid steps whenever the batch allows it so that v7x's
    two TensorCores both get work.  Tiles are sublane-aligned (multiple of 8)
    unless one block covers the whole (tiny) batch.
    """
    if batch <= 16:
        return batch                        # single full-array block
    if batch <= 4096:
        half = -(-batch // 2)               # ceil(batch / 2)  -> >= 2 steps
        return min(batch, -(-half // 8) * 8)
    return 2048


@functools.partial(jax.jit, static_argnames=("tb",))
def autoencoder_forward(x, params, tb=None):
    """x: (B, D) float32 -> (B, D) float32, matching the PyTorch forward."""
    B, D = x.shape
    if tb is None:
        tb = _auto_tile(B)
    elif tb != B and tb % 8 != 0:
        tb = -(-tb // 8) * 8                # keep the block sublane-aligned
    nb = pl.cdiv(B, tb)                     # partial last block is masked

    # Tiny (~15 KB) one-off reshuffle of the parameters into kernel layout:
    # W: (out, in) -> (in, out), b: (out,) -> (1, out).  Negligible vs. x.
    flat = []
    for (w, b) in params:
        flat += [w.T, b.reshape(1, -1)]

    def const_spec(a):
        # Whole (tiny) parameter array as one block, resident across the grid.
        return pl.BlockSpec(a.shape, lambda i: (0, 0))

    in_specs = ([pl.BlockSpec((tb, D), lambda i: (i, 0))] +
                [const_spec(a) for a in flat])
    out_specs = pl.BlockSpec((tb, D), lambda i: (i, 0))

    return pl.pallas_call(
        _autoencoder_kernel,
        out_shape=jax.ShapeDtypeStruct((B, D), jnp.float32),
        grid=(nb,),
        in_specs=in_specs,
        out_specs=out_specs,
        compiler_params=pltpu.CompilerParams(
            # On v7x the batch axis shards across both TensorCores; on
            # v5e/v6e this is a no-op.  _auto_tile keeps nb >= 2 so a small
            # batch never collapses to a single grid step.
            dimension_semantics=("parallel",)),
    )(x, *flat)


def init_params(key, d_in=D_IN):
    """Deterministic PyTorch-style (uniform +/- 1/sqrt(fan_in)) init.

    Stored exactly like nn.Linear: W (out, in), b (out,).
    """
    dims = [(d_in, H1), (H1, H2), (H2, H3), (H3, H2), (H2, H1), (H1, d_in)]
    params = []
    for (fan_in, fan_out) in dims:
        key, kw, kb = jax.random.split(key, 3)
        bound = 1.0 / (fan_in ** 0.5)
        w = jax.random.uniform(kw, (fan_out, fan_in), jnp.float32, -bound, bound)
        b = jax.random.uniform(kb, (fan_out,), jnp.float32, -bound, bound)
        params.append((w, b))
    return params


def reference_forward(x, params):
    h = x
    relu_after = [True, True, False, True, True, False]
    for i, (w, b) in enumerate(params):
        h = h @ w.T + b
        if relu_after[i]:
            h = jnp.maximum(h, 0.0)
    return jax.nn.sigmoid(h)


if __name__ == "__main__":
    key = jax.random.PRNGKey(0)
    kx, kx2, kp = jax.random.split(key, 3)
    params = init_params(kp, D_IN)

    # Main case: auto tile -> tb=512, 2 grid steps (keeps both v7x cores busy
    # and exercises the double-buffered pipeline).
    x = jax.random.normal(kx, (1024, D_IN), jnp.float32)
    out = jax.block_until_ready(autoencoder_forward(x, params))
    ref = reference_forward(x, params)
    assert out.shape == x.shape
    # Exact EUP reciprocal + f32 matmul chain: error vs. the XLA reference is
    # well below 1e-3 on the [0, 1] sigmoid output.
    assert jnp.allclose(out, ref, atol=1e-3, rtol=1e-3), "mismatch vs reference"

    # Ragged batch: exercises the masked partial last block (no jnp.pad, no
    # wrapper-side slicing).
    x2 = jax.random.normal(kx2, (300, D_IN), jnp.float32)
    out2 = jax.block_until_ready(autoencoder_forward(x2, params))
    ref2 = reference_forward(x2, params)
    assert out2.shape == x2.shape
    assert jnp.allclose(out2, ref2, atol=1e-3, rtol=1e-3), "ragged mismatch"

    print("KERNEL_OK")
</pallas_src>

<mosaic_0001>
module attributes {stable_mosaic.version = 11 : i64} {
  func.func @_autoencoder_kernel(%arg0: i32, %arg1: memref<512x32xf32, #tpu.memory_space<vmem>>, %arg2: memref<32x50xf32, #tpu.memory_space<vmem>>, %arg3: memref<1x50xf32, #tpu.memory_space<vmem>>, %arg4: memref<50x25xf32, #tpu.memory_space<vmem>>, %arg5: memref<1x25xf32, #tpu.memory_space<vmem>>, %arg6: memref<25x12xf32, #tpu.memory_space<vmem>>, %arg7: memref<1x12xf32, #tpu.memory_space<vmem>>, %arg8: memref<12x25xf32, #tpu.memory_space<vmem>>, %arg9: memref<1x25xf32, #tpu.memory_space<vmem>>, %arg10: memref<25x50xf32, #tpu.memory_space<vmem>>, %arg11: memref<1x50xf32, #tpu.memory_space<vmem>>, %arg12: memref<50x32xf32, #tpu.memory_space<vmem>>, %arg13: memref<1x32xf32, #tpu.memory_space<vmem>>, %arg14: memref<512x32xf32, #tpu.memory_space<vmem>>) attributes {dimension_semantics = [#tpu.dimension_semantics<parallel>], iteration_bounds = array<i64: 2>, scalar_prefetch = 0 : i64, scratch_operands = 0 : i64, tpu.core_type = #tpu.core_type<tc>, window_params = [{transform_indices = @transform_0, window_bounds = array<i64: 512, 32>}, {pipeline_mode = #tpu.pipeline_mode<synchronous>, transform_indices = @transform_1, window_bounds = array<i64: 32, 50>}, {pipeline_mode = #tpu.pipeline_mode<synchronous>, transform_indices = @transform_2, window_bounds = array<i64: 1, 50>}, {pipeline_mode = #tpu.pipeline_mode<synchronous>, transform_indices = @transform_3, window_bounds = array<i64: 50, 25>}, {pipeline_mode = #tpu.pipeline_mode<synchronous>, transform_indices = @transform_4, window_bounds = array<i64: 1, 25>}, {pipeline_mode = #tpu.pipeline_mode<synchronous>, transform_indices = @transform_5, window_bounds = array<i64: 25, 12>}, {pipeline_mode = #tpu.pipeline_mode<synchronous>, transform_indices = @transform_6, window_bounds = array<i64: 1, 12>}, {pipeline_mode = #tpu.pipeline_mode<synchronous>, transform_indices = @transform_7, window_bounds = array<i64: 12, 25>}, {pipeline_mode = #tpu.pipeline_mode<synchronous>, transform_indices = @transform_8, window_bounds = array<i64: 1, 25>}, {pipeline_mode = #tpu.pipeline_mode<synchronous>, transform_indices = @transform_9, window_bounds = array<i64: 25, 50>}, {pipeline_mode = #tpu.pipeline_mode<synchronous>, transform_indices = @transform_10, window_bounds = array<i64: 1, 50>}, {pipeline_mode = #tpu.pipeline_mode<synchronous>, transform_indices = @transform_11, window_bounds = array<i64: 50, 32>}, {pipeline_mode = #tpu.pipeline_mode<synchronous>, transform_indices = @transform_12, window_bounds = array<i64: 1, 32>}, {transform_indices = @transform_13, window_bounds = array<i64: 512, 32>}]} {
    %c0 = arith.constant 0 : index
    %c0_0 = arith.constant 0 : index
    %0 = vector.load %arg1[%c0, %c0_0] : memref<512x32xf32, #tpu.memory_space<vmem>>, vector<512x32xf32>
    %c0_1 = arith.constant 0 : index
    %c0_2 = arith.constant 0 : index
    %1 = vector.load %arg2[%c0_1, %c0_2] : memref<32x50xf32, #tpu.memory_space<vmem>>, vector<32x50xf32>
    %cst = arith.constant dense<0.000000e+00> : vector<512x50xf32>
    %2 = tpu.matmul %0, %1, %cst {dimension_numbers = #tpu.dot_dimension_numbers<[1], [0], [0], [1], [0, 0, 1, 1], [], []>} : vector<512x32xf32>, vector<32x50xf32>, vector<512x50xf32> -> vector<512x50xf32>
    %c0_3 = arith.constant 0 : index
    %c0_4 = arith.constant 0 : index
    %3 = vector.load %arg3[%c0_3, %c0_4] : memref<1x50xf32, #tpu.memory_space<vmem>>, vector<1x50xf32>
    %4 = vector.broadcast %3 : vector<1x50xf32> to vector<512x50xf32>
    %5 = arith.addf %2, %4 : vector<512x50xf32>
    %cst_5 = arith.constant 0.000000e+00 : f32
    %6 = vector.broadcast %cst_5 : f32 to vector<512x50xf32>
    %7 = arith.maximumf %5, %6 : vector<512x50xf32>
    %c0_6 = arith.constant 0 : index
    %c0_7 = arith.constant 0 : index
    %8 = vector.load %arg4[%c0_6, %c0_7] : memref<50x25xf32, #tpu.memory_space<vmem>>, vector<50x25xf32>
    %cst_8 = arith.constant dense<0.000000e+00> : vector<512x25xf32>
    %9 = tpu.matmul %7, %8, %cst_8 {dimension_numbers = #tpu.dot_dimension_numbers<[1], [0], [0], [1], [0, 0, 1, 1], [], []>} : vector<512x50xf32>, vector<50x25xf32>, vector<512x25xf32> -> vector<512x25xf32>
    %c0_9 = arith.constant 0 : index
    %c0_10 = arith.constant 0 : index
    %10 = vector.load %arg5[%c0_9, %c0_10] : memref<1x25xf32, #tpu.memory_space<vmem>>, vector<1x25xf32>
    %11 = vector.broadcast %10 : vector<1x25xf32> to vector<512x25xf32>
    %12 = arith.addf %9, %11 : vector<512x25xf32>
    %cst_11 = arith.constant 0.000000e+00 : f32
    %13 = vector.broadcast %cst_11 : f32 to vector<512x25xf32>
    %14 = arith.maximumf %12, %13 : vector<512x25xf32>
    %c0_12 = arith.constant 0 : index
    %c0_13 = arith.constant 0 : index
    %15 = vector.load %arg6[%c0_12, %c0_13] : memref<25x12xf32, #tpu.memory_space<vmem>>, vector<25x12xf32>
    %cst_14 = arith.constant dense<0.000000e+00> : vector<512x12xf32>
    %16 = tpu.matmul %14, %15, %cst_14 {dimension_numbers = #tpu.dot_dimension_numbers<[1], [0], [0], [1], [0, 0, 1, 1], [], []>} : vector<512x25xf32>, vector<25x12xf32>, vector<512x12xf32> -> vector<512x12xf32>
    %c0_15 = arith.constant 0 : index
    %c0_16 = arith.constant 0 : index
    %17 = vector.load %arg7[%c0_15, %c0_16] : memref<1x12xf32, #tpu.memory_space<vmem>>, vector<1x12xf32>
    %18 = vector.broadcast %17 : vector<1x12xf32> to vector<512x12xf32>
    %19 = arith.addf %16, %18 : vector<512x12xf32>
    %c0_17 = arith.constant 0 : index
    %c0_18 = arith.constant 0 : index
    %20 = vector.load %arg8[%c0_17, %c0_18] : memref<12x25xf32, #tpu.memory_space<vmem>>, vector<12x25xf32>
    %cst_19 = arith.constant dense<0.000000e+00> : vector<512x25xf32>
    %21 = tpu.matmul %19, %20, %cst_19 {dimension_numbers = #tpu.dot_dimension_numbers<[1], [0], [0], [1], [0, 0, 1, 1], [], []>} : vector<512x12xf32>, vector<12x25xf32>, vector<512x25xf32> -> vector<512x25xf32>
    %c0_20 = arith.constant 0 : index
    %c0_21 = arith.constant 0 : index
    %22 = vector.load %arg9[%c0_20, %c0_21] : memref<1x25xf32, #tpu.memory_space<vmem>>, vector<1x25xf32>
    %23 = vector.broadcast %22 : vector<1x25xf32> to vector<512x25xf32>
    %24 = arith.addf %21, %23 : vector<512x25xf32>
    %cst_22 = arith.constant 0.000000e+00 : f32
    %25 = vector.broadcast %cst_22 : f32 to vector<512x25xf32>
    %26 = arith.maximumf %24, %25 : vector<512x25xf32>
    %c0_23 = arith.constant 0 : index
    %c0_24 = arith.constant 0 : index
    %27 = vector.load %arg10[%c0_23, %c0_24] : memref<25x50xf32, #tpu.memory_space<vmem>>, vector<25x50xf32>
    %cst_25 = arith.constant dense<0.000000e+00> : vector<512x50xf32>
    %28 = tpu.matmul %26, %27, %cst_25 {dimension_numbers = #tpu.dot_dimension_numbers<[1], [0], [0], [1], [0, 0, 1, 1], [], []>} : vector<512x25xf32>, vector<25x50xf32>, vector<512x50xf32> -> vector<512x50xf32>
    %c0_26 = arith.constant 0 : index
    %c0_27 = arith.constant 0 : index
    %29 = vector.load %arg11[%c0_26, %c0_27] : memref<1x50xf32, #tpu.memory_space<vmem>>, vector<1x50xf32>
    %30 = vector.broadcast %29 : vector<1x50xf32> to vector<512x50xf32>
    %31 = arith.addf %28, %30 : vector<512x50xf32>
    %cst_28 = arith.constant 0.000000e+00 : f32
    %32 = vector.broadcast %cst_28 : f32 to vector<512x50xf32>
    %33 = arith.maximumf %31, %32 : vector<512x50xf32>
    %c0_29 = arith.constant 0 : index
    %c0_30 = arith.constant 0 : index
    %34 = vector.load %arg12[%c0_29, %c0_30] : memref<50x32xf32, #tpu.memory_space<vmem>>, vector<50x32xf32>
    %cst_31 = arith.constant dense<0.000000e+00> : vector<512x32xf32>
    %35 = tpu.matmul %33, %34, %cst_31 {dimension_numbers = #tpu.dot_dimension_numbers<[1], [0], [0], [1], [0, 0, 1, 1], [], []>} : vector<512x50xf32>, vector<50x32xf32>, vector<512x32xf32> -> vector<512x32xf32>
    %c0_32 = arith.constant 0 : index
    %c0_33 = arith.constant 0 : index
    %36 = vector.load %arg13[%c0_32, %c0_33] : memref<1x32xf32, #tpu.memory_space<vmem>>, vector<1x32xf32>
    %37 = vector.broadcast %36 : vector<1x32xf32> to vector<512x32xf32>
    %38 = arith.addf %35, %37 : vector<512x32xf32>
    %39 = math.absf %38 : vector<512x32xf32>
    %cst_34 = arith.constant 0.000000e+00 : f32
    %40 = vector.broadcast %cst_34 : f32 to vector<512x32xf32>
    %41 = arith.subf %40, %39 : vector<512x32xf32>
    %42 = math.exp %41 : vector<512x32xf32>
    %cst_35 = arith.constant 0.000000e+00 : f32
    %43 = vector.broadcast %cst_35 : f32 to vector<512x32xf32>
    %44 = arith.cmpf oge, %38, %43 : vector<512x32xf32>
    %cst_36 = arith.constant 1.000000e+00 : f32
    %45 = vector.broadcast %cst_36 : f32 to vector<512x32xf32>
    %46 = arith.select %44, %45, %42 : vector<512x32xi1>, vector<512x32xf32>
    %cst_37 = arith.constant 1.000000e+00 : f32
    %47 = vector.broadcast %cst_37 : f32 to vector<512x32xf32>
    %48 = arith.addf %47, %42 : vector<512x32xf32>
    %49 = tpu.reciprocal %48 : vector<512x32xf32> -> vector<512x32xf32>
    %50 = arith.mulf %46, %49 : vector<512x32xf32>
    %c0_38 = arith.constant 0 : index
    %c0_39 = arith.constant 0 : index
    %51 = vector.load %arg14[%c0_38, %c0_39] : memref<512x32xf32, #tpu.memory_space<vmem>>, vector<512x32xf32>
    tpu.vector_store %arg14[%c0_38, %c0_39], %50 {strides = array<i32>} : memref<512x32xf32, #tpu.memory_space<vmem>>, vector<512x32xf32>,
    return
  }
  func.func @transform_0(%arg0: i32) -> (i32, i32) {
    %c0_i32 = arith.constant 0 : i32
    %c0_i32_0 = arith.constant 0 : i32
    return %arg0, %c0_i32 : i32, i32
  }
  func.func @transform_1(%arg0: i32) -> (i32, i32) {
    %c0_i32 = arith.constant 0 : i32
    %c0_i32_0 = arith.constant 0 : i32
    %c0_i32_1 = arith.constant 0 : i32
    return %c0_i32, %c0_i32_0 : i32, i32
  }
  func.func @transform_2(%arg0: i32) -> (i32, i32) {
    %c0_i32 = arith.constant 0 : i32
    %c0_i32_0 = arith.constant 0 : i32
    %c0_i32_1 = arith.constant 0 : i32
    return %c0_i32, %c0_i32_0 : i32, i32
  }
  func.func @transform_3(%arg0: i32) -> (i32, i32) {
    %c0_i32 = arith.constant 0 : i32
    %c0_i32_0 = arith.constant 0 : i32
    %c0_i32_1 = arith.constant 0 : i32
    return %c0_i32, %c0_i32_0 : i32, i32
  }
  func.func @transform_4(%arg0: i32) -> (i32, i32) {
    %c0_i32 = arith.constant 0 : i32
    %c0_i32_0 = arith.constant 0 : i32
    %c0_i32_1 = arith.constant 0 : i32
    return %c0_i32, %c0_i32_0 : i32, i32
  }
  func.func @transform_5(%arg0: i32) -> (i32, i32) {
    %c0_i32 = arith.constant 0 : i32
    %c0_i32_0 = arith.constant 0 : i32
    %c0_i32_1 = arith.constant 0 : i32
    return %c0_i32, %c0_i32_0 : i32, i32
  }
  func.func @transform_6(%arg0: i32) -> (i32, i32) {
    %c0_i32 = arith.constant 0 : i32
    %c0_i32_0 = arith.constant 0 : i32
    %c0_i32_1 = arith.constant 0 : i32
    return %c0_i32, %c0_i32_0 : i32, i32
  }
  func.func @transform_7(%arg0: i32) -> (i32, i32) {
    %c0_i32 = arith.constant 0 : i32
    %c0_i32_0 = arith.constant 0 : i32
    %c0_i32_1 = arith.constant 0 : i32
    return %c0_i32, %c0_i32_0 : i32, i32
  }
  func.func @transform_8(%arg0: i32) -> (i32, i32) {
    %c0_i32 = arith.constant 0 : i32
    %c0_i32_0 = arith.constant 0 : i32
    %c0_i32_1 = arith.constant 0 : i32
    return %c0_i32, %c0_i32_0 : i32, i32
  }
  func.func @transform_9(%arg0: i32) -> (i32, i32) {
    %c0_i32 = arith.constant 0 : i32
    %c0_i32_0 = arith.constant 0 : i32
    %c0_i32_1 = arith.constant 0 : i32
    return %c0_i32, %c0_i32_0 : i32, i32
  }
  func.func @transform_10(%arg0: i32) -> (i32, i32) {
    %c0_i32 = arith.constant 0 : i32
    %c0_i32_0 = arith.constant 0 : i32
    %c0_i32_1 = arith.constant 0 : i32
    return %c0_i32, %c0_i32_0 : i32, i32
  }
  func.func @transform_11(%arg0: i32) -> (i32, i32) {
    %c0_i32 = arith.constant 0 : i32
    %c0_i32_0 = arith.constant 0 : i32
    %c0_i32_1 = arith.constant 0 : i32
    return %c0_i32, %c0_i32_0 : i32, i32
  }
  func.func @transform_12(%arg0: i32) -> (i32, i32) {
    %c0_i32 = arith.constant 0 : i32
    %c0_i32_0 = arith.constant 0 : i32
    %c0_i32_1 = arith.constant 0 : i32
    return %c0_i32, %c0_i32_0 : i32, i32
  }
  func.func @transform_13(%arg0: i32) -> (i32, i32) {
    %c0_i32 = arith.constant 0 : i32
    %c0_i32_0 = arith.constant 0 : i32
    return %arg0, %c0_i32 : i32, i32
  }
}

</mosaic_0001>

<bundles_post_ra>
// kernel: autoencoder_forward.1
= control target key start
LH: loop header
LB: loop body
LE: loop exit
PB: predicated region body
PF: predicated region fallthrough
CT: control target
= control target key end

     0   :  { %s5536_s25 = smov 0   ;;  %s7810_s0 = inlined_call_operand.vmem [shape: f32[1024,32], index: 0, kind: input, shape index: {}]   ;;  %s7811_s1 = inlined_call_operand.vmem [shape: f32[32,50], index: 1, kind: input, shape index: {}]   ;;  %s7812_s2 = inlined_call_operand.vmem [shape: f32[1,50], index: 2, kind: input, shape index: {}]   ;;  %s7813_s3 = inlined_call_operand.vmem [shape: f32[50,25], index: 3, kind: input, shape index: {}]   ;;  %s7814_s4 = inlined_call_operand.vmem [shape: f32[1,25], index: 4, kind: input, shape index: {}]   ;;  %s7815_s5 = inlined_call_operand.vmem [shape: f32[25,12], index: 5, kind: input, shape index: {}]   ;;  %s7816_s6 = inlined_call_operand.vmem [shape: f32[1,12], index: 6, kind: input, shape index: {}]   ;;  %s7817_s7 = inlined_call_operand.vmem [shape: f32[12,25], index: 7, kind: input, shape index: {}]   ;;  %s7818_s8 = inlined_call_operand.vmem [shape: f32[1,25], index: 8, kind: input, shape index: {}]   ;;  %s7819_s9 = inlined_call_operand.vmem [shape: f32[25,50], index: 9, kind: input, shape index: {}]   ;;  %s7820_s10 = inlined_call_operand.vmem [shape: f32[1,50], index: 10, kind: input, shape index: {}]   ;;  %s7821_s11 = inlined_call_operand.vmem [shape: f32[50,32], index: 11, kind: input, shape index: {}]   ;;  %s7822_s12 = inlined_call_operand.vmem [shape: f32[1,32], index: 12, kind: input, shape index: {}]   ;;  %s7823_s13 = inlined_call_operand.vmem [shape: f32[1024,32], index: 13, kind: output, shape index: {}]  }
   0x1 LB: > { %s4772_s26 = sadd.s32 4294967295, %s5464_s25   ;;  %p4776_p0 = scmp.ge.s32.totalorder %s5464_s25, 1  ;;  %s5464_s25 = sphi %s5536_s25, %s23_s25  }
   0x2   : > { %p388_p1 = scmp.lt.s32.totalorder %s5464_s25, 3 }
   0x4   : > { %p389_p2 = pnand %p4776_p0, %p388_p1 }
   0x5   : > { %s4777_s14 = sshll.u32 (!%p389_p2), %s4772_s26, 6 }
   0x6   : > { %392 = sbr.rel (%p389_p2) target bundleno = 1729 (0x6c1), region = 72  ;;  %p433_p3 = scmp.lt.s32.totalorder (!%p389_p2), %s4777_s14, 127 }
   0xb   : > { %v511_v0 = vld [vmem:[%s7811_s1 + $0x18] sm:$0xff]  ;;  %v510_v1 = vld [vmem:[%s7811_s1 + $0x10] sm:$0xff]  ;;  %v509_v2 = vld [vmem:[%s7811_s1 + $0x8] sm:$0xff]  ;;  %s7825_s14 = smov (!%p433_p3, %s4777_s14), 127  ;;  %vm516_vm0 = vcmask 261120   ;;  %vm1664_vm1 = vcmask 1040384  }
   0xc   : > { %721 = vmatpush.msra.mxu0 %v511_v0  ;;  %5172 = vmatpush.msra.mxu2 %v511_v0  ;;  %v508_v3 = vld [vmem:[%s7811_s1] sm:$0xff]  ;;  %s4778_s19 = sshll.u32 %s7825_s14, 3  ;;  %v1466_v4 = vld [vmem:[%s7815_s5 + $0x18] sm:$0x1]  ;;  %v1465_v15 = vld [vmem:[%s7815_s5 + $0x10] sm:$0xff]  ;;  %vm1186_vm2 = vcmask 1041408  }
   0xd   : > { %s5564_s22 = scalar_lea.vmem %s7810_s0, %s4778_s19  ;;  %v988_v28 = vld [vmem:[%s7813_s3 + $0x30] sm:$0x3]  ;;  %v987_v29 = vld [vmem:[%s7813_s3 + $0x28] sm:$0xff]  ;;  %v986_v32 = vld [vmem:[%s7813_s3 + $0x20] sm:$0xff]  ;;  %vm993_vm3 = vcmask 408576   ;;  %vm2076_vm4 = vcmask 1043456   ;;  %s6598_s20 = scalar_lea.vmem %s7823_s13, %s4778_s19 }
   0xe   : > { %722 = vmatpush.msra.mxu0 %v510_v1  ;;  %5173 = vmatpush.msra.mxu2 %v510_v1  ;;  %v444_v5 = vld [vmem:[%s5564_s22] sm:$0xff]  ;;  %v445_v7 = vld [vmem:[%s5564_s22 + $0x8] sm:$0xff]  ;;  %v446_v9 = vld [vmem:[%s5564_s22 + $0x10] sm:$0xff]  ;;  %vm1471_vm5 = vcmask 203776   ;;  %vm1883_vm6 = vcmask 97280  }
   0xf   : > { %v476_v6 = vld [vmem:[%s5564_s22 + $0x100] sm:$0xff]  ;;  %v477_v8 = vld [vmem:[%s5564_s22 + $0x108] sm:$0xff]  ;;  %v478_v10 = vld [vmem:[%s5564_s22 + $0x110] sm:$0xff]  ;;  %4845 = vmatpush.msk.msra.mxu1 %vm1186_vm2, %v988_v28 }
  0x10   : > { %723 = vmatpush.msra.mxu0 %v509_v2  ;;  %5174 = vmatpush.msra.mxu2 %v509_v2  ;;  %v447_v11 = vld [vmem:[%s5564_s22 + $0x18] sm:$0xff]  ;;  %v448_v13 = vld [vmem:[%s5564_s22 + $0x20] sm:$0xff]  ;;  %v449_v16 = vld [vmem:[%s5564_s22 + $0x28] sm:$0xff] }
  0x11   : > { %v479_v12 = vld [vmem:[%s5564_s22 + $0x118] sm:$0xff]  ;;  %v480_v14 = vld [vmem:[%s5564_s22 + $0x120] sm:$0xff]  ;;  %v481_v17 = vld [vmem:[%s5564_s22 + $0x128] sm:$0xff]  ;;  %1200 = vmatpush.msra.mxu1 %v987_v29 }
  0x12   : > { %724 = vmatpush.msra.mxu0 %v508_v3  ;;  %5175 = vmatpush.msra.mxu2 %v508_v3  ;;  %v450_v18 = vld [vmem:[%s5564_s22 + $0x30] sm:$0xff]  ;;  %v451_v20 = vld [vmem:[%s5564_s22 + $0x38] sm:$0xff]  ;;  %v452_v22 = vld [vmem:[%s5564_s22 + $0x40] sm:$0xff] }
  0x13   : > { %4781 = vmatmul.msk.f32.vlgmr.msra.gmra.mxu0 %vm516_vm0, %v444_v5  ;;  %4813 = vmatmul.msk.f32.vlgmr.msra.gmra.mxu2 %vm516_vm0, %v476_v6  ;;  %v482_v19 = vld [vmem:[%s5564_s22 + $0x130] sm:$0xff]  ;;  %v483_v21 = vld [vmem:[%s5564_s22 + $0x138] sm:$0xff]  ;;  %v484_v23 = vld [vmem:[%s5564_s22 + $0x140] sm:$0xff] }
  0x14   : > { %4910 = vmatpush.msk.msrb.mxu2 %vm1664_vm1, %v1466_v4  ;;  %v453_v24 = vld [vmem:[%s5564_s22 + $0x48] sm:$0xff]  ;;  %v454_v26 = vld [vmem:[%s5564_s22 + $0x50] sm:$0xff]  ;;  %v455_v30 = vld [vmem:[%s5564_s22 + $0x58] sm:$0xff]  ;;  %1201 = vmatpush.msra.mxu1 %v986_v32 }
  0x15   : > { %v485_v25 = vld [vmem:[%s5564_s22 + $0x148] sm:$0xff]  ;;  %v486_v27 = vld [vmem:[%s5564_s22 + $0x150] sm:$0xff]  ;;  %v487_v31 = vld [vmem:[%s5564_s22 + $0x158] sm:$0xff] }
  0x16   : > { %1681 = vmatpush.msrb.mxu2 %v1465_v15  ;;  %v985_v33 = vld [vmem:[%s7813_s3 + $0x18] sm:$0xff]  ;;  %v984_v34 = vld [vmem:[%s7813_s3 + $0x10] sm:$0xff]  ;;  %v456_v35 = vld [vmem:[%s5564_s22 + $0x60] sm:$0xff] }
  0x17   : > { %1202 = vmatpush.msra.mxu1 %v985_v33  ;;  %v488_v36 = vld [vmem:[%s5564_s22 + $0x160] sm:$0xff]  ;;  %v983_v37 = vld [vmem:[%s7813_s3 + $0x8] sm:$0xff]  ;;  %v458_v42 = vld [vmem:[%s5564_s22 + $0x70] sm:$0xff] }
  0x18   : > { %v982_v38 = vld [vmem:[%s7813_s3] sm:$0xff]  ;;  %v1464_v39 = vld [vmem:[%s7815_s5 + $0x8] sm:$0xff]  ;;  %v490_v43 = vld [vmem:[%s5564_s22 + $0x170] sm:$0xff] }
  0x19   : > { %1203 = vmatpush.msra.mxu1 %v984_v34  ;;  %1682 = vmatpush.msrb.mxu2 %v1464_v39  ;;  %v457_v40 = vld [vmem:[%s5564_s22 + $0x68] sm:$0xff]  ;;  %v459_v44 = vld [vmem:[%s5564_s22 + $0x78] sm:$0xff]  ;;  %v5665_v46 = vld [vmem:[%s7812_s2] ss:$0 sm:$0xff] }
  0x1a   : > { %v489_v41 = vld [vmem:[%s5564_s22 + $0x168] sm:$0xff]  ;;  %v491_v45 = vld [vmem:[%s5564_s22 + $0x178] sm:$0xff]  ;;  %v460_v48 = vld [vmem:[%s5564_s22 + $0x80] sm:$0xff] }
  0x1b   : > { %4782 = vmatmul.msk.f32.gmra.mxu0 %vm516_vm0, %v445_v7  ;;  %4814 = vmatmul.msk.f32.gmra.mxu2 %vm516_vm0, %v477_v8  ;;  %v492_v49 = vld [vmem:[%s5564_s22 + $0x180] sm:$0xff]  ;;  %v461_v54 = vld [vmem:[%s5564_s22 + $0x88] sm:$0xff]  ;;  %v462_v60 = vld [vmem:[%s5564_s22 + $0x90] sm:$0xff] }
  0x1c   : > { %1204 = vmatpush.msra.mxu1 %v983_v37  ;;  %v493_v55 = vld [vmem:[%s5564_s22 + $0x188] sm:$0xff]  ;;  %v494_v61 = vld [vmem:[%s5564_s22 + $0x190] sm:$0xff]  ;;  %v463_v2 = vld [vmem:[%s5564_s22 + $0x98] sm:$0xff] }
  0x1d   : > { %v495_v3 = vld [vmem:[%s5564_s22 + $0x198] sm:$0xff]  ;;  %v464_v8 = vld [vmem:[%s5564_s22 + $0xa0] sm:$0xff]  ;;  %v465_v15 = vld [vmem:[%s5564_s22 + $0xa8] sm:$0xff] }
  0x1e   : > { %1205 = vmatpush.msra.mxu1 %v982_v38  ;;  %v499_v28 = vld [vmem:[%s5564_s22 + $0x1b8] sm:$0xff]  ;;  %v468_v33 = vld [vmem:[%s5564_s22 + $0xc0] sm:$0xff]  ;;  %v469_v39 = vld [vmem:[%s5564_s22 + $0xc8] sm:$0xff] }
  0x1f   : > { %v500_v34 = vld [vmem:[%s5564_s22 + $0x1c0] sm:$0xff] }
  0x23   : > { %4783 = vmatmul.msk.f32.gmra.mxu0 %vm516_vm0, %v446_v9  ;;  %4815 = vmatmul.msk.f32.gmra.mxu2 %vm516_vm0, %v478_v10  ;;  %v496_v9 = vld [vmem:[%s5564_s22 + $0x1a0] sm:$0xff] }
  0x2b   : > { %4784 = vmatmul.msk.f32.gmra.mxu0 %vm516_vm0, %v447_v11  ;;  %4816 = vmatmul.msk.f32.gmra.mxu2 %vm516_vm0, %v479_v12  ;;  %v1463_v12 = vld [vmem:[%s7815_s5] sm:$0xff] }
  0x2c   : > { %1683 = vmatpush.msrb.mxu2 %v1463_v12  ;;  %v506_v12 = vld [vmem:[%s5564_s22 + $0x1f0] sm:$0xff] }
  0x33   : > { %4785 = vmatmul.msk.f32.gmra.mxu0 %vm516_vm0, %v448_v13  ;;  %4817 = vmatmul.msk.f32.gmra.mxu2 %vm516_vm0, %v480_v14 }
  0x3b   : > { %4786 = vmatmul.msk.f32.gmra.mxu0 %vm516_vm0, %v449_v16  ;;  %4818 = vmatmul.msk.f32.gmra.mxu2 %vm516_vm0, %v481_v17  ;;  %v497_v16 = vld [vmem:[%s5564_s22 + $0x1a8] sm:$0xff] }
  0x43   : > { %4787 = vmatmul.msk.f32.gmra.mxu0 %vm516_vm0, %v450_v18  ;;  %4819 = vmatmul.msk.f32.gmra.mxu2 %vm516_vm0, %v482_v19 }
  0x4b   : > { %4788 = vmatmul.msk.f32.gmra.mxu0 %vm516_vm0, %v451_v20  ;;  %4820 = vmatmul.msk.f32.gmra.mxu2 %vm516_vm0, %v483_v21  ;;  %v466_v21 = vld [vmem:[%s5564_s22 + $0xb0] sm:$0xff] }
  0x53   : > { %4789 = vmatmul.msk.f32.gmra.mxu0 %vm516_vm0, %v452_v22  ;;  %4821 = vmatmul.msk.f32.gmra.mxu2 %vm516_vm0, %v484_v23  ;;  %v498_v22 = vld [vmem:[%s5564_s22 + $0x1b0] sm:$0xff] }
  0x5b   : > { %4790 = vmatmul.msk.f32.gmra.mxu0 %vm516_vm0, %v453_v24  ;;  %4822 = vmatmul.msk.f32.gmra.mxu2 %vm516_vm0, %v485_v25 }
  0x63   : > { %4791 = vmatmul.msk.f32.gmra.mxu0 %vm516_vm0, %v454_v26  ;;  %4823 = vmatmul.msk.f32.gmra.mxu2 %vm516_vm0, %v486_v27  ;;  %v467_v27 = vld [vmem:[%s5564_s22 + $0xb8] sm:$0xff] }
  0x6b   : > { %4792 = vmatmul.msk.f32.gmra.mxu0 %vm516_vm0, %v455_v30  ;;  %4824 = vmatmul.msk.f32.gmra.mxu2 %vm516_vm0, %v487_v31 }
  0x73   : > { %4793 = vmatmul.msk.f32.gmra.mxu0 %vm516_vm0, %v456_v35  ;;  %4825 = vmatmul.msk.f32.gmra.mxu2 %vm516_vm0, %v488_v36 }
  0x7b   : > { %4794 = vmatmul.msk.f32.gmra.mxu0 %vm516_vm0, %v457_v40  ;;  %4826 = vmatmul.msk.f32.gmra.mxu2 %vm516_vm0, %v489_v41  ;;  %v501_v40 = vld [vmem:[%s5564_s22 + $0x1c8] sm:$0xff] }
  0x83   : > { %4795 = vmatmul.msk.f32.gmra.mxu0 %vm516_vm0, %v458_v42  ;;  %4827 = vmatmul.msk.f32.gmra.mxu2 %vm516_vm0, %v490_v43 }
  0x8b   : > { %4796 = vmatmul.msk.f32.gmra.mxu0 %vm516_vm0, %v459_v44  ;;  %4828 = vmatmul.msk.f32.gmra.mxu2 %vm516_vm0, %v491_v45  ;;  %v470_v45 = vld [vmem:[%s5564_s22 + $0xd0] sm:$0xff] }
  0x90   : > { %v726_v47 = vpop.f32.mrf.mxu0 }
  0x91   : > { %v727_v50 = vadd.f32 %v5665_v46, %v726_v47  ;;  %v502_v47 = vld [vmem:[%s5564_s22 + $0x1d0] sm:$0xff] }
  0x93   : > { %v918_v51 = vmax.f32 %v727_v50, 0.0  ;;  %4797 = vmatmul.msk.f32.gmra.mxu0 %vm516_vm0, %v460_v48  ;;  %4829 = vmatmul.msk.f32.gmra.mxu2 %vm516_vm0, %v492_v49 }
  0x95   : > { %4846 = vmatmul.msk.f32.vlgmr.msra.gmra.mxu1 %vm993_vm3, %v918_v51 }
  0x96   : > { %v5673_v52 = vpop.f32.mrf.mxu2 }
  0x98   : > { %v729_v53 = vpop.f32.mrf.mxu0 }
  0x99   : > { %v730_v56 = vadd.f32 %v5665_v46, %v729_v53  ;;  %v471_v53 = vld [vmem:[%s5564_s22 + $0xd8] sm:$0xff] }
  0x9b   : > { %v919_v57 = vmax.f32 %v730_v56, 0.0  ;;  %4798 = vmatmul.msk.f32.gmra.mxu0 %vm516_vm0, %v461_v54  ;;  %4830 = vmatmul.msk.f32.gmra.mxu2 %vm516_vm0, %v493_v55  ;;  %v503_v54 = vld [vmem:[%s5564_s22 + $0x1d8] sm:$0xff] }
  0x9d   : > { %4847 = vmatmul.msk.f32.gmra.mxu1 %vm993_vm3, %v919_v57 }
  0x9e   : > { %v5681_v58 = vpop.f32.mrf.mxu2 }
  0xa0   : > { %v732_v59 = vpop.f32.mrf.mxu0 }
  0xa1   : > { %v733_v62 = vadd.f32 %v5665_v46, %v732_v59 }
  0xa3   : > { %v920_v63 = vmax.f32 %v733_v62, 0.0  ;;  %4799 = vmatmul.msk.f32.gmra.mxu0 %vm516_vm0, %v462_v60  ;;  %4831 = vmatmul.msk.f32.gmra.mxu2 %vm516_vm0, %v494_v61  ;;  %v472_v60 = vld [vmem:[%s5564_s22 + $0xe0] sm:$0xff] }
  0xa4   : > { %v504_v61 = vld [vmem:[%s5564_s22 + $0x1e0] sm:$0xff] }
  0xa5   : > { %4848 = vmatmul.msk.f32.gmra.mxu1 %vm993_vm3, %v920_v63 }
  0xa6   : > { %v5689_v0 = vpop.f32.mrf.mxu2 }
  0xa8   : > { %v735_v1 = vpop.f32.mrf.mxu0 }
  0xa9   : > { %v736_v4 = vadd.f32 %v5665_v46, %v735_v1 }
  0xab   : > { %v921_v5 = vmax.f32 %v736_v4, 0.0  ;;  %4800 = vmatmul.msk.f32.gmra.mxu0 %vm516_vm0, %v463_v2  ;;  %4832 = vmatmul.msk.f32.gmra.mxu2 %vm516_vm0, %v495_v3  ;;  %v473_v3 = vld [vmem:[%s5564_s22 + $0xe8] sm:$0xff] }
  0xac   : > { %v505_v4 = vld [vmem:[%s5564_s22 + $0x1e8] sm:$0xff] }
  0xad   : > { %4849 = vmatmul.msk.f32.gmra.mxu1 %vm993_vm3, %v921_v5 }
  0xae   : > { %v5697_v6 = vpop.f32.mrf.mxu2 }
  0xb0   : > { %v738_v7 = vpop.f32.mrf.mxu0 }
  0xb1   : > { %v739_v10 = vadd.f32 %v5665_v46, %v738_v7 }
  0xb3   : > { %v922_v11 = vmax.f32 %v739_v10, 0.0  ;;  %4801 = vmatmul.msk.f32.gmra.mxu0 %vm516_vm0, %v464_v8  ;;  %4833 = vmatmul.msk.f32.gmra.mxu2 %vm516_vm0, %v496_v9  ;;  %v1878_v8 = vld [vmem:[%s7817_s7 + $0x8] sm:$0xf] }
  0xb4   : > { %4975 = vmatpush.msk.msrb.mxu1 %vm2076_vm4, %v1878_v8  ;;  %5176 = vmatpush.msk.msra.mxu3 %vm2076_vm4, %v1878_v8 }
  0xb5   : > { %4850 = vmatmul.msk.f32.gmra.mxu1 %vm993_vm3, %v922_v11  ;;  %v474_v11 = vld [vmem:[%s5564_s22 + $0xf0] sm:$0xff] }
  0xb6   : > { %v5708_v13 = vpop.f32.mrf.mxu2 }
  0xb8   : > { %v741_v14 = vpop.f32.mrf.mxu0 }
  0xb9   : > { %v742_v17 = vadd.f32 %v5665_v46, %v741_v14 }
  0xbb   : > { %v923_v18 = vmax.f32 %v742_v17, 0.0  ;;  %4802 = vmatmul.msk.f32.gmra.mxu0 %vm516_vm0, %v465_v15  ;;  %4834 = vmatmul.msk.f32.gmra.mxu2 %vm516_vm0, %v497_v16 }
  0xbd   : > { %4851 = vmatmul.msk.f32.gmra.mxu1 %vm993_vm3, %v923_v18  ;;  %v475_v18 = vld [vmem:[%s5564_s22 + $0xf8] sm:$0xff] }
  0xbe   : > { %v5716_v19 = vpop.f32.mrf.mxu2 }
  0xc0   : > { %v744_v20 = vpop.f32.mrf.mxu0 }
  0xc1   : > { %v745_v23 = vadd.f32 %v5665_v46, %v744_v20  ;;  %v507_v20 = vld [vmem:[%s5564_s22 + $0x1f8] sm:$0xff] }
  0xc3   : > { %v924_v24 = vmax.f32 %v745_v23, 0.0  ;;  %4803 = vmatmul.msk.f32.gmra.mxu0 %vm516_vm0, %v466_v21  ;;  %4835 = vmatmul.msk.f32.gmra.mxu2 %vm516_vm0, %v498_v22 }
  0xc5   : > { %4852 = vmatmul.msk.f32.gmra.mxu1 %vm993_vm3, %v924_v24  ;;  %v5804_v24 = vld [vmem:[%s7814_s4] ss:$0 sm:$0xff] }
  0xc6   : > { %v5724_v25 = vpop.f32.mrf.mxu2 }
  0xc8   : > { %v747_v26 = vpop.f32.mrf.mxu0 }
  0xc9   : > { %v748_v29 = vadd.f32 %v5665_v46, %v747_v26 }
  0xcb   : > { %v925_v30 = vmax.f32 %v748_v29, 0.0  ;;  %4804 = vmatmul.msk.f32.gmra.mxu0 %vm516_vm0, %v467_v27  ;;  %4836 = vmatmul.msk.f32.gmra.mxu2 %vm516_vm0, %v499_v28 }
  0xcd   : > { %4853 = vmatmul.msk.f32.gmra.mxu1 %vm993_vm3, %v925_v30 }
  0xce   : > { %v5732_v31 = vpop.f32.mrf.mxu2 }
  0xd0   : > { %v750_v32 = vpop.f32.mrf.mxu0 }
  0xd1   : > { %v751_v35 = vadd.f32 %v5665_v46, %v750_v32 }
  0xd3   : > { %v926_v36 = vmax.f32 %v751_v35, 0.0  ;;  %4805 = vmatmul.msk.f32.gmra.mxu0 %vm516_vm0, %v468_v33  ;;  %4837 = vmatmul.msk.f32.gmra.mxu2 %vm516_vm0, %v500_v34 }
  0xd5   : > { %4854 = vmatmul.msk.f32.gmra.mxu1 %vm993_vm3, %v926_v36 }
  0xd6   : > { %v5740_v37 = vpop.f32.mrf.mxu2 }
  0xd8   : > { %v753_v38 = vpop.f32.mrf.mxu0 }
  0xd9   : > { %v754_v41 = vadd.f32 %v5665_v46, %v753_v38 }
  0xdb   : > { %v927_v42 = vmax.f32 %v754_v41, 0.0  ;;  %4806 = vmatmul.msk.f32.gmra.mxu0 %vm516_vm0, %v469_v39  ;;  %4838 = vmatmul.msk.f32.gmra.mxu2 %vm516_vm0, %v501_v40 }
  0xdd   : > { %4855 = vmatmul.msk.f32.gmra.mxu1 %vm993_vm3, %v927_v42 }
  0xde   : > { %v5748_v43 = vpop.f32.mrf.mxu2 }
  0xe0   : > { %v756_v44 = vpop.f32.mrf.mxu0 }
  0xe1   : > { %v757_v48 = vadd.f32 %v5665_v46, %v756_v44 }
  0xe3   : > { %v928_v49 = vmax.f32 %v757_v48, 0.0  ;;  %4807 = vmatmul.msk.f32.gmra.mxu0 %vm516_vm0, %v470_v45  ;;  %4839 = vmatmul.msk.f32.gmra.mxu2 %vm516_vm0, %v502_v47 }
  0xe5   : > { %4856 = vmatmul.msk.f32.gmra.mxu1 %vm993_vm3, %v928_v49 }
  0xe6   : > { %v5756_v50 = vpop.f32.mrf.mxu2 }
  0xe8   : > { %v759_v51 = vpop.f32.mrf.mxu0 }
  0xe9   : > { %v760_v55 = vadd.f32 %v5665_v46, %v759_v51 }
  0xeb   : > { %v929_v56 = vmax.f32 %v760_v55, 0.0  ;;  %4808 = vmatmul.msk.f32.gmra.mxu0 %vm516_vm0, %v471_v53  ;;  %4840 = vmatmul.msk.f32.gmra.mxu2 %vm516_vm0, %v503_v54 }
  0xed   : > { %4857 = vmatmul.msk.f32.gmra.mxu1 %vm993_vm3, %v929_v56 }
  0xee   : > { %v5764_v57 = vpop.f32.mrf.mxu2 }
  0xf0   : > { %v762_v59 = vpop.f32.mrf.mxu0 }
  0xf1   : > { %v763_v62 = vadd.f32 %v5665_v46, %v762_v59 }
  0xf3   : > { %v930_v63 = vmax.f32 %v763_v62, 0.0  ;;  %4809 = vmatmul.msk.f32.gmra.mxu0 %vm516_vm0, %v472_v60  ;;  %4841 = vmatmul.msk.f32.gmra.mxu2 %vm516_vm0, %v504_v61 }
  0xf5   : > { %4858 = vmatmul.msk.f32.gmra.mxu1 %vm993_vm3, %v930_v63 }
  0xf6   : > { %v5772_v1 = vpop.f32.mrf.mxu2 }
  0xf8   : > { %v765_v2 = vpop.f32.mrf.mxu0 }
  0xf9   : > { %v766_v5 = vadd.f32 %v5665_v46, %v765_v2 }
  0xfb   : > { %v931_v7 = vmax.f32 %v766_v5, 0.0  ;;  %4810 = vmatmul.msk.f32.gmra.mxu0 %vm516_vm0, %v473_v3  ;;  %4842 = vmatmul.msk.f32.gmra.mxu2 %vm516_vm0, %v505_v4 }
  0xfd   : > { %4859 = vmatmul.msk.f32.gmra.mxu1 %vm993_vm3, %v931_v7 }
  0xfe   : > { %v5783_v9 = vpop.f32.mrf.mxu2 }
 0x100   : > { %v768_v10 = vpop.f32.mrf.mxu0 }
 0x101   : > { %v769_v14 = vadd.f32 %v5665_v46, %v768_v10 }
 0x103   : > { %v932_v15 = vmax.f32 %v769_v14, 0.0  ;;  %4811 = vmatmul.msk.f32.gmra.mxu0 %vm516_vm0, %v474_v11  ;;  %4843 = vmatmul.msk.f32.gmra.mxu2 %vm516_vm0, %v506_v12 }
 0x105   : > { %4860 = vmatmul.msk.f32.gmra.mxu1 %vm993_vm3, %v932_v15 }
 0x106   : > { %v5791_v16 = vpop.f32.mrf.mxu2 }
 0x108   : > { %v771_v17 = vpop.f32.mrf.mxu0 }
 0x109   : > { %v772_v21 = vadd.f32 %v5665_v46, %v771_v17 }
 0x10b   : > { %v933_v22 = vmax.f32 %v772_v21, 0.0  ;;  %4812 = vmatmul.msk.f32.gmra.mxu0 %vm516_vm0, %v475_v18  ;;  %4844 = vmatmul.msk.f32.gmra.mxu2 %vm516_vm0, %v507_v20 }
 0x10d   : > { %4861 = vmatmul.msk.f32.gmra.mxu1 %vm993_vm3, %v933_v22 }
 0x10e   : > { %v5799_v23 = vpop.f32.mrf.mxu2 }
 0x110   : > { %v774_v26 = vpop.f32.mrf.mxu0 }
 0x111   : > { %v775_v27 = vadd.f32 %v5665_v46, %v774_v26 }
 0x112   : > { %v1207_v28 = vpop.f32.mrf.mxu1 }
 0x113   : > { %v934_v29 = vmax.f32 %v775_v27, 0.0  ;;  %v1208_v30 = vadd.f32 %v5804_v24, %v1207_v28 }
 0x115   : > { %v1399_v32 = vmax.f32 %v1208_v30, 0.0  ;;  %4862 = vmatmul.msk.f32.gmra.mxu1 %vm993_vm3, %v934_v29 }
 0x116   : > { %v5809_v33 = vpop.f32.mrf.mxu2 }
 0x117   : > { %4911 = vmatmul.msk.f32.vlgmr.msrb.gmra.mxu2 %vm1471_vm5, %v1399_v32 }
 0x118   : > { %v777_v34 = vpop.f32.mrf.mxu0 }
 0x119   : > { %v778_v35 = vadd.f32 %v5665_v46, %v777_v34 }
 0x11a   : > { %v1210_v36 = vpop.f32.mrf.mxu1 }
 0x11b   : > { %v935_v38 = vmax.f32 %v778_v35, 0.0  ;;  %v1211_v39 = vadd.f32 %v5804_v24, %v1210_v36 }
 0x11d   : > { %v1400_v40 = vmax.f32 %v1211_v39, 0.0  ;;  %4863 = vmatmul.msk.f32.gmra.mxu1 %vm993_vm3, %v935_v38 }
 0x11e   : > { %v5815_v41 = vpop.f32.mrf.mxu2 }
 0x11f   : > { %4912 = vmatmul.msk.f32.gmra.mxu2 %vm1471_vm5, %v1400_v40 }
 0x120   : > { %v780_v42 = vpop.f32.mrf.mxu0 }
 0x121   : > { %v781_v44 = vadd.f32 %v5665_v46, %v780_v42 }
 0x122   : > { %v1213_v45 = vpop.f32.mrf.mxu1 }
 0x123   : > { %v936_v47 = vmax.f32 %v781_v44, 0.0  ;;  %v1214_v48 = vadd.f32 %v5804_v24, %v1213_v45 }
 0x125   : > { %v1401_v49 = vmax.f32 %v1214_v48, 0.0  ;;  %4864 = vmatmul.msk.f32.gmra.mxu1 %vm993_vm3, %v936_v47 }
 0x126   : > { %v5821_v51 = vpop.f32.mrf.mxu2 }
 0x127   : > { %4913 = vmatmul.msk.f32.gmra.mxu2 %vm1471_vm5, %v1401_v49 }
 0x128   : > { %v783_v53 = vpop.f32.mrf.mxu0 }
 0x129   : > { %v784_v54 = vadd.f32 %v5665_v46, %v783_v53 }
 0x12a   : > { %v1216_v55 = vpop.f32.mrf.mxu1 }
 0x12b   : > { %v937_v56 = vmax.f32 %v784_v54, 0.0  ;;  %v1217_v59 = vadd.f32 %v5804_v24, %v1216_v55 }
 0x12d   : > { %v1402_v60 = vmax.f32 %v1217_v59, 0.0  ;;  %4865 = vmatmul.msk.f32.gmra.mxu1 %vm993_vm3, %v937_v56 }
 0x12e   : > { %v5827_v61 = vpop.f32.mrf.mxu2 }
 0x12f   : > { %4914 = vmatmul.msk.f32.gmra.mxu2 %vm1471_vm5, %v1402_v60 }
 0x130   : > { %v786_v62 = vpop.f32.mrf.mxu0 }
 0x131   : > { %v787_v63 = vadd.f32 %v5665_v46, %v786_v62 }
 0x132   : > { %v1219_v2 = vpop.f32.mrf.mxu1 }
 0x133   : > { %v938_v3 = vmax.f32 %v787_v63, 0.0  ;;  %v1220_v4 = vadd.f32 %v5804_v24, %v1219_v2 }
 0x135   : > { %v1403_v5 = vmax.f32 %v1220_v4, 0.0  ;;  %4866 = vmatmul.msk.f32.gmra.mxu1 %vm993_vm3, %v938_v3 }
 0x136   : > { %v5833_v7 = vpop.f32.mrf.mxu2 }
 0x137   : > { %4915 = vmatmul.msk.f32.gmra.mxu2 %vm1471_vm5, %v1403_v5 }
 0x138   : > { %v789_v8 = vpop.f32.mrf.mxu0 }
 0x139   : > { %v790_v10 = vadd.f32 %v5665_v46, %v789_v8 }
 0x13a   : > { %v1222_v11 = vpop.f32.mrf.mxu1 }
 0x13b   : > { %v939_v12 = vmax.f32 %v790_v10, 0.0  ;;  %v1223_v14 = vadd.f32 %v5804_v24, %v1222_v11 }
 0x13d   : > { %v1404_v15 = vmax.f32 %v1223_v14, 0.0  ;;  %4867 = vmatmul.msk.f32.gmra.mxu1 %vm993_vm3, %v939_v12 }
 0x13e   : > { %v5839_v17 = vpop.f32.mrf.mxu2 }
 0x13f   : > { %4916 = vmatmul.msk.f32.gmra.mxu2 %vm1471_vm5, %v1404_v15 }
 0x140   : > { %v792_v18 = vpop.f32.mrf.mxu0 }
 0x141   : > { %v793_v20 = vadd.f32 %v5665_v46, %v792_v18 }
 0x142   : > { %v1225_v21 = vpop.f32.mrf.mxu1 }
 0x143   : > { %v940_v22 = vmax.f32 %v793_v20, 0.0  ;;  %v1226_v26 = vadd.f32 %v5804_v24, %v1225_v21 }
 0x145   : > { %v1405_v27 = vmax.f32 %v1226_v26, 0.0  ;;  %4868 = vmatmul.msk.f32.gmra.mxu1 %vm993_vm3, %v940_v22 }
 0x146   : > { %v5845_v28 = vpop.f32.mrf.mxu2 }
 0x147   : > { %4917 = vmatmul.msk.f32.gmra.mxu2 %vm1471_vm5, %v1405_v27 }
 0x148   : > { %v795_v29 = vpop.f32.mrf.mxu0 }
 0x149   : > { %v796_v30 = vadd.f32 %v5665_v46, %v795_v29 }
 0x14a   : > { %v1228_v32 = vpop.f32.mrf.mxu1 }
 0x14b   : > { %v941_v34 = vmax.f32 %v796_v30, 0.0  ;;  %v1229_v35 = vadd.f32 %v5804_v24, %v1228_v32 }
 0x14d   : > { %v1406_v36 = vmax.f32 %v1229_v35, 0.0  ;;  %4869 = vmatmul.msk.f32.gmra.mxu1 %vm993_vm3, %v941_v34 }
 0x14e   : > { %v5851_v38 = vpop.f32.mrf.mxu2 }
 0x14f   : > { %4918 = vmatmul.msk.f32.gmra.mxu2 %vm1471_vm5, %v1406_v36 }
 0x150   : > { %v798_v39 = vpop.f32.mrf.mxu0 }
 0x151   : > { %v799_v40 = vadd.f32 %v5665_v46, %v798_v39 }
 0x152   : > { %v1231_v42 = vpop.f32.mrf.mxu1 }
 0x153   : > { %v942_v44 = vmax.f32 %v799_v40, 0.0  ;;  %v1232_v45 = vadd.f32 %v5804_v24, %v1231_v42 }
 0x155   : > { %v1407_v47 = vmax.f32 %v1232_v45, 0.0  ;;  %4870 = vmatmul.msk.f32.gmra.mxu1 %vm993_vm3, %v942_v44 }
 0x156   : > { %v5857_v48 = vpop.f32.mrf.mxu2 }
 0x157   : > { %4919 = vmatmul.msk.f32.gmra.mxu2 %vm1471_vm5, %v1407_v47 }
 0x158   : > { %v801_v49 = vpop.f32.mrf.mxu0 }
 0x159   : > { %v802_v53 = vadd.f32 %v5665_v46, %v801_v49 }
 0x15a   : > { %v1234_v54 = vpop.f32.mrf.mxu1 }
 0x15b   : > { %v943_v55 = vmax.f32 %v802_v53, 0.0  ;;  %v1235_v56 = vadd.f32 %v5804_v24, %v1234_v54 }
 0x15d   : > { %v1408_v59 = vmax.f32 %v1235_v56, 0.0  ;;  %4871 = vmatmul.msk.f32.gmra.mxu1 %vm993_vm3, %v943_v55 }
 0x15e   : > { %v5863_v60 = vpop.f32.mrf.mxu2 }
 0x15f   : > { %4920 = vmatmul.msk.f32.gmra.mxu2 %vm1471_vm5, %v1408_v59 }
 0x160   : > { %v804_v62 = vpop.f32.mrf.mxu0 }
 0x161   : > { %v805_v63 = vadd.f32 %v5665_v46, %v804_v62 }
 0x162   : > { %v1237_v2 = vpop.f32.mrf.mxu1 }
 0x163   : > { %v944_v3 = vmax.f32 %v805_v63, 0.0  ;;  %v1238_v4 = vadd.f32 %v5804_v24, %v1237_v2 }
 0x165   : > { %v1409_v5 = vmax.f32 %v1238_v4, 0.0  ;;  %4872 = vmatmul.msk.f32.gmra.mxu1 %vm993_vm3, %v944_v3 }
 0x166   : > { %v5869_v8 = vpop.f32.mrf.mxu2 }
 0x167   : > { %4921 = vmatmul.msk.f32.gmra.mxu2 %vm1471_vm5, %v1409_v5  ;;  %v823_v5 = vadd.f32 %v5665_v46, %v5673_v52 }
 0x168   : > { %v807_v10 = vpop.f32.mrf.mxu0 }
 0x169   : > { %v808_v11 = vadd.f32 %v5665_v46, %v807_v10 }
 0x16a   : > { %v1240_v12 = vpop.f32.mrf.mxu1 }
 0x16b   : > { %v945_v14 = vmax.f32 %v808_v11, 0.0  ;;  %v1241_v15 = vadd.f32 %v5804_v24, %v1240_v12  ;;  %v950_v12 = vmax.f32 %v823_v5, 0.0  ;;  %v841_v5 = vadd.f32 %v5665_v46, %v5724_v25 }
 0x16d   : > { %v1410_v18 = vmax.f32 %v1241_v15, 0.0  ;;  %4873 = vmatmul.msk.f32.gmra.mxu1 %vm993_vm3, %v945_v14 }
 0x16e   : > { %v5875_v20 = vpop.f32.mrf.mxu2 }
 0x16f   : > { %4922 = vmatmul.msk.f32.gmra.mxu2 %vm1471_vm5, %v1410_v18  ;;  %v826_v18 = vadd.f32 %v5665_v46, %v5681_v58 }
 0x170   : > { %v810_v21 = vpop.f32.mrf.mxu0 }
 0x171   : > { %v811_v22 = vadd.f32 %v5665_v46, %v810_v21  ;;  %v951_v52 = vmax.f32 %v826_v18, 0.0  ;;  %v844_v18 = vadd.f32 %v5665_v46, %v5732_v31 }
 0x172   : > { %v1243_v26 = vpop.f32.mrf.mxu1 }
 0x173   : > { %v946_v27 = vmax.f32 %v811_v22, 0.0  ;;  %v1244_v29 = vadd.f32 %v5804_v24, %v1243_v26  ;;  %v957_v25 = vmax.f32 %v844_v18, 0.0  ;;  %v862_v18 = vadd.f32 %v5665_v46, %v5783_v9 }
 0x174   : > { %v865_v9 = vadd.f32 %v5665_v46, %v5791_v16 }
 0x175   : > { %v1411_v30 = vmax.f32 %v1244_v29, 0.0  ;;  %4874 = vmatmul.msk.f32.gmra.mxu1 %vm993_vm3, %v946_v27  ;;  %v829_v29 = vadd.f32 %v5665_v46, %v5689_v0 }
 0x176   : > { %v5881_v32 = vpop.f32.mrf.mxu2 }
 0x177   : > { %4923 = vmatmul.msk.f32.gmra.mxu2 %vm1471_vm5, %v1411_v30  ;;  %v952_v58 = vmax.f32 %v829_v29, 0.0  ;;  %v847_v29 = vadd.f32 %v5665_v46, %v5740_v37 }
 0x178   : > { %v813_v34 = vpop.f32.mrf.mxu0 }
 0x179   : > { %v814_v35 = vadd.f32 %v5665_v46, %v813_v34  ;;  %v958_v31 = vmax.f32 %v847_v29, 0.0  ;;  %v1877_v29 = vld [vmem:[%s7817_s7] sm:$0xff] }
 0x17a   : > { %v1246_v36 = vpop.f32.mrf.mxu1  ;;  %2095 = vmatpush.msrb.mxu1 %v1877_v29  ;;  %5177 = vmatpush.msra.mxu3 %v1877_v29 }
 0x17b   : > { %v947_v39 = vmax.f32 %v814_v35, 0.0  ;;  %v1247_v40 = vadd.f32 %v5804_v24, %v1246_v36 }
 0x17d   : > { %v1412_v42 = vmax.f32 %v1247_v40, 0.0  ;;  %4875 = vmatmul.msk.f32.gmra.mxu1 %vm993_vm3, %v947_v39  ;;  %v832_v39 = vadd.f32 %v5665_v46, %v5697_v6 }
 0x17e   : > { %v5887_v44 = vpop.f32.mrf.mxu2 }
 0x17f   : > { %4924 = vmatmul.msk.f32.gmra.mxu2 %vm1471_vm5, %v1412_v42  ;;  %v953_v0 = vmax.f32 %v832_v39, 0.0  ;;  %v850_v39 = vadd.f32 %v5665_v46, %v5748_v43 }
 0x180   : > { %v816_v45 = vpop.f32.mrf.mxu0 }
 0x181   : > { %v817_v47 = vadd.f32 %v5665_v46, %v816_v45  ;;  %v959_v37 = vmax.f32 %v850_v39, 0.0 }
 0x182   : > { %v1249_v49 = vpop.f32.mrf.mxu1 }
 0x183   : > { %v948_v53 = vmax.f32 %v817_v47, 0.0  ;;  %v1250_v54 = vadd.f32 %v5804_v24, %v1249_v49  ;;  %v835_v49 = vadd.f32 %v5665_v46, %v5708_v13 }
 0x185   : > { %v1413_v55 = vmax.f32 %v1250_v54, 0.0  ;;  %4876 = vmatmul.msk.f32.gmra.mxu1 %vm993_vm3, %v948_v53  ;;  %v954_v6 = vmax.f32 %v835_v49, 0.0  ;;  %v853_v49 = vadd.f32 %v5665_v46, %v5756_v50 }
 0x186   : > { %v5893_v56 = vpop.f32.mrf.mxu2 }
 0x187   : > { %4925 = vmatmul.msk.f32.gmra.mxu2 %vm1471_vm5, %v1413_v55  ;;  %v960_v43 = vmax.f32 %v853_v49, 0.0 }
 0x188   : > { %v819_v59 = vpop.f32.mrf.mxu0 }
 0x189   : > { %v820_v62 = vadd.f32 %v5665_v46, %v819_v59 }
 0x18a   : > { %v1252_v63 = vpop.f32.mrf.mxu1 }
 0x18b   : > { %v949_v2 = vmax.f32 %v820_v62, 0.0  ;;  %v1253_v3 = vadd.f32 %v5804_v24, %v1252_v63  ;;  %v838_v62 = vadd.f32 %v5665_v46, %v5716_v19  ;;  %v956_v19 = vmax.f32 %v841_v5, 0.0 }
 0x18c   : > { %v859_v5 = vadd.f32 %v5665_v46, %v5772_v1  ;;  %v963_v1 = vmax.f32 %v862_v18, 0.0 }
 0x18d   : > { %v1414_v4 = vmax.f32 %v1253_v3, 0.0  ;;  %4877 = vmatmul.msk.f32.gmra.mxu1 %vm993_vm3, %v949_v2  ;;  %v955_v13 = vmax.f32 %v838_v62, 0.0  ;;  %v856_v62 = vadd.f32 %v5665_v46, %v5764_v57 }
 0x18e   : > { %v5902_v10 = vpop.f32.mrf.mxu2  ;;  %v962_v57 = vmax.f32 %v859_v5, 0.0 }
 0x18f   : > { %4926 = vmatmul.msk.f32.gmra.mxu2 %vm1471_vm5, %v1414_v4  ;;  %v961_v50 = vmax.f32 %v856_v62, 0.0 }
 0x192   : > { %v1255_v11 = vpop.f32.mrf.mxu1 }
 0x193   : > { %v1256_v14 = vadd.f32 %v5804_v24, %v1255_v11 }
 0x195   : > { %v1415_v15 = vmax.f32 %v1256_v14, 0.0  ;;  %4878 = vmatmul.msk.f32.gmra.mxu1 %vm993_vm3, %v950_v12 }
 0x197   : > { %4927 = vmatmul.msk.f32.gmra.mxu2 %vm1471_vm5, %v1415_v15 }
 0x19a   : > { %v1258_v21 = vpop.f32.mrf.mxu1  ;;  %v5909_v22 = vpop.f32.mrf.mxu2 }
 0x19b   : > { %v1259_v26 = vadd.f32 %v5804_v24, %v1258_v21 }
 0x19d   : > { %v1416_v27 = vmax.f32 %v1259_v26, 0.0  ;;  %4879 = vmatmul.msk.f32.gmra.mxu1 %vm993_vm3, %v951_v52 }
 0x19f   : > { %4928 = vmatmul.msk.f32.gmra.mxu2 %vm1471_vm5, %v1416_v27 }
 0x1a2   : > { %v1261_v30 = vpop.f32.mrf.mxu1  ;;  %v5916_v34 = vpop.f32.mrf.mxu2 }
 0x1a3   : > { %v1262_v35 = vadd.f32 %v5804_v24, %v1261_v30 }
 0x1a5   : > { %v1417_v36 = vmax.f32 %v1262_v35, 0.0  ;;  %4880 = vmatmul.msk.f32.gmra.mxu1 %vm993_vm3, %v952_v58 }
 0x1a7   : > { %4929 = vmatmul.msk.f32.gmra.mxu2 %vm1471_vm5, %v1417_v36 }
 0x1aa   : > { %v1264_v40 = vpop.f32.mrf.mxu1  ;;  %v5923_v42 = vpop.f32.mrf.mxu2 }
 0x1ab   : > { %v1265_v45 = vadd.f32 %v5804_v24, %v1264_v40 }
 0x1ad   : > { %v1418_v47 = vmax.f32 %v1265_v45, 0.0  ;;  %4881 = vmatmul.msk.f32.gmra.mxu1 %vm993_vm3, %v953_v0 }
 0x1af   : > { %4930 = vmatmul.msk.f32.gmra.mxu2 %vm1471_vm5, %v1418_v47 }
 0x1b2   : > { %v1267_v53 = vpop.f32.mrf.mxu1  ;;  %v5930_v54 = vpop.f32.mrf.mxu2 }
 0x1b3   : > { %v1268_v55 = vadd.f32 %v5804_v24, %v1267_v53 }
 0x1b5   : > { %v1419_v59 = vmax.f32 %v1268_v55, 0.0  ;;  %4882 = vmatmul.msk.f32.gmra.mxu1 %vm993_vm3, %v954_v6 }
 0x1b7   : > { %4931 = vmatmul.msk.f32.gmra.mxu2 %vm1471_vm5, %v1419_v59 }
 0x1ba   : > { %v1270_v63 = vpop.f32.mrf.mxu1  ;;  %v5937_v2 = vpop.f32.mrf.mxu2 }
 0x1bb   : > { %v1271_v3 = vadd.f32 %v5804_v24, %v1270_v63 }
 0x1bd   : > { %v1420_v4 = vmax.f32 %v1271_v3, 0.0  ;;  %4883 = vmatmul.msk.f32.gmra.mxu1 %vm993_vm3, %v955_v13 }
 0x1bf   : > { %4932 = vmatmul.msk.f32.gmra.mxu2 %vm1471_vm5, %v1420_v4 }
 0x1c2   : > { %v1273_v11 = vpop.f32.mrf.mxu1  ;;  %v5944_v12 = vpop.f32.mrf.mxu2 }
 0x1c3   : > { %v1274_v14 = vadd.f32 %v5804_v24, %v1273_v11 }
 0x1c5   : > { %v1421_v15 = vmax.f32 %v1274_v14, 0.0  ;;  %4884 = vmatmul.msk.f32.gmra.mxu1 %vm993_vm3, %v956_v19 }
 0x1c7   : > { %4933 = vmatmul.msk.f32.gmra.mxu2 %vm1471_vm5, %v1421_v15 }
 0x1ca   : > { %v1276_v21 = vpop.f32.mrf.mxu1  ;;  %v5951_v52 = vpop.f32.mrf.mxu2 }
 0x1cb   : > { %v1277_v26 = vadd.f32 %v5804_v24, %v1276_v21 }
 0x1cd   : > { %v1422_v27 = vmax.f32 %v1277_v26, 0.0  ;;  %4885 = vmatmul.msk.f32.gmra.mxu1 %vm993_vm3, %v957_v25 }
 0x1cf   : > { %4934 = vmatmul.msk.f32.gmra.mxu2 %vm1471_vm5, %v1422_v27 }
 0x1d2   : > { %v1279_v30 = vpop.f32.mrf.mxu1  ;;  %v5958_v58 = vpop.f32.mrf.mxu2 }
 0x1d3   : > { %v1280_v35 = vadd.f32 %v5804_v24, %v1279_v30 }
 0x1d5   : > { %v1423_v36 = vmax.f32 %v1280_v35, 0.0  ;;  %4886 = vmatmul.msk.f32.gmra.mxu1 %vm993_vm3, %v958_v31  ;;  %v964_v35 = vmax.f32 %v865_v9, 0.0  ;;  %v883_v9 = vadd.f32 %v5665_v46, %v5833_v7 }
 0x1d7   : > { %4935 = vmatmul.msk.f32.gmra.mxu2 %vm1471_vm5, %v1423_v36 }
 0x1da   : > { %v1282_v40 = vpop.f32.mrf.mxu1  ;;  %v5965_v0 = vpop.f32.mrf.mxu2 }
 0x1db   : > { %v1283_v45 = vadd.f32 %v5804_v24, %v1282_v40  ;;  %v868_v40 = vadd.f32 %v5665_v46, %v5799_v23 }
 0x1dd   : > { %v1424_v47 = vmax.f32 %v1283_v45, 0.0  ;;  %4887 = vmatmul.msk.f32.gmra.mxu1 %vm993_vm3, %v959_v37  ;;  %v965_v16 = vmax.f32 %v868_v40, 0.0  ;;  %v886_v40 = vadd.f32 %v5665_v46, %v5839_v17 }
 0x1df   : > { %4936 = vmatmul.msk.f32.gmra.mxu2 %vm1471_vm5, %v1424_v47  ;;  %v971_v7 = vmax.f32 %v886_v40, 0.0  ;;  %v5448_v40 = vld [vmem:[%s7812_s2] ss:$0 sm:$0xff] }
 0x1e2   : > { %v1285_v53 = vpop.f32.mrf.mxu1  ;;  %v5972_v6 = vpop.f32.mrf.mxu2 }
 0x1e3   : > { %v1286_v55 = vadd.f32 %v5804_v24, %v1285_v53  ;;  %v871_v53 = vadd.f32 %v5665_v46, %v5809_v33 }
 0x1e5   : > { %v1425_v59 = vmax.f32 %v1286_v55, 0.0  ;;  %4888 = vmatmul.msk.f32.gmra.mxu1 %vm993_vm3, %v960_v43  ;;  %v966_v23 = vmax.f32 %v871_v53, 0.0  ;;  %v889_v53 = vadd.f32 %v5665_v46, %v5845_v28 }
 0x1e7   : > { %4937 = vmatmul.msk.f32.gmra.mxu2 %vm1471_vm5, %v1425_v59  ;;  %v972_v17 = vmax.f32 %v889_v53, 0.0  ;;  %v907_v53 = vadd.f32 %v5448_v40, %v5881_v32 }
 0x1ea   : > { %v1288_v63 = vpop.f32.mrf.mxu1  ;;  %v5979_v13 = vpop.f32.mrf.mxu2 }
 0x1eb   : > { %v1289_v3 = vadd.f32 %v5804_v24, %v1288_v63  ;;  %v874_v63 = vadd.f32 %v5665_v46, %v5815_v41 }
 0x1ed   : > { %v1426_v4 = vmax.f32 %v1289_v3, 0.0  ;;  %4889 = vmatmul.msk.f32.gmra.mxu1 %vm993_vm3, %v961_v50  ;;  %v967_v33 = vmax.f32 %v874_v63, 0.0  ;;  %v892_v63 = vadd.f32 %v5665_v46, %v5851_v38 }
 0x1ef   : > { %4938 = vmatmul.msk.f32.gmra.mxu2 %vm1471_vm5, %v1426_v4  ;;  %v973_v28 = vmax.f32 %v892_v63, 0.0  ;;  %v2356_v63 = vld [vmem:[%s7819_s9 + $0x18] sm:$0x1] }
 0x1f0   : > { %5040 = vmatpush.msk.msrb.mxu3 %vm1664_vm1, %v2356_v63 }
 0x1f2   : > { %v1291_v11 = vpop.f32.mrf.mxu1  ;;  %v5986_v19 = vpop.f32.mrf.mxu2 }
 0x1f3   : > { %v1292_v14 = vadd.f32 %v5804_v24, %v1291_v11  ;;  %v877_v11 = vadd.f32 %v5665_v46, %v5821_v51 }
 0x1f5   : > { %v1427_v15 = vmax.f32 %v1292_v14, 0.0  ;;  %4890 = vmatmul.msk.f32.gmra.mxu1 %vm993_vm3, %v962_v57  ;;  %v968_v41 = vmax.f32 %v877_v11, 0.0  ;;  %v895_v11 = vadd.f32 %v5665_v46, %v5857_v48 }
 0x1f7   : > { %4939 = vmatmul.msk.f32.gmra.mxu2 %vm1471_vm5, %v1427_v15  ;;  %v974_v38 = vmax.f32 %v895_v11, 0.0 }
 0x1fa   : > { %v1294_v21 = vpop.f32.mrf.mxu1  ;;  %v5993_v25 = vpop.f32.mrf.mxu2 }
 0x1fb   : > { %v1295_v26 = vadd.f32 %v5804_v24, %v1294_v21  ;;  %v880_v21 = vadd.f32 %v5665_v46, %v5827_v61  ;;  %v970_v61 = vmax.f32 %v883_v9, 0.0  ;;  %v901_v9 = vadd.f32 %v5665_v46, %v5869_v8 }
 0x1fd   : > { %v1428_v27 = vmax.f32 %v1295_v26, 0.0  ;;  %4891 = vmatmul.msk.f32.gmra.mxu1 %vm993_vm3, %v963_v1  ;;  %v969_v51 = vmax.f32 %v880_v21, 0.0  ;;  %v898_v21 = vadd.f32 %v5665_v46, %v5863_v60  ;;  %v976_v60 = vmax.f32 %v901_v9, 0.0 }
 0x1ff   : > { %4940 = vmatmul.msk.f32.gmra.mxu2 %vm1471_vm5, %v1428_v27  ;;  %v975_v48 = vmax.f32 %v898_v21, 0.0 }
 0x202   : > { %v1297_v30 = vpop.f32.mrf.mxu1  ;;  %v6003_v31 = vpop.f32.mrf.mxu2 }
 0x203   : > { %v1298_v36 = vadd.f32 %v5804_v24, %v1297_v30 }
 0x205   : > { %v1429_v39 = vmax.f32 %v1298_v36, 0.0  ;;  %4892 = vmatmul.msk.f32.gmra.mxu1 %vm993_vm3, %v964_v35 }
 0x207   : > { %4941 = vmatmul.msk.f32.gmra.mxu2 %vm1471_vm5, %v1429_v39 }
 0x20a   : > { %v1300_v37 = vpop.f32.mrf.mxu1  ;;  %v6010_v45 = vpop.f32.mrf.mxu2 }
 0x20b   : > { %v1301_v47 = vadd.f32 %v5804_v24, %v1300_v37 }
 0x20d   : > { %v1430_v49 = vmax.f32 %v1301_v47, 0.0  ;;  %4893 = vmatmul.msk.f32.gmra.mxu1 %vm993_vm3, %v965_v16 }
 0x20f   : > { %4942 = vmatmul.msk.f32.gmra.mxu2 %vm1471_vm5, %v1430_v49 }
 0x212   : > { %v1303_v43 = vpop.f32.mrf.mxu1  ;;  %v6017_v55 = vpop.f32.mrf.mxu2 }
 0x213   : > { %v1304_v59 = vadd.f32 %v5804_v24, %v1303_v43 }
 0x215   : > { %v1431_v62 = vmax.f32 %v1304_v59, 0.0  ;;  %4894 = vmatmul.msk.f32.gmra.mxu1 %vm993_vm3, %v966_v23 }
 0x217   : > { %4943 = vmatmul.msk.f32.gmra.mxu2 %vm1471_vm5, %v1431_v62 }
 0x21a   : > { %v1306_v50 = vpop.f32.mrf.mxu1  ;;  %v6024_v3 = vpop.f32.mrf.mxu2 }
 0x21b   : > { %v1307_v4 = vadd.f32 %v5804_v24, %v1306_v50 }
 0x21d   : > { %v1432_v5 = vmax.f32 %v1307_v4, 0.0  ;;  %4895 = vmatmul.msk.f32.gmra.mxu1 %vm993_vm3, %v967_v33 }
 0x21f   : > { %4944 = vmatmul.msk.f32.gmra.mxu2 %vm1471_vm5, %v1432_v5 }
 0x222   : > { %v1309_v57 = vpop.f32.mrf.mxu1  ;;  %v6031_v14 = vpop.f32.mrf.mxu2 }
 0x223   : > { %v1310_v15 = vadd.f32 %v5804_v24, %v1309_v57 }
 0x225   : > { %v1433_v18 = vmax.f32 %v1310_v15, 0.0  ;;  %4896 = vmatmul.msk.f32.gmra.mxu1 %vm993_vm3, %v968_v41 }
 0x227   : > { %4945 = vmatmul.msk.f32.gmra.mxu2 %vm1471_vm5, %v1433_v18 }
 0x22a   : > { %v1312_v1 = vpop.f32.mrf.mxu1  ;;  %v6038_v26 = vpop.f32.mrf.mxu2 }
 0x22b   : > { %v1313_v27 = vadd.f32 %v5804_v24, %v1312_v1 }
 0x22d   : > { %v1434_v29 = vmax.f32 %v1313_v27, 0.0  ;;  %4897 = vmatmul.msk.f32.gmra.mxu1 %vm993_vm3, %v969_v51 }
 0x22f   : > { %4946 = vmatmul.msk.f32.gmra.mxu2 %vm1471_vm5, %v1434_v29 }
 0x232   : > { %v1315_v30 = vpop.f32.mrf.mxu1  ;;  %v6045_v35 = vpop.f32.mrf.mxu2 }
 0x233   : > { %v1316_v36 = vadd.f32 %v5804_v24, %v1315_v30 }
 0x235   : > { %v1435_v39 = vmax.f32 %v1316_v36, 0.0  ;;  %4898 = vmatmul.msk.f32.gmra.mxu1 %vm993_vm3, %v970_v61 }
 0x237   : > { %4947 = vmatmul.msk.f32.gmra.mxu2 %vm1471_vm5, %v1435_v39 }
 0x23a   : > { %v1318_v37 = vpop.f32.mrf.mxu1  ;;  %v6052_v16 = vpop.f32.mrf.mxu2 }
 0x23b   : > { %v1319_v47 = vadd.f32 %v5804_v24, %v1318_v37  ;;  %v904_v37 = vadd.f32 %v5448_v40, %v5875_v20 }
 0x23d   : > { %v1436_v49 = vmax.f32 %v1319_v47, 0.0  ;;  %4899 = vmatmul.msk.f32.gmra.mxu1 %vm993_vm3, %v971_v7  ;;  %v977_v7 = vmax.f32 %v904_v37, 0.0 }
 0x23f   : > { %4948 = vmatmul.msk.f32.gmra.mxu2 %vm1471_vm5, %v1436_v49 }
 0x242   : > { %v1321_v43 = vpop.f32.mrf.mxu1  ;;  %v6059_v23 = vpop.f32.mrf.mxu2 }
 0x243   : > { %v1322_v59 = vadd.f32 %v5804_v24, %v1321_v43 }
 0x245   : > { %v1437_v62 = vmax.f32 %v1322_v59, 0.0  ;;  %4900 = vmatmul.msk.f32.gmra.mxu1 %vm993_vm3, %v972_v17  ;;  %v978_v59 = vmax.f32 %v907_v53, 0.0 }
 0x247   : > { %4949 = vmatmul.msk.f32.gmra.mxu2 %vm1471_vm5, %v1437_v62 }
 0x24a   : > { %v1324_v50 = vpop.f32.mrf.mxu1  ;;  %v6066_v33 = vpop.f32.mrf.mxu2 }
 0x24b   : > { %v1325_v4 = vadd.f32 %v5804_v24, %v1324_v50  ;;  %v910_v50 = vadd.f32 %v5448_v40, %v5887_v44 }
 0x24d   : > { %v1438_v5 = vmax.f32 %v1325_v4, 0.0  ;;  %4901 = vmatmul.msk.f32.gmra.mxu1 %vm993_vm3, %v973_v28  ;;  %v979_v4 = vmax.f32 %v910_v50, 0.0 }
 0x24f   : > { %4950 = vmatmul.msk.f32.gmra.mxu2 %vm1471_vm5, %v1438_v5 }
 0x252   : > { %v1327_v57 = vpop.f32.mrf.mxu1  ;;  %v6073_v41 = vpop.f32.mrf.mxu2 }
 0x253   : > { %v1328_v15 = vadd.f32 %v5804_v24, %v1327_v57  ;;  %v913_v57 = vadd.f32 %v5448_v40, %v5893_v56 }
 0x255   : > { %v1439_v18 = vmax.f32 %v1328_v15, 0.0  ;;  %4902 = vmatmul.msk.f32.gmra.mxu1 %vm993_vm3, %v974_v38 }
 0x257   : > { %4951 = vmatmul.msk.f32.gmra.mxu2 %vm1471_vm5, %v1439_v18  ;;  %v980_v18 = vmax.f32 %v913_v57, 0.0 }
 0x25a   : > { %v1330_v1 = vpop.f32.mrf.mxu1  ;;  %v6080_v51 = vpop.f32.mrf.mxu2 }
 0x25b   : > { %v1331_v27 = vadd.f32 %v5804_v24, %v1330_v1  ;;  %v916_v1 = vadd.f32 %v5448_v40, %v5902_v10 }
 0x25d   : > { %v1440_v29 = vmax.f32 %v1331_v27, 0.0  ;;  %4903 = vmatmul.msk.f32.gmra.mxu1 %vm993_vm3, %v975_v48 }
 0x25f   : > { %4952 = vmatmul.msk.f32.gmra.mxu2 %vm1471_vm5, %v1440_v29  ;;  %v981_v29 = vmax.f32 %v916_v1, 0.0  ;;  %v2355_v1 = vld [vmem:[%s7819_s9 + $0x10] sm:$0xff] }
 0x260   : > { %2569 = vmatpush.msrb.mxu3 %v2355_v1 }
 0x262   : > { %v1333_v30 = vpop.f32.mrf.mxu1  ;;  %v6087_v61 = vpop.f32.mrf.mxu2 }
 0x263   : > { %v1334_v36 = vadd.f32 %v5804_v24, %v1333_v30  ;;  %v6131_v30 = vld [vmem:[%s7816_s6] ss:$0 sm:$0xff] }
 0x265   : > { %v1441_v39 = vmax.f32 %v1334_v36, 0.0  ;;  %4904 = vmatmul.msk.f32.gmra.mxu1 %vm993_vm3, %v976_v60  ;;  %v1686_v36 = vadd.f32 %v6131_v30, %v5909_v22 }
 0x267   : > { %4953 = vmatmul.msk.f32.gmra.mxu2 %vm1471_vm5, %v1441_v39 }
 0x26a   : > { %v1336_v46 = vpop.f32.mrf.mxu1  ;;  %v6096_v8 = vpop.f32.mrf.mxu2 }
 0x26b   : > { %v1337_v47 = vadd.f32 %v5804_v24, %v1336_v46 }
 0x26d   : > { %v1442_v49 = vmax.f32 %v1337_v47, 0.0  ;;  %4905 = vmatmul.msk.f32.gmra.mxu1 %vm993_vm3, %v977_v7  ;;  %v1689_v47 = vadd.f32 %v6131_v30, %v5916_v34 }
 0x26f   : > { %4954 = vmatmul.msk.f32.gmra.mxu2 %vm1471_vm5, %v1442_v49 }
 0x272   : > { %v1339_v43 = vpop.f32.mrf.mxu1  ;;  %v6102_v17 = vpop.f32.mrf.mxu2 }
 0x273   : > { %v1340_v20 = vadd.f32 %v5804_v24, %v1339_v43 }
 0x275   : > { %v1443_v62 = vmax.f32 %v1340_v20, 0.0  ;;  %4906 = vmatmul.msk.f32.gmra.mxu1 %vm993_vm3, %v978_v59  ;;  %v1692_v20 = vadd.f32 %v6131_v30, %v5923_v42 }
 0x277   : > { %4955 = vmatmul.msk.f32.gmra.mxu2 %vm1471_vm5, %v1443_v62 }
 0x27a   : > { %v1342_v32 = vpop.f32.mrf.mxu1  ;;  %v6112_v28 = vpop.f32.mrf.mxu2 }
 0x27b   : > { %v1343_v5 = vadd.f32 %v5804_v24, %v1342_v32 }
 0x27d   : > { %v1444_v11 = vmax.f32 %v1343_v5, 0.0  ;;  %4907 = vmatmul.msk.f32.gmra.mxu1 %vm993_vm3, %v979_v4  ;;  %v1695_v4 = vadd.f32 %v6131_v30, %v5930_v54 }
 0x27f   : > { %4956 = vmatmul.msk.f32.gmra.mxu2 %vm1471_vm5, %v1444_v11 }
 0x282   : > { %v1345_v38 = vpop.f32.mrf.mxu1  ;;  %v6118_v15 = vpop.f32.mrf.mxu2 }
 0x283   : > { %v1346_v44 = vadd.f32 %v5804_v24, %v1345_v38 }
 0x285   : > { %v1445_v21 = vmax.f32 %v1346_v44, 0.0  ;;  %4908 = vmatmul.msk.f32.gmra.mxu1 %vm993_vm3, %v980_v18  ;;  %v1698_v18 = vadd.f32 %v6131_v30, %v5937_v2  ;;  %v1701_v2 = vadd.f32 %v6131_v30, %v5944_v12 }
 0x287   : > { %4957 = vmatmul.msk.f32.gmra.mxu2 %vm1471_vm5, %v1445_v21 }
 0x28a   : > { %v1348_v48 = vpop.f32.mrf.mxu1  ;;  %v6124_v27 = vpop.f32.mrf.mxu2 }
 0x28b   : > { %v1349_v56 = vadd.f32 %v5804_v24, %v1348_v48 }
 0x28d   : > { %v1446_v9 = vmax.f32 %v1349_v56, 0.0  ;;  %4909 = vmatmul.msk.f32.gmra.mxu1 %vm993_vm3, %v981_v29 }
 0x28f   : > { %4958 = vmatmul.msk.f32.gmra.mxu2 %vm1471_vm5, %v1446_v9 }
 0x292   : > { %v1351_v60 = vpop.f32.mrf.mxu1  ;;  %v1778_v10 = vpop.f32.mrf.mxu2 }
 0x293   : > { %v1352_v39 = vadd.f32 %v5804_v24, %v1351_v60  ;;  %v1779_v40 = vadd.f32 %v6131_v30, %v1778_v10 }
 0x295   : > { %v1447_v37 = vmax.f32 %v1352_v39, 0.0  ;;  %4976 = vmatmul.msk.f32.vlgmr.msrb.gmra.mxu1 %vm1883_vm6, %v1686_v36  ;;  %5007 = vmatmul.msk.f32.vlgmr.msra.gmra.mxu3 %vm1883_vm6, %v1779_v40  ;;  %v1704_v39 = vadd.f32 %v6131_v30, %v5951_v52 }
 0x297   : > { %4959 = vmatmul.msk.f32.gmra.mxu2 %vm1471_vm5, %v1447_v37 }
 0x29a   : > { %v1354_v46 = vpop.f32.mrf.mxu1  ;;  %v1781_v7 = vpop.f32.mrf.mxu2 }
 0x29b   : > { %v1355_v49 = vadd.f32 %v5804_v24, %v1354_v46  ;;  %v1782_v22 = vadd.f32 %v6131_v30, %v1781_v7 }
 0x29d   : > { %v1448_v53 = vmax.f32 %v1355_v49, 0.0  ;;  %4977 = vmatmul.msk.f32.gmra.mxu1 %vm1883_vm6, %v1689_v47  ;;  %5008 = vmatmul.msk.f32.gmra.mxu3 %vm1883_vm6, %v1782_v22  ;;  %v1707_v47 = vadd.f32 %v6131_v30, %v5958_v58 }
 0x29f   : > { %4960 = vmatmul.msk.f32.gmra.mxu2 %vm1471_vm5, %v1448_v53 }
 0x2a2   : > { %v1357_v43 = vpop.f32.mrf.mxu1  ;;  %v1784_v59 = vpop.f32.mrf.mxu2 }
 0x2a3   : > { %v1358_v62 = vadd.f32 %v5804_v24, %v1357_v43  ;;  %v1785_v34 = vadd.f32 %v6131_v30, %v1784_v59  ;;  %v1710_v59 = vadd.f32 %v6131_v30, %v5965_v0 }
 0x2a5   : > { %v1449_v63 = vmax.f32 %v1358_v62, 0.0  ;;  %4978 = vmatmul.msk.f32.gmra.mxu1 %vm1883_vm6, %v1692_v20  ;;  %5009 = vmatmul.msk.f32.gmra.mxu3 %vm1883_vm6, %v1785_v34 }
 0x2a7   : > { %4961 = vmatmul.msk.f32.gmra.mxu2 %vm1471_vm5, %v1449_v63 }
 0x2aa   : > { %v1360_v50 = vpop.f32.mrf.mxu1  ;;  %v1787_v32 = vpop.f32.mrf.mxu2 }
 0x2ab   : > { %v1361_v5 = vadd.f32 %v5804_v24, %v1360_v50  ;;  %v1788_v42 = vadd.f32 %v6131_v30, %v1787_v32  ;;  %v1713_v50 = vadd.f32 %v6131_v30, %v5972_v6 }
 0x2ad   : > { %v1450_v11 = vmax.f32 %v1361_v5, 0.0  ;;  %4979 = vmatmul.msk.f32.gmra.mxu1 %vm1883_vm6, %v1695_v4  ;;  %5010 = vmatmul.msk.f32.gmra.mxu3 %vm1883_vm6, %v1788_v42 }
 0x2af   : > { %4962 = vmatmul.msk.f32.gmra.mxu2 %vm1471_vm5, %v1450_v11  ;;  %v1716_v11 = vadd.f32 %v6131_v30, %v5979_v13  ;;  %v5449_v13 = vld [vmem:[%s7814_s4] ss:$0 sm:$0xff] }
 0x2b2   : > { %v1363_v57 = vpop.f32.mrf.mxu1  ;;  %v1790_v38 = vpop.f32.mrf.mxu2 }
 0x2b3   : > { %v1364_v44 = vadd.f32 %v5804_v24, %v1363_v57  ;;  %v1791_v54 = vadd.f32 %v6131_v30, %v1790_v38 }
 0x2b5   : > { %v1451_v21 = vmax.f32 %v1364_v44, 0.0  ;;  %4980 = vmatmul.msk.f32.gmra.mxu1 %vm1883_vm6, %v1698_v18  ;;  %5011 = vmatmul.msk.f32.gmra.mxu3 %vm1883_vm6, %v1791_v54  ;;  %v1719_v54 = vadd.f32 %v6131_v30, %v5986_v19 }
 0x2b7   : > { %4963 = vmatmul.msk.f32.gmra.mxu2 %vm1471_vm5, %v1451_v21 }
 0x2ba   : > { %v1366_v48 = vpop.f32.mrf.mxu1  ;;  %v1793_v29 = vpop.f32.mrf.mxu2 }
 0x2bb   : > { %v1367_v56 = vadd.f32 %v5804_v24, %v1366_v48  ;;  %v1794_v9 = vadd.f32 %v6131_v30, %v1793_v29 }
 0x2bd   : > { %v1452_v60 = vmax.f32 %v1367_v56, 0.0  ;;  %4981 = vmatmul.msk.f32.gmra.mxu1 %vm1883_vm6, %v1701_v2  ;;  %5012 = vmatmul.msk.f32.gmra.mxu3 %vm1883_vm6, %v1794_v9  ;;  %v1722_v2 = vadd.f32 %v6131_v30, %v5993_v25  ;;  %v2354_v25 = vld [vmem:[%s7819_s9 + $0x8] sm:$0xff] }
 0x2be   : > { %2570 = vmatpush.msrb.mxu3 %v2354_v25 }
 0x2bf   : > { %4964 = vmatmul.msk.f32.gmra.mxu2 %vm1471_vm5, %v1452_v60 }
 0x2c2   : > { %v1369_v10 = vpop.f32.mrf.mxu1  ;;  %v1796_v36 = vpop.f32.mrf.mxu2 }
 0x2c3   : > { %v1370_v40 = vadd.f32 %v5804_v24, %v1369_v10  ;;  %v1797_v12 = vadd.f32 %v6131_v30, %v1796_v36  ;;  %v1725_v36 = vadd.f32 %v6131_v30, %v6003_v31  ;;  %v1728_v31 = vadd.f32 %v6131_v30, %v6010_v45 }
 0x2c4   : > { %v1731_v45 = vadd.f32 %v6131_v30, %v6017_v55 }
 0x2c5   : > { %v1453_v37 = vmax.f32 %v1370_v40, 0.0  ;;  %4982 = vmatmul.msk.f32.gmra.mxu1 %vm1883_vm6, %v1704_v39  ;;  %5013 = vmatmul.msk.f32.gmra.mxu3 %vm1883_vm6, %v1797_v12 }
 0x2c7   : > { %4965 = vmatmul.msk.f32.gmra.mxu2 %vm1471_vm5, %v1453_v37 }
 0x2ca   : > { %v1372_v46 = vpop.f32.mrf.mxu1  ;;  %v1799_v7 = vpop.f32.mrf.mxu2 }
 0x2cb   : > { %v1373_v49 = vadd.f32 %v5804_v24, %v1372_v46  ;;  %v1800_v52 = vadd.f32 %v6131_v30, %v1799_v7 }
 0x2cd   : > { %v1454_v22 = vmax.f32 %v1373_v49, 0.0  ;;  %4983 = vmatmul.msk.f32.gmra.mxu1 %vm1883_vm6, %v1707_v47  ;;  %5014 = vmatmul.msk.f32.gmra.mxu3 %vm1883_vm6, %v1800_v52  ;;  %v2835_v52 = vld [vmem:[%s7821_s11 + $0x30] sm:$0x3] }
 0x2ce   : > { %5105 = vmatpush.msk.msrb.mxu0 %vm1186_vm2, %v2835_v52 }
 0x2cf   : > { %4966 = vmatmul.msk.f32.gmra.mxu2 %vm1471_vm5, %v1454_v22 }
 0x2d2   : > { %v1375_v53 = vpop.f32.mrf.mxu1  ;;  %v1802_v43 = vpop.f32.mrf.mxu2 }
 0x2d3   : > { %v1376_v20 = vadd.f32 %v5804_v24, %v1375_v53  ;;  %v1803_v58 = vadd.f32 %v6131_v30, %v1802_v43 }
 0x2d5   : > { %v1455_v62 = vmax.f32 %v1376_v20, 0.0  ;;  %4984 = vmatmul.msk.f32.gmra.mxu1 %vm1883_vm6, %v1710_v59  ;;  %5015 = vmatmul.msk.f32.gmra.mxu3 %vm1883_vm6, %v1803_v58 }
 0x2d7   : > { %4967 = vmatmul.msk.f32.gmra.mxu2 %vm1471_vm5, %v1455_v62  ;;  %v1734_v62 = vadd.f32 %v6131_v30, %v6024_v3 }
 0x2da   : > { %v1378_v34 = vpop.f32.mrf.mxu1  ;;  %v1805_v63 = vpop.f32.mrf.mxu2 }
 0x2db   : > { %v1379_v32 = vadd.f32 %v5804_v24, %v1378_v34  ;;  %v1806_v0 = vadd.f32 %v6131_v30, %v1805_v63 }
 0x2dd   : > { %v1456_v4 = vmax.f32 %v1379_v32, 0.0  ;;  %4985 = vmatmul.msk.f32.gmra.mxu1 %vm1883_vm6, %v1713_v50  ;;  %5016 = vmatmul.msk.f32.gmra.mxu3 %vm1883_vm6, %v1806_v0  ;;  %v1737_v50 = vadd.f32 %v6131_v30, %v6031_v14 }
 0x2df   : > { %4968 = vmatmul.msk.f32.gmra.mxu2 %vm1471_vm5, %v1456_v4  ;;  %v1740_v4 = vadd.f32 %v6131_v30, %v6038_v26  ;;  %v2834_v26 = vld [vmem:[%s7821_s11 + $0x28] sm:$0xff] }
 0x2e0   : > { %3045 = vmatpush.msrb.mxu0 %v2834_v26 }
 0x2e2   : > { %v1381_v5 = vpop.f32.mrf.mxu1  ;;  %v1808_v42 = vpop.f32.mrf.mxu2 }
 0x2e3   : > { %v1382_v57 = vadd.f32 %v5804_v24, %v1381_v5  ;;  %v1809_v6 = vadd.f32 %v6131_v30, %v1808_v42 }
 0x2e5   : > { %v1457_v38 = vmax.f32 %v1382_v57, 0.0  ;;  %4986 = vmatmul.msk.f32.gmra.mxu1 %vm1883_vm6, %v1716_v11  ;;  %5017 = vmatmul.msk.f32.gmra.mxu3 %vm1883_vm6, %v1809_v6  ;;  %v1743_v11 = vadd.f32 %v6131_v30, %v6045_v35 }
 0x2e7   : > { %4969 = vmatmul.msk.f32.gmra.mxu2 %vm1471_vm5, %v1457_v38 }
 0x2ea   : > { %v1384_v18 = vpop.f32.mrf.mxu1  ;;  %v1811_v44 = vpop.f32.mrf.mxu2 }
 0x2eb   : > { %v1385_v21 = vadd.f32 %v5449_v13, %v1384_v18  ;;  %v1812_v24 = vadd.f32 %v6131_v30, %v1811_v44  ;;  %v1746_v18 = vadd.f32 %v6131_v30, %v6052_v16  ;;  %v2353_v16 = vld [vmem:[%s7819_s9] sm:$0xff] }
 0x2ec   : > { %2571 = vmatpush.msrb.mxu3 %v2353_v16 }
 0x2ed   : > { %v1458_v1 = vmax.f32 %v1385_v21, 0.0  ;;  %4987 = vmatmul.msk.f32.gmra.mxu1 %vm1883_vm6, %v1719_v54  ;;  %5018 = vmatmul.msk.f32.gmra.mxu3 %vm1883_vm6, %v1812_v24 }
 0x2ef   : > { %4970 = vmatmul.msk.f32.gmra.mxu2 %vm1471_vm5, %v1458_v1 }
 0x2f2   : > { %v1387_v48 = vpop.f32.mrf.mxu1  ;;  %v1814_v29 = vpop.f32.mrf.mxu2 }
 0x2f3   : > { %v1388_v19 = vadd.f32 %v5449_v13, %v1387_v48  ;;  %v1815_v56 = vadd.f32 %v6131_v30, %v1814_v29  ;;  %v1752_v48 = vadd.f32 %v6131_v30, %v6066_v33  ;;  %v2833_v33 = vld [vmem:[%s7821_s11 + $0x20] sm:$0xff] }
 0x2f4   : > { %3046 = vmatpush.msrb.mxu0 %v2833_v33 }
 0x2f5   : > { %v1459_v9 = vmax.f32 %v1388_v19, 0.0  ;;  %4988 = vmatmul.msk.f32.gmra.mxu1 %vm1883_vm6, %v1722_v2  ;;  %5019 = vmatmul.msk.f32.gmra.mxu3 %vm1883_vm6, %v1815_v56  ;;  %v1755_v56 = vadd.f32 %v6131_v30, %v6073_v41 }
 0x2f7   : > { %4971 = vmatmul.msk.f32.gmra.mxu2 %vm1471_vm5, %v1459_v9 }
 0x2fa   : > { %v1390_v60 = vpop.f32.mrf.mxu1  ;;  %v1817_v10 = vpop.f32.mrf.mxu2 }
 0x2fb   : > { %v1391_v39 = vadd.f32 %v5449_v13, %v1390_v60  ;;  %v1818_v40 = vadd.f32 %v6131_v30, %v1817_v10 }
 0x2fd   : > { %v1460_v12 = vmax.f32 %v1391_v39, 0.0  ;;  %4989 = vmatmul.msk.f32.gmra.mxu1 %vm1883_vm6, %v1725_v36  ;;  %5020 = vmatmul.msk.f32.gmra.mxu3 %vm1883_vm6, %v1818_v40  ;;  %v1758_v36 = vadd.f32 %v6131_v30, %v6080_v51 }
 0x2ff   : > { %4972 = vmatmul.msk.f32.gmra.mxu2 %vm1471_vm5, %v1460_v12  ;;  %v1761_v12 = vadd.f32 %v6131_v30, %v6087_v61 }
 0x302   : > { %v1393_v37 = vpop.f32.mrf.mxu1  ;;  %v1820_v46 = vpop.f32.mrf.mxu2 }
 0x303   : > { %v1394_v7 = vadd.f32 %v5449_v13, %v1393_v37  ;;  %v1821_v47 = vadd.f32 %v6131_v30, %v1820_v46 }
 0x305   : > { %v1461_v49 = vmax.f32 %v1394_v7, 0.0  ;;  %4990 = vmatmul.msk.f32.gmra.mxu1 %vm1883_vm6, %v1728_v31  ;;  %5021 = vmatmul.msk.f32.gmra.mxu3 %vm1883_vm6, %v1821_v47  ;;  %v1764_v7 = vadd.f32 %v6131_v30, %v6096_v8 }
 0x307   : > { %4973 = vmatmul.msk.f32.gmra.mxu2 %vm1471_vm5, %v1461_v49 }
 0x30a   : > { %v1396_v22 = vpop.f32.mrf.mxu1  ;;  %v1823_v53 = vpop.f32.mrf.mxu2 }
 0x30b   : > { %v1397_v43 = vadd.f32 %v5449_v13, %v1396_v22  ;;  %v1824_v59 = vadd.f32 %v6131_v30, %v1823_v53  ;;  %v1749_v13 = vadd.f32 %v6131_v30, %v6059_v23  ;;  %v1767_v22 = vadd.f32 %v6131_v30, %v6102_v17  ;;  %v2832_v17 = vld [vmem:[%s7821_s11 + $0x18] sm:$0xff] }
 0x30c   : > { %3047 = vmatpush.msrb.mxu0 %v2832_v17 }
 0x30d   : > { %v1462_v20 = vmax.f32 %v1397_v43, 0.0  ;;  %4991 = vmatmul.msk.f32.gmra.mxu1 %vm1883_vm6, %v1731_v45  ;;  %5022 = vmatmul.msk.f32.gmra.mxu3 %vm1883_vm6, %v1824_v59  ;;  %v1770_v59 = vadd.f32 %v6131_v30, %v6112_v28 }
 0x30f   : > { %4974 = vmatmul.msk.f32.gmra.mxu2 %vm1471_vm5, %v1462_v20 }
 0x312   : > { %v1826_v58 = vpop.f32.mrf.mxu2  ;;  %v6309_v2 = vpop.f32.mrf.mxu1 }
 0x313   : > { %v1827_v34 = vadd.f32 %v6131_v30, %v1826_v58 }
 0x315   : > { %4992 = vmatmul.msk.f32.gmra.mxu1 %vm1883_vm6, %v1734_v62  ;;  %5023 = vmatmul.msk.f32.gmra.mxu3 %vm1883_vm6, %v1827_v34  ;;  %v1773_v34 = vadd.f32 %v6131_v30, %v6118_v15 }
 0x318   : > { %v6259_v55 = vpop.f32.mrf.mxu3 }
 0x31a   : > { %v1829_v63 = vpop.f32.mrf.mxu2  ;;  %v6323_v39 = vpop.f32.mrf.mxu1 }
 0x31b   : > { %v1830_v32 = vadd.f32 %v6131_v30, %v1829_v63 }
 0x31d   : > { %4993 = vmatmul.msk.f32.gmra.mxu1 %vm1883_vm6, %v1737_v50  ;;  %5024 = vmatmul.msk.f32.gmra.mxu3 %vm1883_vm6, %v1830_v32 }
 0x320   : > { %v6266_v0 = vpop.f32.mrf.mxu3 }
 0x322   : > { %v1832_v3 = vpop.f32.mrf.mxu2  ;;  %v2103_v46 = vpop.f32.mrf.mxu1 }
 0x323   : > { %v1833_v5 = vadd.f32 %v6131_v30, %v1832_v3  ;;  %v1776_v3 = vadd.f32 %v6131_v30, %v6124_v27  ;;  %v6382_v27 = vld [vmem:[%s7818_s8] ss:$0 sm:$0xff] }
 0x324   : > { %v2101_v16 = vadd.f32 %v6382_v27, %v6323_v39 }
 0x325   : > { %4994 = vmatmul.msk.f32.gmra.mxu1 %vm1883_vm6, %v1740_v4  ;;  %5025 = vmatmul.msk.f32.gmra.mxu3 %vm1883_vm6, %v1833_v5 }
 0x328   : > { %v6273_v42 = vpop.f32.mrf.mxu3 }
 0x32a   : > { %v1835_v14 = vpop.f32.mrf.mxu2  ;;  %v2106_v61 = vpop.f32.mrf.mxu1 }
 0x32b   : > { %v1836_v57 = vadd.f32 %v6131_v30, %v1835_v14 }
 0x32d   : > { %4995 = vmatmul.msk.f32.gmra.mxu1 %vm1883_vm6, %v1743_v11  ;;  %5026 = vmatmul.msk.f32.gmra.mxu3 %vm1883_vm6, %v1836_v57 }
 0x330   : > { %v6283_v6 = vpop.f32.mrf.mxu3 }
 0x332   : > { %v1838_v38 = vpop.f32.mrf.mxu2  ;;  %v2109_v45 = vpop.f32.mrf.mxu1 }
 0x333   : > { %v1839_v44 = vadd.f32 %v6131_v30, %v1838_v38 }
 0x335   : > { %4996 = vmatmul.msk.f32.gmra.mxu1 %vm1883_vm6, %v1746_v18  ;;  %5027 = vmatmul.msk.f32.gmra.mxu3 %vm1883_vm6, %v1839_v44  ;;  %v2098_v18 = vadd.f32 %v6382_v27, %v6309_v2 }
 0x338   : > { %v6290_v35 = vpop.f32.mrf.mxu3 }
 0x33a   : > { %v1841_v54 = vpop.f32.mrf.mxu2  ;;  %v2112_v63 = vpop.f32.mrf.mxu1 }
 0x33b   : > { %v1842_v21 = vadd.f32 %v6131_v30, %v1841_v54  ;;  %v2289_v54 = vmax.f32 %v2098_v18, 0.0 }
 0x33d   : > { %4997 = vmatmul.msk.f32.gmra.mxu1 %vm1883_vm6, %v1749_v13  ;;  %5028 = vmatmul.msk.f32.gmra.mxu3 %vm1883_vm6, %v1842_v21  ;;  %v2831_v13 = vld [vmem:[%s7821_s11 + $0x10] sm:$0xff] }
 0x33e   : > { %3048 = vmatpush.msrb.mxu0 %v2831_v13 }
 0x340   : > { %v6300_v24 = vpop.f32.mrf.mxu3 }
 0x342   : > { %v1844_v1 = vpop.f32.mrf.mxu2  ;;  %v2115_v5 = vpop.f32.mrf.mxu1 }
 0x343   : > { %v1845_v29 = vadd.f32 %v6131_v30, %v1844_v1  ;;  %v2290_v1 = vmax.f32 %v2101_v16, 0.0 }
 0x345   : > { %4998 = vmatmul.msk.f32.gmra.mxu1 %vm1883_vm6, %v1752_v48  ;;  %5029 = vmatmul.msk.f32.gmra.mxu3 %vm1883_vm6, %v1845_v29  ;;  %v2104_v48 = vadd.f32 %v6382_v27, %v2103_v46 }
 0x348   : > { %v6307_v23 = vpop.f32.mrf.mxu3 }
 0x34a   : > { %v1847_v19 = vpop.f32.mrf.mxu2  ;;  %v2118_v21 = vpop.f32.mrf.mxu1 }
 0x34b   : > { %v1848_v9 = vadd.f32 %v6131_v30, %v1847_v19  ;;  %v2291_v19 = vmax.f32 %v2104_v48, 0.0 }
 0x34d   : > { %4999 = vmatmul.msk.f32.gmra.mxu1 %vm1883_vm6, %v1755_v56  ;;  %5030 = vmatmul.msk.f32.gmra.mxu3 %vm1883_vm6, %v1848_v9  ;;  %v2107_v56 = vadd.f32 %v6382_v27, %v2106_v61 }
 0x350   : > { %v6319_v60 = vpop.f32.mrf.mxu3 }
 0x352   : > { %v1850_v10 = vpop.f32.mrf.mxu2  ;;  %v2121_v29 = vpop.f32.mrf.mxu1 }
 0x353   : > { %v1851_v41 = vadd.f32 %v6131_v30, %v1850_v10  ;;  %v2292_v10 = vmax.f32 %v2107_v56, 0.0 }
 0x355   : > { %5000 = vmatmul.msk.f32.gmra.mxu1 %vm1883_vm6, %v1758_v36  ;;  %5031 = vmatmul.msk.f32.gmra.mxu3 %vm1883_vm6, %v1851_v41  ;;  %v2110_v36 = vadd.f32 %v6382_v27, %v2109_v45 }
 0x357   : > { %v2293_v41 = vmax.f32 %v2110_v36, 0.0 }
 0x358   : > { %v6328_v40 = vpop.f32.mrf.mxu3 }
 0x35a   : > { %v1853_v25 = vpop.f32.mrf.mxu2  ;;  %v2124_v33 = vpop.f32.mrf.mxu1 }
 0x35b   : > { %v1854_v37 = vadd.f32 %v6131_v30, %v1853_v25 }
 0x35d   : > { %5001 = vmatmul.msk.f32.gmra.mxu1 %vm1883_vm6, %v1761_v12  ;;  %5032 = vmatmul.msk.f32.gmra.mxu3 %vm1883_vm6, %v1854_v37  ;;  %v2830_v12 = vld [vmem:[%s7821_s11 + $0x8] sm:$0xff]  ;;  %v2113_v37 = vadd.f32 %v6382_v27, %v2112_v63 }
 0x35e   : > { %3049 = vmatpush.msrb.mxu0 %v2830_v12 }
 0x360   : > { %v6335_v51 = vpop.f32.mrf.mxu3 }
 0x362   : > { %v1856_v31 = vpop.f32.mrf.mxu2  ;;  %v2127_v25 = vpop.f32.mrf.mxu1 }
 0x363   : > { %v1857_v47 = vadd.f32 %v6131_v30, %v1856_v31  ;;  %v2294_v31 = vmax.f32 %v2113_v37, 0.0 }
 0x365   : > { %5002 = vmatmul.msk.f32.gmra.mxu1 %vm1883_vm6, %v1764_v7  ;;  %5033 = vmatmul.msk.f32.gmra.mxu3 %vm1883_vm6, %v1857_v47  ;;  %v2116_v47 = vadd.f32 %v6382_v27, %v2115_v5 }
 0x368   : > { %v6342_v49 = vpop.f32.mrf.mxu3 }
 0x36a   : > { %v1859_v52 = vpop.f32.mrf.mxu2  ;;  %v2130_v7 = vpop.f32.mrf.mxu1 }
 0x36b   : > { %v1860_v53 = vadd.f32 %v6131_v30, %v1859_v52  ;;  %v2295_v52 = vmax.f32 %v2116_v47, 0.0 }
 0x36d   : > { %5003 = vmatmul.msk.f32.gmra.mxu1 %vm1883_vm6, %v1767_v22  ;;  %5034 = vmatmul.msk.f32.gmra.mxu3 %vm1883_vm6, %v1860_v53  ;;  %v2119_v22 = vadd.f32 %v6382_v27, %v2118_v21 }
 0x370   : > { %v6349_v8 = vpop.f32.mrf.mxu3 }
 0x372   : > { %v1862_v43 = vpop.f32.mrf.mxu2  ;;  %v2133_v53 = vpop.f32.mrf.mxu1 }
 0x373   : > { %v1863_v20 = vadd.f32 %v6131_v30, %v1862_v43  ;;  %v2296_v43 = vmax.f32 %v2119_v22, 0.0 }
 0x375   : > { %5004 = vmatmul.msk.f32.gmra.mxu1 %vm1883_vm6, %v1770_v59  ;;  %5035 = vmatmul.msk.f32.gmra.mxu3 %vm1883_vm6, %v1863_v20  ;;  %v2122_v59 = vadd.f32 %v6382_v27, %v2121_v29 }
 0x378   : > { %v6359_v58 = vpop.f32.mrf.mxu3 }
 0x37a   : > { %v1865_v62 = vpop.f32.mrf.mxu2  ;;  %v2136_v17 = vpop.f32.mrf.mxu1 }
 0x37b   : > { %v1866_v28 = vadd.f32 %v6131_v30, %v1865_v62  ;;  %v2297_v62 = vmax.f32 %v2122_v59, 0.0 }
 0x37d   : > { %5005 = vmatmul.msk.f32.gmra.mxu1 %vm1883_vm6, %v1773_v34  ;;  %5036 = vmatmul.msk.f32.gmra.mxu3 %vm1883_vm6, %v1866_v28  ;;  %v2125_v34 = vadd.f32 %v6382_v27, %v2124_v33 }
 0x37f   : > { %v2298_v28 = vmax.f32 %v2125_v34, 0.0 }
 0x380   : > { %v6366_v50 = vpop.f32.mrf.mxu3 }
 0x382   : > { %v1868_v32 = vpop.f32.mrf.mxu2 }
 0x383   : > { %v1869_v4 = vadd.f32 %v6131_v30, %v1868_v32  ;;  %v2829_v32 = vld [vmem:[%s7821_s11] sm:$0xff] }
 0x384   : > { %3050 = vmatpush.msrb.mxu0 %v2829_v32 }
 0x385   : > { %5006 = vmatmul.msk.f32.gmra.mxu1 %vm1883_vm6, %v1776_v3  ;;  %5037 = vmatmul.msk.f32.gmra.mxu3 %vm1883_vm6, %v1869_v4  ;;  %v2139_v3 = vpop.f32.mrf.mxu1  ;;  %v2128_v4 = vadd.f32 %v6382_v27, %v2127_v25 }
 0x386   : > { %v2140_v56 = vadd.f32 %v6382_v27, %v2139_v3 }
 0x388   : > { %v6373_v15 = vpop.f32.mrf.mxu3 }
 0x38a   : > { %v1871_v14 = vpop.f32.mrf.mxu2 }
 0x38b   : > { %v1872_v11 = vadd.f32 %v6131_v30, %v1871_v14  ;;  %v2299_v14 = vmax.f32 %v2128_v4, 0.0 }
 0x38d   : > { %5038 = vmatmul.msk.f32.gmra.mxu3 %vm1883_vm6, %v1872_v11  ;;  %v2142_v11 = vpop.f32.mrf.mxu1 }
 0x390   : > { %v6377_v57 = vpop.f32.mrf.mxu3 }
 0x392   : > { %v1874_v26 = vpop.f32.mrf.mxu2 }
 0x393   : > { %v1875_v38 = vadd.f32 %v6131_v30, %v1874_v26  ;;  %v2131_v26 = vadd.f32 %v6382_v27, %v2130_v7 }
 0x395   : > { %5039 = vmatmul.msk.f32.gmra.mxu3 %vm1883_vm6, %v1875_v38  ;;  %v2300_v18 = vmax.f32 %v2131_v26, 0.0  ;;  %v2145_v13 = vpop.f32.mrf.mxu1 }
 0x398   : > { %v6388_v44 = vpop.f32.mrf.mxu3 }
 0x39d   : > { %5041 = vmatmul.msk.f32.vlgmr.msrb.gmra.mxu3 %vm1471_vm5, %v2289_v54  ;;  %v2134_v54 = vadd.f32 %v6382_v27, %v2133_v53  ;;  %v2148_v29 = vpop.f32.mrf.mxu1 }
 0x39e   : > { %v2149_v22 = vadd.f32 %v6382_v27, %v2148_v29 }
 0x39f   : > { %v2301_v16 = vmax.f32 %v2134_v54, 0.0 }
 0x3a0   : > { %v6396_v30 = vpop.f32.mrf.mxu3 }
 0x3a5   : > { %5042 = vmatmul.msk.f32.gmra.mxu3 %vm1471_vm5, %v2290_v1  ;;  %v2137_v1 = vadd.f32 %v6382_v27, %v2136_v17  ;;  %v2151_v36 = vpop.f32.mrf.mxu1  ;;  %v2306_v17 = vmax.f32 %v2149_v22, 0.0 }
 0x3a6   : > { %v2152_v34 = vadd.f32 %v6382_v27, %v2151_v36 }
 0x3a8   : > { %v6400_v2 = vpop.f32.mrf.mxu3  ;;  %v2307_v4 = vmax.f32 %v2152_v34, 0.0 }
 0x3ad   : > { %5043 = vmatmul.msk.f32.gmra.mxu3 %vm1471_vm5, %v2291_v19  ;;  %v2302_v19 = vmax.f32 %v2137_v1, 0.0  ;;  %v2154_v37 = vpop.f32.mrf.mxu1 }
 0x3b0   : > { %v6404_v9 = vpop.f32.mrf.mxu3 }
 0x3b5   : > { %5044 = vmatmul.msk.f32.gmra.mxu3 %vm1471_vm5, %v2292_v10  ;;  %v2303_v10 = vmax.f32 %v2140_v56, 0.0  ;;  %v2157_v53 = vpop.f32.mrf.mxu1 }
 0x3b6   : > { %v2158_v1 = vadd.f32 %v6382_v27, %v2157_v53 }
 0x3b8   : > { %v6408_v39 = vpop.f32.mrf.mxu3  ;;  %v2309_v56 = vmax.f32 %v2158_v1, 0.0 }
 0x3bd   : > { %5045 = vmatmul.msk.f32.gmra.mxu3 %vm1471_vm5, %v2293_v41  ;;  %v2143_v41 = vadd.f32 %v6382_v27, %v2142_v11  ;;  %v2160_v3 = vpop.f32.mrf.mxu1  ;;  %v2155_v11 = vadd.f32 %v6382_v27, %v2154_v37 }
 0x3bf   : > { %v2304_v12 = vmax.f32 %v2143_v41, 0.0  ;;  %v2308_v54 = vmax.f32 %v2155_v11, 0.0  ;;  %v2161_v41 = vadd.f32 %v6382_v27, %v2160_v3 }
 0x3c0   : > { %v6415_v46 = vpop.f32.mrf.mxu3 }
 0x3c5   : > { %5046 = vmatmul.msk.f32.gmra.mxu3 %vm1471_vm5, %v2294_v31  ;;  %v2146_v31 = vadd.f32 %v6382_v27, %v2145_v13 }
 0x3c7   : > { %v2305_v47 = vmax.f32 %v2146_v31, 0.0  ;;  %v2310_v31 = vmax.f32 %v2161_v41, 0.0 }
 0x3c8   : > { %v6419_v61 = vpop.f32.mrf.mxu3 }
 0x3cd   : > { %5047 = vmatmul.msk.f32.gmra.mxu3 %vm1471_vm5, %v2295_v52  ;;  %v6468_v52 = vld [vmem:[%s7820_s10] ss:$0 sm:$0xff] }
 0x3d0   : > { %v6423_v45 = vpop.f32.mrf.mxu3 }
 0x3d5   : > { %5048 = vmatmul.msk.f32.gmra.mxu3 %vm1471_vm5, %v2296_v43 }
 0x3d8   : > { %v6427_v20 = vpop.f32.mrf.mxu3 }
 0x3dd   : > { %5049 = vmatmul.msk.f32.gmra.mxu3 %vm1471_vm5, %v2297_v62 }
 0x3e0   : > { %v6431_v63 = vpop.f32.mrf.mxu3 }
 0x3e5   : > { %5050 = vmatmul.msk.f32.gmra.mxu3 %vm1471_vm5, %v2298_v28 }
 0x3e8   : > { %v6438_v5 = vpop.f32.mrf.mxu3 }
 0x3ed   : > { %5051 = vmatmul.msk.f32.gmra.mxu3 %vm1471_vm5, %v2299_v14 }
 0x3f0   : > { %v6442_v38 = vpop.f32.mrf.mxu3 }
 0x3f5   : > { %5052 = vmatmul.msk.f32.gmra.mxu3 %vm1471_vm5, %v2300_v18 }
 0x3f8   : > { %v6446_v21 = vpop.f32.mrf.mxu3 }
 0x3fd   : > { %5053 = vmatmul.msk.f32.gmra.mxu3 %vm1471_vm5, %v2301_v16  ;;  %v2163_v16 = vpop.f32.mrf.mxu1 }
 0x3fe   : > { %v2164_v22 = vadd.f32 %v6382_v27, %v2163_v16 }
 0x400   : > { %v6450_v48 = vpop.f32.mrf.mxu3 }
 0x405   : > { %5054 = vmatmul.msk.f32.gmra.mxu3 %vm1471_vm5, %v2302_v19  ;;  %v2166_v36 = vpop.f32.mrf.mxu1 }
 0x406   : > { %v2167_v34 = vadd.f32 %v6382_v27, %v2166_v36 }
 0x408   : > { %v6454_v33 = vpop.f32.mrf.mxu3 }
 0x40d   : > { %5055 = vmatmul.msk.f32.gmra.mxu3 %vm1471_vm5, %v2303_v10  ;;  %v2169_v53 = vpop.f32.mrf.mxu1 }
 0x40e   : > { %v2170_v11 = vadd.f32 %v6382_v27, %v2169_v53 }
 0x410   : > { %v6458_v25 = vpop.f32.mrf.mxu3 }
 0x415   : > { %5056 = vmatmul.msk.f32.gmra.mxu3 %vm1471_vm5, %v2304_v12  ;;  %v2172_v3 = vpop.f32.mrf.mxu1 }
 0x416   : > { %v2173_v1 = vadd.f32 %v6382_v27, %v2172_v3 }
 0x418   : > { %v6462_v7 = vpop.f32.mrf.mxu3 }
 0x41d   : > { %5057 = vmatmul.msk.f32.gmra.mxu3 %vm1471_vm5, %v2305_v47  ;;  %v2175_v16 = vpop.f32.mrf.mxu1 }
 0x41e   : > { %v2176_v41 = vadd.f32 %v6382_v27, %v2175_v16 }
 0x420   : > { %v2573_v43 = vpop.f32.mrf.mxu3 }
 0x421   : > { %v2574_v59 = vadd.f32 %v6468_v52, %v2573_v43 }
 0x423   : > { %v2765_v62 = vmax.f32 %v2574_v59, 0.0 }
 0x425   : > { %5058 = vmatmul.msk.f32.gmra.mxu3 %vm1471_vm5, %v2306_v17  ;;  %5106 = vmatmul.msk.f32.vlgmr.msrb.gmra.mxu0 %vm993_vm3, %v2765_v62  ;;  %v2311_v17 = vmax.f32 %v2164_v22, 0.0  ;;  %v2178_v36 = vpop.f32.mrf.mxu1 }
 0x426   : > { %v2179_v22 = vadd.f32 %v6382_v27, %v2178_v36  ;;  %v2191_v36 = vadd.f32 %v6382_v27, %v6259_v55  ;;  %v2197_v55 = vadd.f32 %v6382_v27, %v6273_v42  ;;  %v2200_v42 = vadd.f32 %v6382_v27, %v6283_v6 }
 0x427   : > { %v2203_v6 = vadd.f32 %v6382_v27, %v6290_v35  ;;  %v2206_v35 = vadd.f32 %v6382_v27, %v6300_v24  ;;  %v2209_v24 = vadd.f32 %v6382_v27, %v6307_v23 }
 0x428   : > { %v2576_v28 = vpop.f32.mrf.mxu3 }
 0x429   : > { %v2577_v32 = vadd.f32 %v6468_v52, %v2576_v28 }
 0x42b   : > { %v2766_v14 = vmax.f32 %v2577_v32, 0.0 }
 0x42d   : > { %5059 = vmatmul.msk.f32.gmra.mxu3 %vm1471_vm5, %v2307_v4  ;;  %5107 = vmatmul.msk.f32.gmra.mxu0 %vm993_vm3, %v2766_v14  ;;  %v2312_v4 = vmax.f32 %v2167_v34, 0.0  ;;  %v2181_v53 = vpop.f32.mrf.mxu1 }
 0x42e   : > { %v2182_v34 = vadd.f32 %v6382_v27, %v2181_v53 }
 0x430   : > { %v2579_v26 = vpop.f32.mrf.mxu3 }
 0x431   : > { %v2580_v18 = vadd.f32 %v6468_v52, %v2579_v26 }
 0x433   : > { %v2767_v13 = vmax.f32 %v2580_v18, 0.0 }
 0x435   : > { %5060 = vmatmul.msk.f32.gmra.mxu3 %vm1471_vm5, %v2308_v54  ;;  %5108 = vmatmul.msk.f32.gmra.mxu0 %vm993_vm3, %v2767_v13  ;;  %v2313_v54 = vmax.f32 %v2170_v11, 0.0  ;;  %v2184_v3 = vpop.f32.mrf.mxu1 }
 0x436   : > { %v2185_v11 = vadd.f32 %v6382_v27, %v2184_v3 }
 0x438   : > { %v2582_v29 = vpop.f32.mrf.mxu3 }
 0x439   : > { %v2583_v19 = vadd.f32 %v6468_v52, %v2582_v29 }
 0x43b   : > { %v2768_v10 = vmax.f32 %v2583_v19, 0.0 }
 0x43d   : > { %5061 = vmatmul.msk.f32.gmra.mxu3 %vm1471_vm5, %v2309_v56  ;;  %5109 = vmatmul.msk.f32.gmra.mxu0 %vm993_vm3, %v2768_v10  ;;  %v2314_v56 = vmax.f32 %v2173_v1, 0.0  ;;  %v2187_v16 = vpop.f32.mrf.mxu1 }
 0x43e   : > { %v2188_v1 = vadd.f32 %v6382_v27, %v2187_v16 }
 0x440   : > { %v2585_v12 = vpop.f32.mrf.mxu3 }
 0x441   : > { %v2586_v37 = vadd.f32 %v6468_v52, %v2585_v12 }
 0x443   : > { %v2769_v47 = vmax.f32 %v2586_v37, 0.0 }
 0x445   : > { %5062 = vmatmul.msk.f32.gmra.mxu3 %vm1471_vm5, %v2310_v31  ;;  %5110 = vmatmul.msk.f32.gmra.mxu0 %vm993_vm3, %v2769_v47  ;;  %v2315_v31 = vmax.f32 %v2176_v41, 0.0 }
 0x448   : > { %v2588_v43 = vpop.f32.mrf.mxu3 }
 0x449   : > { %v2589_v59 = vadd.f32 %v6468_v52, %v2588_v43 }
 0x44b   : > { %v2770_v62 = vmax.f32 %v2589_v59, 0.0 }
 0x44d   : > { %5063 = vmatmul.msk.f32.gmra.mxu3 %vm1471_vm5, %v2311_v17  ;;  %5111 = vmatmul.msk.f32.gmra.mxu0 %vm993_vm3, %v2770_v62  ;;  %v2316_v17 = vmax.f32 %v2179_v22, 0.0 }
 0x450   : > { %v2591_v28 = vpop.f32.mrf.mxu3 }
 0x451   : > { %v2592_v32 = vadd.f32 %v6468_v52, %v2591_v28 }
 0x453   : > { %v2771_v14 = vmax.f32 %v2592_v32, 0.0 }
 0x455   : > { %5064 = vmatmul.msk.f32.gmra.mxu3 %vm1471_vm5, %v2312_v4  ;;  %5112 = vmatmul.msk.f32.gmra.mxu0 %vm993_vm3, %v2771_v14  ;;  %v2317_v4 = vmax.f32 %v2182_v34, 0.0 }
 0x458   : > { %v2594_v26 = vpop.f32.mrf.mxu3 }
 0x459   : > { %v2595_v18 = vadd.f32 %v6468_v52, %v2594_v26 }
 0x45b   : > { %v2772_v13 = vmax.f32 %v2595_v18, 0.0 }
 0x45d   : > { %5065 = vmatmul.msk.f32.gmra.mxu3 %vm1471_vm5, %v2313_v54  ;;  %5113 = vmatmul.msk.f32.gmra.mxu0 %vm993_vm3, %v2772_v13  ;;  %v2318_v54 = vmax.f32 %v2185_v11, 0.0 }
 0x460   : > { %v2597_v29 = vpop.f32.mrf.mxu3 }
 0x461   : > { %v2598_v19 = vadd.f32 %v6468_v52, %v2597_v29 }
 0x463   : > { %v2773_v10 = vmax.f32 %v2598_v19, 0.0 }
 0x465   : > { %5066 = vmatmul.msk.f32.gmra.mxu3 %vm1471_vm5, %v2314_v56  ;;  %5114 = vmatmul.msk.f32.gmra.mxu0 %vm993_vm3, %v2773_v10  ;;  %v2319_v56 = vmax.f32 %v2188_v1, 0.0 }
 0x468   : > { %v2600_v12 = vpop.f32.mrf.mxu3 }
 0x469   : > { %v2601_v37 = vadd.f32 %v6468_v52, %v2600_v12 }
 0x46b   : > { %v2774_v47 = vmax.f32 %v2601_v37, 0.0  ;;  %v2320_v37 = vmax.f32 %v2191_v36, 0.0 }
 0x46d   : > { %5067 = vmatmul.msk.f32.gmra.mxu3 %vm1471_vm5, %v2315_v31  ;;  %5115 = vmatmul.msk.f32.gmra.mxu0 %vm993_vm3, %v2774_v47  ;;  %v2194_v47 = vadd.f32 %v6382_v27, %v6266_v0 }
 0x470   : > { %v2603_v43 = vpop.f32.mrf.mxu3 }
 0x471   : > { %v2604_v59 = vadd.f32 %v6468_v52, %v2603_v43  ;;  %v2321_v43 = vmax.f32 %v2194_v47, 0.0 }
 0x473   : > { %v2775_v62 = vmax.f32 %v2604_v59, 0.0 }
 0x475   : > { %5068 = vmatmul.msk.f32.gmra.mxu3 %vm1471_vm5, %v2316_v17  ;;  %5116 = vmatmul.msk.f32.gmra.mxu0 %vm993_vm3, %v2775_v62  ;;  %v6541_v17 = vld [vmem:[%s7822_s12] ss:$0 sm:$0xff] }
 0x478   : > { %v2606_v28 = vpop.f32.mrf.mxu3 }
 0x479   : > { %v2607_v32 = vadd.f32 %v6468_v52, %v2606_v28  ;;  %v2322_v28 = vmax.f32 %v2197_v55, 0.0 }
 0x47b   : > { %v2776_v14 = vmax.f32 %v2607_v32, 0.0 }
 0x47d   : > { %5069 = vmatmul.msk.f32.gmra.mxu3 %vm1471_vm5, %v2317_v4  ;;  %5117 = vmatmul.msk.f32.gmra.mxu0 %vm993_vm3, %v2776_v14 }
 0x480   : > { %v2609_v26 = vpop.f32.mrf.mxu3 }
 0x481   : > { %v2610_v18 = vadd.f32 %v6468_v52, %v2609_v26 }
 0x483   : > { %v2777_v13 = vmax.f32 %v2610_v18, 0.0 }
 0x485   : > { %5070 = vmatmul.msk.f32.gmra.mxu3 %vm1471_vm5, %v2318_v54  ;;  %5118 = vmatmul.msk.f32.gmra.mxu0 %vm993_vm3, %v2777_v13  ;;  %v2323_v13 = vmax.f32 %v2200_v42, 0.0 }
 0x488   : > { %v2612_v29 = vpop.f32.mrf.mxu3 }
 0x489   : > { %v2613_v19 = vadd.f32 %v6468_v52, %v2612_v29 }
 0x48b   : > { %v2778_v10 = vmax.f32 %v2613_v19, 0.0 }
 0x48d   : > { %5071 = vmatmul.msk.f32.gmra.mxu3 %vm1471_vm5, %v2319_v56  ;;  %5119 = vmatmul.msk.f32.gmra.mxu0 %vm993_vm3, %v2778_v10 }
 0x490   : > { %v2615_v41 = vpop.f32.mrf.mxu3 }
 0x491   : > { %v2616_v12 = vadd.f32 %v6468_v52, %v2615_v41 }
 0x493   : > { %v2779_v31 = vmax.f32 %v2616_v12, 0.0 }
 0x495   : > { %5072 = vmatmul.msk.f32.gmra.mxu3 %vm1471_vm5, %v2320_v37  ;;  %5120 = vmatmul.msk.f32.gmra.mxu0 %vm993_vm3, %v2779_v31  ;;  %v2324_v31 = vmax.f32 %v2203_v6, 0.0 }
 0x498   : > { %v2618_v22 = vpop.f32.mrf.mxu3 }
 0x499   : > { %v2619_v53 = vadd.f32 %v6468_v52, %v2618_v22 }
 0x49b   : > { %v2780_v59 = vmax.f32 %v2619_v53, 0.0 }
 0x49d   : > { %5073 = vmatmul.msk.f32.gmra.mxu3 %vm1471_vm5, %v2321_v43  ;;  %5121 = vmatmul.msk.f32.gmra.mxu0 %vm993_vm3, %v2780_v59 }
 0x4a0   : > { %v2621_v62 = vpop.f32.mrf.mxu3 }
 0x4a1   : > { %v2622_v0 = vadd.f32 %v6468_v52, %v2621_v62 }
 0x4a2   : > { %v3052_v34 = vpop.f32.mrf.mxu0 }
 0x4a3   : > { %v2781_v32 = vmax.f32 %v2622_v0, 0.0  ;;  %v6545_v3 = vadd.f32 %v6541_v17, %v3052_v34 }
 0x4a5   : > { %v3244_v4 = vand.u32 2147483647, %v6545_v3  ;;  %5074 = vmatmul.msk.f32.gmra.mxu3 %vm1471_vm5, %v2322_v28  ;;  %5122 = vmatmul.msk.f32.gmra.mxu0 %vm993_vm3, %v2781_v32  ;;  %vm3500_vm9 = vcmp.ge.f32.partialorder %v6545_v3, 0.0 }
 0x4a7   : > { %v3308_v14 = vsub.f32 0.0, %v3244_v4  ;;  %v2325_v4 = vmax.f32 %v2206_v35, 0.0 }
 0x4a8   : > { %v2624_v11 = vpop.f32.mrf.mxu3 }
 0x4a9   : > { %v3372_v26 = vmul.f32 1.442695, %v3308_v14  ;;  %v2625_v18 = vadd.f32 %v6468_v52, %v2624_v11 }
 0x4aa   : > { %v3055_v54 = vpop.f32.mrf.mxu0 }
 0x4ab   : > { %5192 = vpow2.f32 %v3372_v26  ;;  %v2782_v16 = vmax.f32 %v2625_v18, 0.0  ;;  %v6554_v1 = vadd.f32 %v6541_v17, %v3055_v54 }
 0x4ad   : > { %v3245_v29 = vand.u32 2147483647, %v6554_v1  ;;  %5075 = vmatmul.msk.f32.gmra.mxu3 %vm1471_vm5, %v2323_v13  ;;  %5123 = vmatmul.msk.f32.gmra.mxu0 %vm993_vm3, %v2782_v16  ;;  %vm3501_vm14 = vcmp.ge.f32.partialorder %v6554_v1, 0.0 }
 0x4af   : > { %v3309_v19 = vsub.f32 0.0, %v3245_v29 }
 0x4b0   : > { %v2627_v56 = vpop.f32.mrf.mxu3 }
 0x4b1   : > { %v5193_v10 = vpop.eup %5192  ;;  %v3374_v36 = vmul.f32 1.442695, %v3309_v19  ;;  %v2628_v41 = vadd.f32 %v6468_v52, %v2627_v56  ;;  %v2326_v19 = vmax.f32 %v2209_v24, 0.0 }
 0x4b2   : > { %v3628_v12 = vadd.f32 1.0, %v5193_v10  ;;  %v3058_v37 = vpop.f32.mrf.mxu0  ;;  %v3564_v3 = vsel %vm3500_vm9, 1.0, %v5193_v10 }
 0x4b3   : > { %5194 = vpow2.f32 %v3374_v36  ;;  %v2783_v47 = vmax.f32 %v2628_v41, 0.0  ;;  %v6563_v22 = vadd.f32 %v6541_v17, %v3058_v37 }
 0x4b4   : > { %5196 = vrcp.f32 %v3628_v12  ;;  %v3703_v18 = vand.u32 2147483648, %v3628_v12  ;;  %v3701_v13 = vand.u32 2147483647, %v3628_v12  ;;  %vm3697_vm8 = vweird.f32 %v3628_v12 }
 0x4b5   : > { %v3246_v53 = vand.u32 2147483647, %v6563_v22  ;;  %5076 = vmatmul.msk.f32.gmra.mxu3 %vm1471_vm5, %v2324_v31  ;;  %5124 = vmatmul.msk.f32.gmra.mxu0 %vm993_vm3, %v2783_v47  ;;  %vm3502_vm6 = vcmp.ge.f32.partialorder %v6563_v22, 0.0 }
 0x4b6   : > { %v3704_v41 = vor.u32 1.1754944e-38, %v3703_v18  ;;  %vm3702_vm11 = vcmp.eq.f32.partialorder %v3701_v13, 8.507059e+37 }
 0x4b7   : > { %v3310_v43 = vsub.f32 0.0, %v3246_v53 }
 0x4b8   : > { %v2630_v59 = vpop.f32.mrf.mxu3 }
 0x4b9   : > { %v6570_v55 = vpop.eup %5194  ;;  %v3376_v62 = vmul.f32 1.442695, %v3310_v43  ;;  %v2631_v0 = vadd.f32 %v6468_v52, %v2630_v59 }
 0x4ba   : > { %v5197_v34 = vpop.eup %5196  ;;  %v6574_v28 = vadd.f32 1.0, %v6570_v55  ;;  %v3061_v32 = vpop.f32.mrf.mxu0 }
 0x4bb   : > { %v3693_v42 = vmul.f32 %v5197_v34, %v3628_v12  ;;  %5198 = vpow2.f32 %v3376_v62  ;;  %v2784_v14 = vmax.f32 %v2631_v0, 0.0  ;;  %v6580_v26 = vadd.f32 %v6541_v17, %v3061_v32 }
 0x4bc   : > { %5200 = vrcp.f32 %v6574_v28  ;;  %vm3698_vm7 = vweird.f32 %v5197_v34  ;;  %v2212_v0 = vadd.f32 %v6382_v27, %v6319_v60  ;;  %vm3711_vm13 = vweird.f32 %v6574_v28 }
 0x4bd   : > { %v3694_v11 = vsub.f32 1.0, %v3693_v42  ;;  %5077 = vmatmul.msk.f32.gmra.mxu3 %vm1471_vm5, %v2325_v4  ;;  %5125 = vmatmul.msk.f32.gmra.mxu0 %vm993_vm3, %v2784_v14  ;;  %v3247_v16 = vand.u32 2147483647, %v6580_v26  ;;  %vm3699_vm10 = vmor %vm3697_vm8, %vm3698_vm7  ;;  %v3715_v42 = vand.u32 2147483647, %v6574_v28 }
 0x4bf   : > { %v3695_v54 = vmul.f32 %v5197_v34, %v3694_v11  ;;  %v3311_v56 = vsub.f32 0.0, %v3247_v16  ;;  %vm3716_vm1 = vcmp.eq.f32.partialorder %v3715_v42, 8.507059e+37 }
 0x4c0   : > { %v2633_v29 = vpop.f32.mrf.mxu3 }
 0x4c1   : > { %v6585_v6 = vpop.eup %5198  ;;  %v3696_v23 = vadd.f32 %v5197_v34, %v3695_v54  ;;  %v2634_v31 = vadd.f32 %v6468_v52, %v2633_v29  ;;  %v3378_v43 = vmul.f32 1.442695, %v3311_v56  ;;  %v2327_v54 = vmax.f32 %v2212_v0, 0.0 }
 0x4c2   : > { %v5201_v36 = vpop.eup %5200  ;;  %v6589_v37 = vadd.f32 1.0, %v6585_v6  ;;  %v3064_v47 = vpop.f32.mrf.mxu0 }
 0x4c3   : > { %v3700_v53 = vsel %vm3699_vm10, %v5197_v34, %v3696_v23  ;;  %v3707_v35 = vmul.f32 %v5201_v36, %v6574_v28  ;;  %v3717_v34 = vand.u32 2147483648, %v6574_v28  ;;  %v2785_v32 = vmax.f32 %v2634_v31, 0.0 }
 0x4c4   : > { %v3705_v12 = vsel %vm3702_vm11, %v3704_v41, %v3700_v53  ;;  %5202 = vrcp.f32 %v6589_v37  ;;  %v6606_v4 = vadd.f32 %v6541_v17, %v3064_v47  ;;  %vm3712_vm12 = vweird.f32 %v5201_v36 }
 0x4c5   : > { %v4588_v59 = vmul.f32 %v3705_v12, %v3564_v3  ;;  %v3708_v62 = vsub.f32 1.0, %v3707_v35  ;;  %5204 = vpow2.f32 %v3378_v43  ;;  %5078 = vmatmul.msk.f32.gmra.mxu3 %vm1471_vm5, %v2326_v19  ;;  %5126 = vmatmul.msk.f32.gmra.mxu0 %vm993_vm3, %v2785_v32  ;;  %vm3713_vm15 = vmor %vm3711_vm13, %vm3712_vm12  ;;  %v3718_v13 = vor.u32 1.1754944e-38, %v3717_v34 }
 0x4c6   : > { %v3248_v14 = vand.u32 2147483647, %v6606_v4  ;;  %v3565_v23 = vsel %vm3501_vm14, 1.0, %v6570_v55  ;;  %v2215_v55 = vadd.f32 %v6382_v27, %v6328_v40  ;;  %v3731_v3 = vand.u32 2147483648, %v6589_v37 }
 0x4c7   : > { %4652 = vst.msk [vmem:[%s6598_s20] sm:$0xff] %vm516_vm0, %v4588_v59  ;;  %v3709_v10 = vmul.f32 %v5201_v36, %v3708_v62  ;;  %vm3725_vm4 = vweird.f32 %v6589_v37  ;;  %vm3503_vm11 = vcmp.ge.f32.partialorder %v6580_v26, 0.0 }
 0x4c8   : > { %v2636_v24 = vpop.f32.mrf.mxu3  ;;  %v3312_v16 = vsub.f32 0.0, %v3248_v14  ;;  %v2328_v32 = vmax.f32 %v2215_v55, 0.0 }
 0x4c9   : > { %v3710_v11 = vadd.f32 %v5201_v36, %v3709_v10  ;;  %v2637_v60 = vadd.f32 %v6468_v52, %v2636_v24  ;;  %v3732_v10 = vor.u32 1.1754944e-38, %v3731_v3 }
 0x4ca   : > { %v5203_v18 = vpop.eup %5202  ;;  %v3067_v29 = vpop.f32.mrf.mxu0  ;;  %v3380_v47 = vmul.f32 1.442695, %v3312_v16 }
 0x4cb   : > { %v6616_v19 = vpop.eup %5204  ;;  %v3714_v56 = vsel %vm3713_vm15, %v5201_v36, %v3710_v11  ;;  %v3721_v41 = vmul.f32 %v5203_v18, %v6589_v37  ;;  %v2786_v53 = vmax.f32 %v2637_v60, 0.0  ;;  %v6624_v43 = vadd.f32 %v6541_v17, %v3067_v29 }
 0x4cc   : > { %v3719_v28 = vsel %vm3716_vm1, %v3718_v13, %v3714_v56  ;;  %v6621_v31 = vadd.f32 1.0, %v6616_v19  ;;  %v3729_v36 = vand.u32 2147483647, %v6589_v37  ;;  %vm3726_vm2 = vweird.f32 %v5203_v18 }
 0x4cd   : > { %v4589_v1 = vmul.f32 %v3719_v28, %v3565_v23  ;;  %v3722_v35 = vsub.f32 1.0, %v3721_v41  ;;  %5079 = vmatmul.msk.f32.gmra.mxu3 %vm1471_vm5, %v2327_v54  ;;  %v3249_v59 = vand.u32 2147483647, %v6624_v43  ;;  %5127 = vmatmul.msk.f32.gmra.mxu0 %vm993_vm3, %v2786_v53  ;;  %vm3727_vm7 = vmor %vm3725_vm4, %vm3726_vm2  ;;  %v3566_v54 = vsel %vm3502_vm6, 1.0, %v6585_v6 }
 0x4ce   : > { %5206 = vrcp.f32 %v6621_v31  ;;  %vm3730_vm8 = vcmp.eq.f32.partialorder %v3729_v36, 8.507059e+37  ;;  %v3743_v41 = vand.u32 2147483647, %v6621_v31  ;;  %v3745_v28 = vand.u32 2147483648, %v6621_v31 }
 0x4cf   : > { %4653 = vst.msk [vmem:[%s6598_s20 + $0x8] sm:$0xff] %vm516_vm0, %v4589_v1  ;;  %v3723_v12 = vmul.f32 %v5203_v18, %v3722_v35  ;;  %5208 = vpow2.f32 %v3380_v47  ;;  %v3313_v40 = vsub.f32 0.0, %v3249_v59  ;;  %vm3739_vm10 = vweird.f32 %v6621_v31 }
 0x4d0   : > { %v2639_v62 = vpop.f32.mrf.mxu3  ;;  %vm3744_vm13 = vcmp.eq.f32.partialorder %v3743_v41, 8.507059e+37  ;;  %v3567_v26 = vsel %vm3503_vm11, 1.0, %v6616_v19  ;;  %vm3504_vm15 = vcmp.ge.f32.partialorder %v6606_v4, 0.0 }
 0x4d1   : > { %v3724_v0 = vadd.f32 %v5203_v18, %v3723_v12  ;;  %v2640_v34 = vadd.f32 %v6468_v52, %v2639_v62  ;;  %v3382_v24 = vmul.f32 1.442695, %v3313_v40  ;;  %v3746_v62 = vor.u32 1.1754944e-38, %v3745_v28 }
 0x4d2   : > { %v3070_v42 = vpop.f32.mrf.mxu0 }
 0x4d3   : > { %v3728_v14 = vsel %vm3727_vm7, %v5203_v18, %v3724_v0  ;;  %v6640_v11 = vadd.f32 %v6541_v17, %v3070_v42  ;;  %v2787_v13 = vmax.f32 %v2640_v34, 0.0  ;;  %5210 = vpow2.f32 %v3382_v24 }
 0x4d4   : > { %v5207_v60 = vpop.eup %5206  ;;  %v3733_v37 = vsel %vm3730_vm8, %v3732_v10, %v3728_v14  ;;  %v2218_v18 = vadd.f32 %v6382_v27, %v6335_v51  ;;  %v2221_v10 = vadd.f32 %v6382_v27, %v6342_v49  ;;  %vm3505_vm8 = vcmp.ge.f32.partialorder %v6624_v43, 0.0 }
 0x4d5   : > { %v6643_v16 = vpop.eup %5208  ;;  %v4590_v29 = vmul.f32 %v3733_v37, %v3566_v54  ;;  %v3735_v22 = vmul.f32 %v5207_v60, %v6621_v31  ;;  %5080 = vmatmul.msk.f32.gmra.mxu3 %vm1471_vm5, %v2328_v32  ;;  %v3250_v56 = vand.u32 2147483647, %v6640_v11  ;;  %5128 = vmatmul.msk.f32.gmra.mxu0 %vm993_vm3, %v2787_v13  ;;  %vm3740_vm9 = vweird.f32 %v5207_v60 }
 0x4d6   : > { %v6650_v23 = vadd.f32 1.0, %v6643_v16  ;;  %v2329_v35 = vmax.f32 %v2218_v18, 0.0  ;;  %vm3741_vm12 = vmor %vm3739_vm10, %vm3740_vm9 }
 0x4d7   : > { %4654 = vst.msk [vmem:[%s6598_s20 + $0x10] sm:$0xff] %vm516_vm0, %v4590_v29  ;;  %v3736_v6 = vsub.f32 1.0, %v3735_v22  ;;  %v3314_v51 = vsub.f32 0.0, %v3250_v56  ;;  %v2330_v29 = vmax.f32 %v2221_v10, 0.0 }
 0x4d8   : > { %5212 = vrcp.f32 %v6650_v23  ;;  %v2642_v47 = vpop.f32.mrf.mxu3  ;;  %v3759_v49 = vand.u32 2147483648, %v6650_v23  ;;  %vm3753_vm1 = vweird.f32 %v6650_v23 }
 0x4d9   : > { %v3737_v53 = vmul.f32 %v5207_v60, %v3736_v6  ;;  %v2643_v1 = vadd.f32 %v6468_v52, %v2642_v47  ;;  %v6660_v36 = vpop.eup %5210  ;;  %v3384_v12 = vmul.f32 1.442695, %v3314_v51  ;;  %v3757_v6 = vand.u32 2147483647, %v6650_v23 }
 0x4da   : > { %v3073_v55 = vpop.f32.mrf.mxu0  ;;  %v6668_v0 = vadd.f32 1.0, %v6660_v36  ;;  %v3760_v4 = vor.u32 1.1754944e-38, %v3759_v49  ;;  %v3569_v43 = vsel %vm3505_vm8, 1.0, %v6660_v36 }
 0x4db   : > { %v3738_v3 = vadd.f32 %v5207_v60, %v3737_v53  ;;  %v6664_v59 = vadd.f32 %v6541_v17, %v3073_v55  ;;  %v2788_v40 = vmax.f32 %v2643_v1, 0.0  ;;  %5214 = vpow2.f32 %v3384_v12 }
 0x4dc   : > { %5216 = vrcp.f32 %v6668_v0  ;;  %v2224_v55 = vadd.f32 %v6382_v27, %v6349_v8  ;;  %vm3758_vm4 = vcmp.eq.f32.partialorder %v3757_v6, 8.507059e+37  ;;  %vm3767_vm7 = vweird.f32 %v6668_v0 }
 0x4dd   : > { %v3742_v34 = vsel %vm3741_vm12, %v5207_v60, %v3738_v3  ;;  %v3251_v32 = vand.u32 2147483647, %v6664_v59  ;;  %5081 = vmatmul.msk.f32.gmra.mxu3 %vm1471_vm5, %v2329_v35  ;;  %5129 = vmatmul.msk.f32.gmra.mxu0 %vm993_vm3, %v2788_v40  ;;  %v3568_v3 = vsel %vm3504_vm15, 1.0, %v6643_v16 }
 0x4de   : > { %v5213_v31 = vpop.eup %5212  ;;  %v3747_v42 = vsel %vm3744_vm13, %v3746_v62, %v3742_v34  ;;  %v3771_v34 = vand.u32 2147483647, %v6668_v0 }
 0x4df   : > { %v4591_v14 = vmul.f32 %v3747_v42, %v3567_v26  ;;  %v3749_v24 = vmul.f32 %v5213_v31, %v6650_v23  ;;  %v3315_v54 = vsub.f32 0.0, %v3251_v32  ;;  %vm3754_vm14 = vweird.f32 %v5213_v31 }
 0x4e0   : > { %v2645_v60 = vpop.f32.mrf.mxu3  ;;  %vm3755_vm2 = vmor %vm3753_vm1, %vm3754_vm14  ;;  %v3773_v32 = vand.u32 2147483648, %v6668_v0  ;;  %vm3772_vm10 = vcmp.eq.f32.partialorder %v3771_v34, 8.507059e+37  ;;  %vm3506_vm14 = vcmp.ge.f32.partialorder %v6640_v11, 0.0 }
 0x4e1   : > { %4655 = vst.msk [vmem:[%s6598_s20 + $0x18] sm:$0xff] %vm516_vm0, %v4591_v14  ;;  %v3750_v37 = vsub.f32 1.0, %v3749_v24  ;;  %v2646_v13 = vadd.f32 %v6468_v52, %v2645_v60  ;;  %v3386_v22 = vmul.f32 1.442695, %v3315_v54  ;;  %v6682_v18 = vpop.eup %5214 }
 0x4e2   : > { %v3076_v19 = vpop.f32.mrf.mxu0  ;;  %v5217_v28 = vpop.eup %5216  ;;  %v6690_v47 = vadd.f32 1.0, %v6682_v18 }
 0x4e3   : > { %v3751_v56 = vmul.f32 %v5213_v31, %v3750_v37  ;;  %v6686_v41 = vadd.f32 %v6541_v17, %v3076_v19  ;;  %5218 = vpow2.f32 %v3386_v22  ;;  %v2789_v53 = vmax.f32 %v2646_v13, 0.0 }
 0x4e4   : > { %v3763_v1 = vmul.f32 %v5217_v28, %v6668_v0  ;;  %5220 = vrcp.f32 %v6690_v47  ;;  %vm3768_vm6 = vweird.f32 %v5217_v28  ;;  %v3774_v13 = vor.u32 1.1754944e-38, %v3773_v32 }
 0x4e5   : > { %v3752_v51 = vadd.f32 %v5213_v31, %v3751_v56  ;;  %v3252_v35 = vand.u32 2147483647, %v6686_v41  ;;  %5082 = vmatmul.msk.f32.gmra.mxu3 %vm1471_vm5, %v2330_v29  ;;  %5130 = vmatmul.msk.f32.gmra.mxu0 %vm993_vm3, %v2789_v53  ;;  %vm3769_vm9 = vmor %vm3767_vm7, %vm3768_vm6  ;;  %v2227_v0 = vadd.f32 %v6382_v27, %v6359_v58  ;;  %vm3781_vm12 = vweird.f32 %v6690_v47 }
 0x4e6   : > { %v3764_v23 = vsub.f32 1.0, %v3763_v1  ;;  %v3787_v1 = vand.u32 2147483648, %v6690_v47 }
 0x4e7   : > { %v3756_v12 = vsel %vm3755_vm2, %v5213_v31, %v3752_v51  ;;  %v3316_v62 = vsub.f32 0.0, %v3252_v35  ;;  %v2331_v31 = vmax.f32 %v2224_v55, 0.0  ;;  %vm3507_vm2 = vcmp.ge.f32.partialorder %v6664_v59, 0.0 }
 0x4e8   : > { %v3761_v40 = vsel %vm3758_vm4, %v3760_v4, %v3756_v12  ;;  %v2648_v8 = vpop.f32.mrf.mxu3  ;;  %v3765_v10 = vmul.f32 %v5217_v28, %v3764_v23  ;;  %v2332_v4 = vmax.f32 %v2227_v0, 0.0  ;;  %v2230_v12 = vadd.f32 %v6382_v27, %v6366_v50 }
 0x4e9   : > { %v4592_v16 = vmul.f32 %v3761_v40, %v3568_v3  ;;  %v3388_v26 = vmul.f32 1.442695, %v3316_v62  ;;  %v2649_v42 = vadd.f32 %v6468_v52, %v2648_v8  ;;  %v6705_v14 = vpop.eup %5218  ;;  %v3570_v27 = vsel %vm3506_vm14, 1.0, %v6682_v18 }
 0x4ea   : > { %v3079_v24 = vpop.f32.mrf.mxu0  ;;  %v3766_v54 = vadd.f32 %v5217_v28, %v3765_v10  ;;  %v6711_v60 = vadd.f32 1.0, %v6705_v14  ;;  %v5221_v37 = vpop.eup %5220 }
 0x4eb   : > { %4656 = vst.msk [vmem:[%s6598_s20 + $0x20] sm:$0xff] %vm516_vm0, %v4592_v16  ;;  %5222 = vpow2.f32 %v3388_v26  ;;  %v2790_v29 = vmax.f32 %v2649_v42, 0.0  ;;  %v6716_v49 = vadd.f32 %v6541_v17, %v3079_v24  ;;  %v3777_v19 = vmul.f32 %v5221_v37, %v6690_v47 }
 0x4ec   : > { %v3770_v22 = vsel %vm3769_vm9, %v5217_v28, %v3766_v54  ;;  %5224 = vrcp.f32 %v6711_v60  ;;  %v3785_v28 = vand.u32 2147483647, %v6690_v47  ;;  %vm3782_vm11 = vweird.f32 %v5221_v37 }
 0x4ed   : > { %5083 = vmatmul.msk.f32.gmra.mxu3 %vm1471_vm5, %v2331_v31  ;;  %v3775_v56 = vsel %vm3772_vm10, %v3774_v13, %v3770_v22  ;;  %v3778_v53 = vsub.f32 1.0, %v3777_v19  ;;  %v3253_v51 = vand.u32 2147483647, %v6716_v49  ;;  %5131 = vmatmul.msk.f32.gmra.mxu0 %vm993_vm3, %v2790_v29  ;;  %vm3783_vm13 = vmor %vm3781_vm12, %vm3782_vm11  ;;  %v3788_v16 = vor.u32 1.1754944e-38, %v3787_v1 }
 0x4ee   : > { %v4593_v6 = vmul.f32 %v3775_v56, %v3569_v43  ;;  %vm3786_vm15 = vcmp.eq.f32.partialorder %v3785_v28, 8.507059e+37  ;;  %v3799_v54 = vand.u32 2147483647, %v6711_v60  ;;  %v3801_v13 = vand.u32 2147483648, %v6711_v60 }
 0x4ef   : > { %v3779_v3 = vmul.f32 %v5221_v37, %v3778_v53  ;;  %v3317_v58 = vsub.f32 0.0, %v3253_v51  ;;  %v2333_v22 = vmax.f32 %v2230_v12, 0.0  ;;  %vm3795_vm4 = vweird.f32 %v6711_v60 }
 0x4f0   : > { %v2651_v35 = vpop.f32.mrf.mxu3  ;;  %4657 = vst.msk [vmem:[%s6598_s20 + $0x28] sm:$0xff] %vm516_vm0, %v4593_v6  ;;  %vm3800_vm7 = vcmp.eq.f32.partialorder %v3799_v54, 8.507059e+37  ;;  %v3802_v53 = vor.u32 1.1754944e-38, %v3801_v13  ;;  %vm3508_vm10 = vcmp.ge.f32.partialorder %v6686_v41, 0.0 }
 0x4f1   : > { %v6728_v55 = vpop.eup %5222  ;;  %v2652_v36 = vadd.f32 %v6468_v52, %v2651_v35  ;;  %v3780_v34 = vadd.f32 %v5221_v37, %v3779_v3  ;;  %v3390_v32 = vmul.f32 1.442695, %v3317_v58 }
 0x4f2   : > { %v6736_v23 = vadd.f32 1.0, %v6728_v55  ;;  %v3082_v62 = vpop.f32.mrf.mxu0  ;;  %v5225_v40 = vpop.eup %5224 }
 0x4f3   : > { %v6740_v8 = vadd.f32 %v6541_v17, %v3082_v62  ;;  %v3791_v10 = vmul.f32 %v5225_v40, %v6711_v60  ;;  %v2791_v26 = vmax.f32 %v2652_v36, 0.0  ;;  %v3784_v50 = vsel %vm3783_vm13, %v5221_v37, %v3780_v34 }
 0x4f4   : > { %5226 = vrcp.f32 %v6736_v23  ;;  %v3789_v47 = vsel %vm3786_vm15, %v3788_v16, %v3784_v50  ;;  %vm3796_vm1 = vweird.f32 %v5225_v40  ;;  %v3571_v60 = vsel %vm3507_vm2, 1.0, %v6705_v14 }
 0x4f5   : > { %5228 = vpow2.f32 %v3390_v32  ;;  %5084 = vmatmul.msk.f32.gmra.mxu3 %vm1471_vm5, %v2332_v4  ;;  %v3792_v42 = vsub.f32 1.0, %v3791_v10  ;;  %v3254_v31 = vand.u32 2147483647, %v6740_v8  ;;  %v4594_v24 = vmul.f32 %v3789_v47, %v3570_v27  ;;  %5132 = vmatmul.msk.f32.gmra.mxu0 %vm993_vm3, %v2791_v26  ;;  %vm3797_vm6 = vmor %vm3795_vm4, %vm3796_vm1  ;;  %v6771_v4 = vld [vmem:[%s7818_s8] ss:$0 sm:$0xff] }
 0x4f6   : > { %v2233_v12 = vadd.f32 %v6771_v4, %v6373_v15  ;;  %v3813_v34 = vand.u32 2147483647, %v6736_v23  ;;  %vm3809_vm9 = vweird.f32 %v6736_v23  ;;  %vm3509_vm1 = vcmp.ge.f32.partialorder %v6716_v49, 0.0 }
 0x4f7   : > { %v3793_v29 = vmul.f32 %v5225_v40, %v3792_v42  ;;  %v3318_v11 = vsub.f32 0.0, %v3254_v31  ;;  %4658 = vst.msk [vmem:[%s6598_s20 + $0x30] sm:$0xff] %vm516_vm0, %v4594_v24 }
 0x4f8   : > { %v2654_v37 = vpop.f32.mrf.mxu3  ;;  %v2334_v27 = vmax.f32 %v2233_v12, 0.0  ;;  %vm3814_vm12 = vcmp.eq.f32.partialorder %v3813_v34, 8.507059e+37 }
 0x4f9   : > { %v2655_v18 = vadd.f32 %v6468_v52, %v2654_v37  ;;  %v3794_v0 = vadd.f32 %v5225_v40, %v3793_v29  ;;  %v3392_v43 = vmul.f32 1.442695, %v3318_v11 }
 0x4fa   : > { %v5227_v19 = vpop.eup %5226  ;;  %v3085_v56 = vpop.f32.mrf.mxu0 }
 0x4fb   : > { %v6756_v6 = vpop.eup %5228  ;;  %v3805_v51 = vmul.f32 %v5227_v19, %v6736_v23  ;;  %v6760_v28 = vadd.f32 %v6541_v17, %v3085_v56  ;;  %v3798_v1 = vsel %vm3797_vm6, %v5225_v40, %v3794_v0  ;;  %5230 = vpow2.f32 %v3392_v43 }
 0x4fc   : > { %v6763_v35 = vadd.f32 1.0, %v6756_v6  ;;  %v2792_v59 = vmax.f32 %v2655_v18, 0.0  ;;  %v3803_v3 = vsel %vm3800_vm7, %v3802_v53, %v3798_v1  ;;  %v3815_v40 = vand.u32 2147483648, %v6736_v23 }
 0x4fd   : > { %v3806_v58 = vsub.f32 1.0, %v3805_v51  ;;  %v3255_v36 = vand.u32 2147483647, %v6760_v28  ;;  %5085 = vmatmul.msk.f32.gmra.mxu3 %vm1471_vm5, %v2333_v22  ;;  %v4595_v62 = vmul.f32 %v3803_v3, %v3571_v60  ;;  %vm3810_vm8 = vweird.f32 %v5227_v19 }
 0x4fe   : > { %5232 = vrcp.f32 %v6763_v35  ;;  %5133 = vmatmul.msk.f32.gmra.mxu0 %vm993_vm3, %v2792_v59  ;;  %vm3811_vm11 = vmor %vm3809_vm9, %vm3810_vm8  ;;  %v3816_v47 = vor.u32 1.1754944e-38, %v3815_v40  ;;  %v3572_v23 = vsel %vm3508_vm10, 1.0, %v6728_v55  ;;  %v2236_v22 = vadd.f32 %v6771_v4, %v6377_v57 }
 0x4ff   : > { %v3807_v14 = vmul.f32 %v5227_v19, %v3806_v58  ;;  %v3319_v32 = vsub.f32 0.0, %v3255_v36  ;;  %4659 = vst.msk [vmem:[%s6598_s20 + $0x38] sm:$0xff] %vm516_vm0, %v4595_v62  ;;  %v3827_v51 = vand.u32 2147483647, %v6763_v35  ;;  %v2239_v36 = vadd.f32 %v6771_v4, %v6388_v44 }
 0x500   : > { %v2657_v16 = vpop.f32.mrf.mxu3  ;;  %v2335_v57 = vmax.f32 %v2236_v22, 0.0  ;;  %vm3823_vm14 = vweird.f32 %v6763_v35  ;;  %v3573_v44 = vsel %vm3509_vm1, 1.0, %v6756_v6  ;;  %v6830_v6 = vld [vmem:[%s7820_s10] ss:$0 sm:$0xff]  ;;  %vm3510_vm6 = vcmp.ge.f32.partialorder %v6740_v8, 0.0 }
 0x501   : > { %v3808_v10 = vadd.f32 %v5227_v19, %v3807_v14  ;;  %v3394_v26 = vmul.f32 1.442695, %v3319_v32  ;;  %v2658_v15 = vadd.f32 %v6468_v52, %v2657_v16  ;;  %v6783_v50 = vpop.eup %5230  ;;  %vm3828_vm2 = vcmp.eq.f32.partialorder %v3827_v51, 8.507059e+37 }
 0x502   : > { %v3088_v42 = vpop.f32.mrf.mxu0  ;;  %v6787_v24 = vadd.f32 1.0, %v6783_v50  ;;  %v2242_v51 = vadd.f32 %v6771_v4, %v6396_v30 }
 0x503   : > { %v3812_v31 = vsel %vm3811_vm11, %v5227_v19, %v3808_v10  ;;  %5234 = vpow2.f32 %v3394_v26  ;;  %v2793_v29 = vmax.f32 %v2658_v15, 0.0  ;;  %v6791_v11 = vadd.f32 %v6541_v17, %v3088_v42 }
 0x504   : > { %v5233_v54 = vpop.eup %5232  ;;  %v3817_v13 = vsel %vm3814_vm12, %v3816_v47, %v3812_v31  ;;  %5236 = vrcp.f32 %v6787_v24  ;;  %v3829_v19 = vand.u32 2147483648, %v6763_v35  ;;  %v3841_v26 = vand.u32 2147483647, %v6787_v24 }
 0x505   : > { %v4596_v37 = vmul.f32 %v3817_v13, %v3572_v23  ;;  %v3819_v41 = vmul.f32 %v5233_v54, %v6763_v35  ;;  %5086 = vmatmul.msk.f32.gmra.mxu3 %vm1471_vm5, %v2334_v27  ;;  %v3256_v18 = vand.u32 2147483647, %v6791_v11  ;;  %vm3824_vm13 = vweird.f32 %v5233_v54 }
 0x506   : > { %5134 = vmatmul.msk.f32.gmra.mxu0 %vm993_vm3, %v2793_v29  ;;  %vm3825_vm15 = vmor %vm3823_vm14, %vm3824_vm13  ;;  %v3830_v40 = vor.u32 1.1754944e-38, %v3829_v19  ;;  %v3843_v15 = vand.u32 2147483648, %v6787_v24  ;;  %v2336_v42 = vmax.f32 %v2239_v36, 0.0  ;;  %vm3837_vm7 = vweird.f32 %v6787_v24 }
 0x507   : > { %4660 = vst.msk [vmem:[%s6598_s20 + $0x40] sm:$0xff] %vm516_vm0, %v4596_v37  ;;  %v3820_v55 = vsub.f32 1.0, %v3819_v41  ;;  %v3320_v0 = vsub.f32 0.0, %v3256_v18  ;;  %vm3842_vm9 = vcmp.eq.f32.partialorder %v3841_v26, 8.507059e+37  ;;  %vm3511_vm12 = vcmp.ge.f32.partialorder %v6760_v28, 0.0 }
 0x508   : > { %v2660_v43 = vpop.f32.mrf.mxu3  ;;  %v3844_v41 = vor.u32 1.1754944e-38, %v3843_v15 }
 0x509   : > { %v6803_v56 = vpop.eup %5234  ;;  %v3821_v53 = vmul.f32 %v5233_v54, %v3820_v55  ;;  %v2661_v1 = vadd.f32 %v6468_v52, %v2660_v43  ;;  %v3396_v60 = vmul.f32 1.442695, %v3320_v0 }
 0x50a   : > { %v6808_v59 = vadd.f32 1.0, %v6803_v56  ;;  %v3091_v3 = vpop.f32.mrf.mxu0  ;;  %v5237_v58 = vpop.eup %5236 }
 0x50b   : > { %v3822_v12 = vadd.f32 %v5233_v54, %v3821_v53  ;;  %v6814_v62 = vadd.f32 %v6541_v17, %v3091_v3  ;;  %v3833_v52 = vmul.f32 %v5237_v58, %v6787_v24  ;;  %v2794_v14 = vmax.f32 %v2661_v1, 0.0 }
 0x50c   : > { %5238 = vrcp.f32 %v6808_v59  ;;  %vm3838_vm4 = vweird.f32 %v5237_v58  ;;  %v3574_v24 = vsel %vm3510_vm6, 1.0, %v6783_v50  ;;  %v3855_v3 = vand.u32 2147483647, %v6808_v59 }
 0x50d   : > { %v3826_v34 = vsel %vm3825_vm15, %v5233_v54, %v3822_v12  ;;  %5240 = vpow2.f32 %v3396_v60  ;;  %5087 = vmatmul.msk.f32.gmra.mxu3 %vm1471_vm5, %v2335_v57  ;;  %v3834_v32 = vsub.f32 1.0, %v3833_v52  ;;  %v3257_v16 = vand.u32 2147483647, %v6814_v62  ;;  %vm3839_vm8 = vmor %vm3837_vm7, %vm3838_vm4 }
 0x50e   : > { %v3831_v35 = vsel %vm3828_vm2, %v3830_v40, %v3826_v34  ;;  %5135 = vmatmul.msk.f32.gmra.mxu0 %vm993_vm3, %v2794_v14  ;;  %v3857_v57 = vand.u32 2147483648, %v6808_v59  ;;  %vm3851_vm11 = vweird.f32 %v6808_v59  ;;  %v2337_v52 = vmax.f32 %v2242_v51, 0.0 }
 0x50f   : > { %v4597_v10 = vmul.f32 %v3831_v35, %v3573_v44  ;;  %v3835_v27 = vmul.f32 %v5237_v58, %v3834_v32  ;;  %v3321_v49 = vsub.f32 0.0, %v3257_v16  ;;  %vm3856_vm14 = vcmp.eq.f32.partialorder %v3855_v3, 8.507059e+37 }
 0x510   : > { %v2663_v47 = vpop.f32.mrf.mxu3  ;;  %v3858_v14 = vor.u32 1.1754944e-38, %v3857_v57  ;;  %vm3512_vm4 = vcmp.ge.f32.partialorder %v6791_v11, 0.0 }
 0x511   : > { %4661 = vst.msk [vmem:[%s6598_s20 + $0x48] sm:$0xff] %vm516_vm0, %v4597_v10  ;;  %v2664_v31 = vadd.f32 %v6830_v6, %v2663_v47  ;;  %v3836_v23 = vadd.f32 %v5237_v58, %v3835_v27  ;;  %v3398_v13 = vmul.f32 1.442695, %v3321_v49  ;;  %v2245_v27 = vadd.f32 %v6771_v4, %v6400_v2 }
 0x512   : > { %v5239_v54 = vpop.eup %5238  ;;  %v3094_v29 = vpop.f32.mrf.mxu0 }
 0x513   : > { %v6835_v37 = vpop.eup %5240  ;;  %v3847_v22 = vmul.f32 %v5239_v54, %v6808_v59  ;;  %v6840_v18 = vadd.f32 %v6541_v17, %v3094_v29  ;;  %v3840_v55 = vsel %vm3839_vm8, %v5237_v58, %v3836_v23  ;;  %5242 = vpow2.f32 %v3398_v13 }
 0x514   : > { %v6843_v19 = vadd.f32 1.0, %v6835_v37  ;;  %v2795_v8 = vmax.f32 %v2664_v31, 0.0  ;;  %v3845_v0 = vsel %vm3842_vm9, %v3844_v41, %v3840_v55  ;;  %vm3852_vm10 = vweird.f32 %v5239_v54 }
 0x515   : > { %v3848_v43 = vsub.f32 1.0, %v3847_v22  ;;  %v3258_v53 = vand.u32 2147483647, %v6840_v18  ;;  %5088 = vmatmul.msk.f32.gmra.mxu3 %vm1471_vm5, %v2336_v42  ;;  %v4598_v1 = vmul.f32 %v3845_v0, %v3574_v24  ;;  %vm3853_vm13 = vmor %vm3851_vm11, %vm3852_vm10  ;;  %v3575_v59 = vsel %vm3511_vm12, 1.0, %v6803_v56 }
 0x516   : > { %5244 = vrcp.f32 %v6843_v19  ;;  %5136 = vmatmul.msk.f32.gmra.mxu0 %vm993_vm3, %v2795_v8  ;;  %v3871_v47 = vand.u32 2147483648, %v6843_v19  ;;  %v3869_v13 = vand.u32 2147483647, %v6843_v19  ;;  %v2338_v2 = vmax.f32 %v2245_v27, 0.0 }
 0x517   : > { %v3849_v60 = vmul.f32 %v5239_v54, %v3848_v43  ;;  %v3322_v58 = vsub.f32 0.0, %v3258_v53  ;;  %4662 = vst.msk [vmem:[%s6598_s20 + $0x50] sm:$0xff] %vm516_vm0, %v4598_v1  ;;  %v2248_v24 = vadd.f32 %v6771_v4, %v6404_v9  ;;  %vm3865_vm1 = vweird.f32 %v6843_v19 }
 0x518   : > { %v2666_v50 = vpop.f32.mrf.mxu3  ;;  %v3872_v53 = vor.u32 1.1754944e-38, %v3871_v47  ;;  %vm3870_vm6 = vcmp.eq.f32.partialorder %v3869_v13, 8.507059e+37  ;;  %v3576_v9 = vsel %vm3512_vm4, 1.0, %v6835_v37  ;;  %vm3513_vm8 = vcmp.ge.f32.partialorder %v6814_v62, 0.0 }
 0x519   : > { %v3850_v36 = vadd.f32 %v5239_v54, %v3849_v60  ;;  %v3400_v12 = vmul.f32 1.442695, %v3322_v58  ;;  %v2667_v30 = vadd.f32 %v6830_v6, %v2666_v50  ;;  %v6858_v40 = vpop.eup %5242 }
 0x51a   : > { %v3097_v34 = vpop.f32.mrf.mxu0  ;;  %v6862_v35 = vadd.f32 1.0, %v6858_v40 }
 0x51b   : > { %v3854_v44 = vsel %vm3853_vm13, %v5239_v54, %v3850_v36  ;;  %5246 = vpow2.f32 %v3400_v12  ;;  %v2796_v10 = vmax.f32 %v2667_v30, 0.0  ;;  %v6866_v26 = vadd.f32 %v6541_v17, %v3097_v34 }
 0x51c   : > { %v5245_v32 = vpop.eup %5244  ;;  %v3859_v16 = vsel %vm3856_vm14, %v3858_v14, %v3854_v44  ;;  %5248 = vrcp.f32 %v6862_v35  ;;  %v3883_v58 = vand.u32 2147483647, %v6862_v35  ;;  %v3885_v50 = vand.u32 2147483648, %v6862_v35 }
 0x51d   : > { %v4599_v15 = vmul.f32 %v3859_v16, %v3575_v59  ;;  %v3861_v28 = vmul.f32 %v5245_v32, %v6843_v19  ;;  %5089 = vmatmul.msk.f32.gmra.mxu3 %vm1471_vm5, %v2337_v52  ;;  %v3259_v49 = vand.u32 2147483647, %v6866_v26  ;;  %vm3866_vm15 = vweird.f32 %v5245_v32 }
 0x51e   : > { %5137 = vmatmul.msk.f32.gmra.mxu0 %vm993_vm3, %v2796_v10  ;;  %vm3867_vm2 = vmor %vm3865_vm1, %vm3866_vm15  ;;  %v2339_v30 = vmax.f32 %v2248_v24, 0.0  ;;  %vm3879_vm9 = vweird.f32 %v6862_v35  ;;  %vm3884_vm11 = vcmp.eq.f32.partialorder %v3883_v58, 8.507059e+37  ;;  %v3886_v59 = vor.u32 1.1754944e-38, %v3885_v50  ;;  %v6911_v10 = vld [vmem:[%s7822_s12] ss:$0 sm:$0xff] }
 0x51f   : > { %4663 = vst.msk [vmem:[%s6598_s20 + $0x58] sm:$0xff] %vm516_vm0, %v4599_v15  ;;  %v3862_v56 = vsub.f32 1.0, %v3861_v28  ;;  %v3323_v42 = vsub.f32 0.0, %v3259_v49  ;;  %v3577_v49 = vsel %vm3513_vm8, 1.0, %v6858_v40  ;;  %vm3514_vm14 = vcmp.ge.f32.partialorder %v6840_v18, 0.0 }
 0x520   : > { %v2669_v31 = vpop.f32.mrf.mxu3 }
 0x521   : > { %v6878_v54 = vpop.eup %5246  ;;  %v3863_v23 = vmul.f32 %v5245_v32, %v3862_v56  ;;  %v2670_v29 = vadd.f32 %v6830_v6, %v2669_v31  ;;  %v3402_v22 = vmul.f32 1.442695, %v3323_v42  ;;  %v2251_v31 = vadd.f32 %v6771_v4, %v6408_v39 }
 0x522   : > { %v6883_v41 = vadd.f32 1.0, %v6878_v54  ;;  %v3100_v55 = vpop.f32.mrf.mxu0  ;;  %v5249_v8 = vpop.eup %5248 }
 0x523   : > { %v3864_v0 = vadd.f32 %v5245_v32, %v3863_v23  ;;  %v6889_v43 = vadd.f32 %v6541_v17, %v3100_v55  ;;  %v3875_v51 = vmul.f32 %v5249_v8, %v6862_v35  ;;  %v2797_v1 = vmax.f32 %v2670_v29, 0.0 }
 0x524   : > { %5250 = vrcp.f32 %v6883_v41  ;;  %vm3880_vm7 = vweird.f32 %v5249_v8  ;;  %v3899_v13 = vand.u32 2147483648, %v6883_v41  ;;  %vm3893_vm13 = vweird.f32 %v6883_v41 }
 0x525   : > { %v3868_v57 = vsel %vm3867_vm2, %v5245_v32, %v3864_v0  ;;  %5252 = vpow2.f32 %v3402_v22  ;;  %5090 = vmatmul.msk.f32.gmra.mxu3 %vm1471_vm5, %v2338_v2  ;;  %v3876_v17 = vsub.f32 1.0, %v3875_v51  ;;  %v3260_v60 = vand.u32 2147483647, %v6889_v43  ;;  %vm3881_vm10 = vmor %vm3879_vm9, %vm3880_vm7 }
 0x526   : > { %v3873_v19 = vsel %vm3870_vm6, %v3872_v53, %v3868_v57  ;;  %5138 = vmatmul.msk.f32.gmra.mxu0 %vm993_vm3, %v2797_v1  ;;  %v3897_v2 = vand.u32 2147483647, %v6883_v41  ;;  %v2340_v24 = vmax.f32 %v2251_v31, 0.0  ;;  %v3900_v0 = vor.u32 1.1754944e-38, %v3899_v13 }
 0x527   : > { %v4600_v3 = vmul.f32 %v3873_v19, %v3576_v9  ;;  %v3877_v36 = vmul.f32 %v5249_v8, %v3876_v17  ;;  %v3324_v11 = vsub.f32 0.0, %v3260_v60  ;;  %vm3515_vm7 = vcmp.ge.f32.partialorder %v6866_v26, 0.0 }
 0x528   : > { %v2672_v12 = vpop.f32.mrf.mxu3  ;;  %vm3898_vm1 = vcmp.eq.f32.partialorder %v3897_v2, 8.507059e+37 }
 0x529   : > { %4664 = vst.msk [vmem:[%s6598_s20 + $0x60] sm:$0xff] %vm516_vm0, %v4600_v3  ;;  %v2673_v37 = vadd.f32 %v6830_v6, %v2672_v12  ;;  %v3878_v14 = vadd.f32 %v5249_v8, %v3877_v36  ;;  %v3404_v34 = vmul.f32 1.442695, %v3324_v11  ;;  %v2254_v3 = vadd.f32 %v6771_v4, %v6415_v46 }
 0x52a   : > { %v5251_v52 = vpop.eup %5250  ;;  %v3103_v44 = vpop.f32.mrf.mxu0 }
 0x52b   : > { %v6905_v32 = vpop.eup %5252  ;;  %v3889_v16 = vmul.f32 %v5251_v52, %v6883_v41  ;;  %v6914_v15 = vadd.f32 %v6911_v10, %v3103_v44  ;;  %v3882_v28 = vsel %vm3881_vm10, %v5249_v8, %v3878_v14  ;;  %5254 = vpow2.f32 %v3404_v34 }
 0x52c   : > { %v6917_v35 = vadd.f32 1.0, %v6905_v32  ;;  %v2798_v27 = vmax.f32 %v2673_v37, 0.0  ;;  %v3887_v56 = vsel %vm3884_vm11, %v3886_v59, %v3882_v28  ;;  %vm3894_vm12 = vweird.f32 %v5251_v52 }
 0x52d   : > { %v3890_v47 = vsub.f32 1.0, %v3889_v16  ;;  %v3261_v42 = vand.u32 2147483647, %v6914_v15  ;;  %5091 = vmatmul.msk.f32.gmra.mxu3 %vm1471_vm5, %v2339_v30  ;;  %v4601_v23 = vmul.f32 %v3887_v56, %v3577_v49  ;;  %vm3895_vm15 = vmor %vm3893_vm13, %vm3894_vm12  ;;  %v3578_v41 = vsel %vm3514_vm14, 1.0, %v6878_v54 }
 0x52e   : > { %5256 = vrcp.f32 %v6917_v35  ;;  %5139 = vmatmul.msk.f32.gmra.mxu0 %vm993_vm3, %v2798_v27  ;;  %v3913_v50 = vand.u32 2147483648, %v6917_v35  ;;  %v3911_v37 = vand.u32 2147483647, %v6917_v35  ;;  %v2341_v46 = vmax.f32 %v2254_v3, 0.0 }
 0x52f   : > { %v3891_v29 = vmul.f32 %v5251_v52, %v3890_v47  ;;  %v3325_v62 = vsub.f32 0.0, %v3261_v42  ;;  %4665 = vst.msk [vmem:[%s6598_s20 + $0x68] sm:$0xff] %vm516_vm0, %v4601_v23  ;;  %v2257_v16 = vadd.f32 %v6771_v4, %v6419_v61  ;;  %vm3907_vm4 = vweird.f32 %v6917_v35 }
 0x530   : > { %v2675_v40 = vpop.f32.mrf.mxu3  ;;  %v3914_v49 = vor.u32 1.1754944e-38, %v3913_v50  ;;  %vm3912_vm8 = vcmp.eq.f32.partialorder %v3911_v37, 8.507059e+37  ;;  %v3579_v61 = vsel %vm3515_vm7, 1.0, %v6905_v32  ;;  %vm3516_vm11 = vcmp.ge.f32.partialorder %v6889_v43, 0.0 }
 0x531   : > { %v3892_v22 = vadd.f32 %v5251_v52, %v3891_v29  ;;  %v3406_v55 = vmul.f32 1.442695, %v3325_v62  ;;  %v2676_v39 = vadd.f32 %v6830_v6, %v2675_v40  ;;  %v6934_v8 = vpop.eup %5254  ;;  %v2260_v43 = vadd.f32 %v6771_v4, %v6423_v45 }
 0x532   : > { %v3106_v53 = vpop.f32.mrf.mxu0  ;;  %v6938_v1 = vadd.f32 1.0, %v6934_v8 }
 0x533   : > { %v3896_v51 = vsel %vm3895_vm15, %v5251_v52, %v3892_v22  ;;  %5258 = vpow2.f32 %v3406_v55  ;;  %v2799_v19 = vmax.f32 %v2676_v39, 0.0  ;;  %v6942_v17 = vadd.f32 %v6911_v10, %v3106_v53 }
 0x534   : > { %v5257_v57 = vpop.eup %5256  ;;  %v3901_v9 = vsel %vm3898_vm1, %v3900_v0, %v3896_v51  ;;  %5260 = vrcp.f32 %v6938_v1  ;;  %v3925_v29 = vand.u32 2147483647, %v6938_v1  ;;  %v3927_v2 = vand.u32 2147483648, %v6938_v1 }
 0x535   : > { %v4602_v60 = vmul.f32 %v3901_v9, %v3578_v41  ;;  %v3903_v18 = vmul.f32 %v5257_v57, %v6917_v35  ;;  %5092 = vmatmul.msk.f32.gmra.mxu3 %vm1471_vm5, %v2340_v24  ;;  %v3262_v58 = vand.u32 2147483647, %v6942_v17  ;;  %vm3908_vm2 = vweird.f32 %v5257_v57 }
 0x536   : > { %5140 = vmatmul.msk.f32.gmra.mxu0 %vm993_vm3, %v2799_v19  ;;  %vm3909_vm6 = vmor %vm3907_vm4, %vm3908_vm2  ;;  %v2342_v55 = vmax.f32 %v2257_v16, 0.0  ;;  %vm3921_vm10 = vweird.f32 %v6938_v1  ;;  %vm3926_vm13 = vcmp.eq.f32.partialorder %v3925_v29, 8.507059e+37  ;;  %v3928_v53 = vor.u32 1.1754944e-38, %v3927_v2 }
 0x537   : > { %4666 = vst.msk [vmem:[%s6598_s20 + $0x70] sm:$0xff] %vm516_vm0, %v4602_v60  ;;  %v3904_v54 = vsub.f32 1.0, %v3903_v18  ;;  %v3326_v36 = vsub.f32 0.0, %v3262_v58  ;;  %v3580_v19 = vsel %vm3516_vm11, 1.0, %v6934_v8  ;;  %v2343_v37 = vmax.f32 %v2260_v43, 0.0 }
 0x538   : > { %v2678_v11 = vpop.f32.mrf.mxu3  ;;  %vm3517_vm1 = vcmp.ge.f32.partialorder %v6914_v15, 0.0 }
 0x539   : > { %v6954_v12 = vpop.eup %5258  ;;  %v3905_v30 = vmul.f32 %v5257_v57, %v3904_v54  ;;  %v2679_v52 = vadd.f32 %v6830_v6, %v2678_v11  ;;  %v3408_v34 = vmul.f32 1.442695, %v3326_v36 }
 0x53a   : > { %v6959_v14 = vadd.f32 1.0, %v6954_v12  ;;  %v3109_v44 = vpop.f32.mrf.mxu0  ;;  %v5261_v59 = vpop.eup %5260 }
 0x53b   : > { %v3906_v28 = vadd.f32 %v5257_v57, %v3905_v30  ;;  %v6965_v27 = vadd.f32 %v6911_v10, %v3109_v44  ;;  %v3917_v56 = vmul.f32 %v5261_v59, %v6938_v1  ;;  %v2800_v47 = vmax.f32 %v2679_v52, 0.0 }
 0x53c   : > { %5262 = vrcp.f32 %v6959_v14  ;;  %vm3922_vm9 = vweird.f32 %v5261_v59  ;;  %v3941_v58 = vand.u32 2147483648, %v6959_v14  ;;  %v3939_v50 = vand.u32 2147483647, %v6959_v14 }
 0x53d   : > { %v3910_v42 = vsel %vm3909_vm6, %v5257_v57, %v3906_v28  ;;  %5264 = vpow2.f32 %v3408_v34  ;;  %5093 = vmatmul.msk.f32.gmra.mxu3 %vm1471_vm5, %v2341_v46  ;;  %v3918_v31 = vsub.f32 1.0, %v3917_v56  ;;  %v3263_v23 = vand.u32 2147483647, %v6965_v27  ;;  %vm3923_vm12 = vmor %vm3921_vm10, %vm3922_vm9 }
 0x53e   : > { %v3915_v35 = vsel %vm3912_vm8, %v3914_v49, %v3910_v42  ;;  %5141 = vmatmul.msk.f32.gmra.mxu0 %vm993_vm3, %v2800_v47  ;;  %vm3935_vm15 = vweird.f32 %v6959_v14  ;;  %v3942_v52 = vor.u32 1.1754944e-38, %v3941_v58  ;;  %vm3940_vm4 = vcmp.eq.f32.partialorder %v3939_v50, 8.507059e+37 }
 0x53f   : > { %v4603_v13 = vmul.f32 %v3915_v35, %v3579_v61  ;;  %v3919_v62 = vmul.f32 %v5261_v59, %v3918_v31  ;;  %v3327_v26 = vsub.f32 0.0, %v3263_v23  ;;  %v2263_v61 = vadd.f32 %v6771_v4, %v6427_v20 }
 0x540   : > { %v2681_v40 = vpop.f32.mrf.mxu3  ;;  %vm3518_vm9 = vcmp.ge.f32.partialorder %v6942_v17, 0.0 }
 0x541   : > { %4667 = vst.msk [vmem:[%s6598_s20 + $0x78] sm:$0xff] %vm516_vm0, %v4603_v13  ;;  %v2682_v22 = vadd.f32 %v6830_v6, %v2681_v40  ;;  %v3920_v39 = vadd.f32 %v5261_v59, %v3919_v62  ;;  %v3410_v24 = vmul.f32 1.442695, %v3327_v26  ;;  %v2344_v26 = vmax.f32 %v2263_v61, 0.0 }
 0x542   : > { %v5263_v32 = vpop.eup %5262  ;;  %v3112_v18 = vpop.f32.mrf.mxu0 }
 0x543   : > { %v6980_v0 = vpop.eup %5264  ;;  %v3931_v51 = vmul.f32 %v5263_v32, %v6959_v14  ;;  %v3924_v57 = vsel %vm3923_vm12, %v5261_v59, %v3920_v39  ;;  %5266 = vpow2.f32 %v3410_v24  ;;  %v2801_v9 = vmax.f32 %v2682_v22, 0.0 }
 0x544   : > { %v6985_v41 = vadd.f32 1.0, %v6980_v0  ;;  %v3929_v1 = vsel %vm3926_vm13, %v3928_v53, %v3924_v57  ;;  %vm3936_vm14 = vweird.f32 %v5263_v32  ;;  %v6995_v36 = vadd.f32 %v6911_v10, %v3112_v18 }
 0x545   : > { %v3932_v60 = vsub.f32 1.0, %v3931_v51  ;;  %5094 = vmatmul.msk.f32.gmra.mxu3 %vm1471_vm5, %v2342_v55  ;;  %v4604_v3 = vmul.f32 %v3929_v1, %v3580_v19  ;;  %vm3937_vm2 = vmor %vm3935_vm15, %vm3936_vm14  ;;  %v3581_v14 = vsel %vm3517_vm1, 1.0, %v6954_v12  ;;  %vm3519_vm13 = vcmp.ge.f32.partialorder %v6965_v27, 0.0 }
 0x546   : > { %5268 = vrcp.f32 %v6985_v41  ;;  %5142 = vmatmul.msk.f32.gmra.mxu0 %vm993_vm3, %v2801_v9  ;;  %v3264_v45 = vand.u32 2147483647, %v6995_v36  ;;  %v3953_v12 = vand.u32 2147483647, %v6985_v41  ;;  %v3955_v23 = vand.u32 2147483648, %v6985_v41 }
 0x547   : > { %v3933_v54 = vmul.f32 %v5263_v32, %v3932_v60  ;;  %4668 = vst.msk [vmem:[%s6598_s20 + $0x80] sm:$0xff] %vm516_vm0, %v4604_v3  ;;  %vm3949_vm7 = vweird.f32 %v6985_v41 }
 0x548   : > { %v2684_v8 = vpop.f32.mrf.mxu3  ;;  %v3328_v59 = vsub.f32 0.0, %v3264_v45  ;;  %v3956_v55 = vor.u32 1.1754944e-38, %v3955_v23  ;;  %vm3954_vm10 = vcmp.eq.f32.partialorder %v3953_v12, 8.507059e+37 }
 0x549   : > { %v3934_v11 = vadd.f32 %v5263_v32, %v3933_v54  ;;  %v7002_v30 = vpop.eup %5266  ;;  %v2685_v46 = vadd.f32 %v6830_v6, %v2684_v8 }
 0x54a   : > { %v7007_v44 = vadd.f32 1.0, %v7002_v30  ;;  %v3115_v15 = vpop.f32.mrf.mxu0  ;;  %v3412_v42 = vmul.f32 1.442695, %v3328_v59  ;;  %v3583_v59 = vsel %vm3519_vm13, 1.0, %v7002_v30 }
 0x54b   : > { %v3938_v34 = vsel %vm3937_vm2, %v5263_v32, %v3934_v11  ;;  %v2802_v49 = vmax.f32 %v2685_v46, 0.0  ;;  %v7018_v31 = vadd.f32 %v6911_v10, %v3115_v15  ;;  %v2266_v32 = vadd.f32 %v6771_v4, %v6431_v63 }
 0x54c   : > { %v5269_v16 = vpop.eup %5268  ;;  %v3943_v28 = vsel %vm3940_vm4, %v3942_v52, %v3938_v34  ;;  %5270 = vrcp.f32 %v7007_v44  ;;  %v3969_v18 = vand.u32 2147483648, %v7007_v44  ;;  %v3967_v3 = vand.u32 2147483647, %v7007_v44 }
 0x54d   : > { %v4605_v56 = vmul.f32 %v3943_v28, %v3581_v14  ;;  %v3945_v47 = vmul.f32 %v5269_v16, %v6985_v41  ;;  %5095 = vmatmul.msk.f32.gmra.mxu3 %vm1471_vm5, %v2343_v37  ;;  %5272 = vpow2.f32 %v3412_v42  ;;  %vm3950_vm6 = vweird.f32 %v5269_v16 }
 0x54e   : > { %5143 = vmatmul.msk.f32.gmra.mxu0 %vm993_vm3, %v2802_v49  ;;  %v3265_v2 = vand.u32 2147483647, %v7018_v31  ;;  %vm3951_vm8 = vmor %vm3949_vm7, %vm3950_vm6  ;;  %v3582_v41 = vsel %vm3518_vm9, 1.0, %v6980_v0  ;;  %vm3963_vm12 = vweird.f32 %v7007_v44  ;;  %v2345_v11 = vmax.f32 %v2266_v32, 0.0 }
 0x54f   : > { %4669 = vst.msk [vmem:[%s6598_s20 + $0x88] sm:$0xff] %vm516_vm0, %v4605_v56  ;;  %v3946_v35 = vsub.f32 1.0, %v3945_v47  ;;  %v3970_v45 = vor.u32 1.1754944e-38, %v3969_v18  ;;  %vm3968_vm15 = vcmp.eq.f32.partialorder %v3967_v3, 8.507059e+37  ;;  %v2269_v49 = vadd.f32 %v6771_v4, %v6438_v5 }
 0x550   : > { %v2687_v13 = vpop.f32.mrf.mxu3  ;;  %v3329_v22 = vsub.f32 0.0, %v3265_v2  ;;  %vm3520_vm6 = vcmp.ge.f32.partialorder %v6995_v36, 0.0 }
 0x551   : > { %v3947_v29 = vmul.f32 %v5269_v16, %v3946_v35  ;;  %v2688_v20 = vadd.f32 %v6830_v6, %v2687_v13  ;;  %v2346_v35 = vmax.f32 %v2269_v49, 0.0 }
 0x552   : > { %v5271_v62 = vpop.eup %5270  ;;  %v3414_v51 = vmul.f32 1.442695, %v3329_v22  ;;  %v3118_v57 = vpop.f32.mrf.mxu0  ;;  %v2272_v22 = vadd.f32 %v6771_v4, %v6442_v38 }
 0x553   : > { %v3948_v40 = vadd.f32 %v5269_v16, %v3947_v29  ;;  %v3959_v39 = vmul.f32 %v5271_v62, %v7007_v44  ;;  %v2803_v24 = vmax.f32 %v2688_v20, 0.0  ;;  %v7031_v9 = vpop.eup %5272  ;;  %v7035_v1 = vadd.f32 %v6911_v10, %v3118_v57 }
 0x554   : > { %v7039_v17 = vadd.f32 1.0, %v7031_v9  ;;  %5274 = vpow2.f32 %v3414_v51  ;;  %vm3964_vm11 = vweird.f32 %v5271_v62  ;;  %v3584_v51 = vsel %vm3520_vm6, 1.0, %v7031_v9 }
 0x555   : > { %v3952_v53 = vsel %vm3951_vm8, %v5269_v16, %v3948_v40  ;;  %5096 = vmatmul.msk.f32.gmra.mxu3 %vm1471_vm5, %v2344_v26  ;;  %v3960_v63 = vsub.f32 1.0, %v3959_v39  ;;  %v3266_v58 = vand.u32 2147483647, %v7035_v1  ;;  %vm3965_vm14 = vmor %vm3963_vm12, %vm3964_vm11  ;;  %v2275_v9 = vadd.f32 %v6771_v4, %v6446_v21 }
 0x556   : > { %v3957_v19 = vsel %vm3954_vm10, %v3956_v55, %v3952_v53  ;;  %5144 = vmatmul.msk.f32.gmra.mxu0 %vm993_vm3, %v2803_v24  ;;  %5276 = vrcp.f32 %v7039_v17  ;;  %v3983_v5 = vand.u32 2147483648, %v7039_v17  ;;  %v3981_v29 = vand.u32 2147483647, %v7039_v17 }
 0x557   : > { %v4606_v60 = vmul.f32 %v3957_v19, %v3582_v41  ;;  %v3961_v43 = vmul.f32 %v5271_v62, %v3960_v63  ;;  %v3330_v50 = vsub.f32 0.0, %v3266_v58  ;;  %vm3977_vm2 = vweird.f32 %v7039_v17 }
 0x558   : > { %v2690_v0 = vpop.f32.mrf.mxu3  ;;  %v3984_v39 = vor.u32 1.1754944e-38, %v3983_v5  ;;  %vm3982_vm7 = vcmp.eq.f32.partialorder %v3981_v29, 8.507059e+37  ;;  %v2347_v63 = vmax.f32 %v2272_v22, 0.0  ;;  %vm3521_vm10 = vcmp.ge.f32.partialorder %v7018_v31, 0.0 }
 0x559   : > { %4670 = vst.msk [vmem:[%s6598_s20 + $0x90] sm:$0xff] %vm516_vm0, %v4606_v60  ;;  %v3962_v54 = vadd.f32 %v5271_v62, %v3961_v43  ;;  %v2691_v8 = vadd.f32 %v6830_v6, %v2690_v0  ;;  %v3416_v52 = vmul.f32 1.442695, %v3330_v50 }
 0x55a   : > { %v7050_v34 = vpop.eup %5274  ;;  %v3121_v14 = vpop.f32.mrf.mxu0 }
 0x55b   : > { %v3966_v37 = vsel %vm3965_vm14, %v5271_v62, %v3962_v54  ;;  %v2804_v46 = vmax.f32 %v2691_v8, 0.0  ;;  %v7055_v28 = vadd.f32 1.0, %v7050_v34  ;;  %5278 = vpow2.f32 %v3416_v52 }
 0x55c   : > { %v3971_v16 = vsel %vm3968_vm15, %v3970_v45, %v3966_v37  ;;  %v5277_v27 = vpop.eup %5276  ;;  %v7060_v56 = vadd.f32 %v6911_v10, %v3121_v14  ;;  %vm3522_vm15 = vcmp.ge.f32.partialorder %v7035_v1, 0.0 }
 0x55d   : > { %5097 = vmatmul.msk.f32.gmra.mxu3 %vm1471_vm5, %v2345_v11  ;;  %v4607_v44 = vmul.f32 %v3971_v16, %v3583_v59  ;;  %v3973_v30 = vmul.f32 %v5277_v27, %v7039_v17  ;;  %5280 = vrcp.f32 %v7055_v28  ;;  %vm3978_vm1 = vweird.f32 %v5277_v27 }
 0x55e   : > { %5145 = vmatmul.msk.f32.gmra.mxu0 %vm993_vm3, %v2804_v46  ;;  %v3267_v15 = vand.u32 2147483647, %v7060_v56  ;;  %vm3979_vm4 = vmor %vm3977_vm2, %vm3978_vm1  ;;  %v3997_v18 = vand.u32 2147483648, %v7055_v28  ;;  %v3995_v43 = vand.u32 2147483647, %v7055_v28  ;;  %vm3991_vm9 = vweird.f32 %v7055_v28 }
 0x55f   : > { %4671 = vst.msk [vmem:[%s6598_s20 + $0x98] sm:$0xff] %vm516_vm0, %v4607_v44  ;;  %v3974_v42 = vsub.f32 1.0, %v3973_v30  ;;  %v3585_v59 = vsel %vm3521_vm10, 1.0, %v7050_v34  ;;  %v2348_v34 = vmax.f32 %v2275_v9, 0.0 }
 0x560   : > { %v2693_v47 = vpop.f32.mrf.mxu3  ;;  %v3331_v12 = vsub.f32 0.0, %v3267_v15  ;;  %v3998_v45 = vor.u32 1.1754944e-38, %v3997_v18  ;;  %vm3996_vm12 = vcmp.eq.f32.partialorder %v3995_v43, 8.507059e+37 }
 0x561   : > { %v2694_v61 = vadd.f32 %v6830_v6, %v2693_v47  ;;  %v7070_v23 = vpop.eup %5278  ;;  %v3975_v13 = vmul.f32 %v5277_v27, %v3974_v42 }
 0x562   : > { %v7074_v20 = vadd.f32 1.0, %v7070_v23  ;;  %v3418_v62 = vmul.f32 1.442695, %v3331_v12  ;;  %v3124_v26 = vpop.f32.mrf.mxu0 }
 0x563   : > { %v2805_v2 = vmax.f32 %v2694_v61, 0.0  ;;  %v5281_v40 = vpop.eup %5280  ;;  %v3976_v32 = vadd.f32 %v5277_v27, %v3975_v13  ;;  %v7081_v55 = vadd.f32 %v6911_v10, %v3124_v26  ;;  %v3586_v26 = vsel %vm3522_vm15, 1.0, %v7070_v23 }
 0x564   : > { %v3987_v24 = vmul.f32 %v5281_v40, %v7055_v28  ;;  %5282 = vrcp.f32 %v7074_v20  ;;  %vm3992_vm8 = vweird.f32 %v5281_v40  ;;  %v4011_v49 = vand.u32 2147483648, %v7074_v20 }
 0x565   : > { %5098 = vmatmul.msk.f32.gmra.mxu3 %vm1471_vm5, %v2346_v35  ;;  %v3980_v53 = vsel %vm3979_vm4, %v5277_v27, %v3976_v32  ;;  %5284 = vpow2.f32 %v3418_v62  ;;  %v3268_v19 = vand.u32 2147483647, %v7081_v55  ;;  %vm3993_vm11 = vmor %vm3991_vm9, %vm3992_vm8  ;;  %v4009_v27 = vand.u32 2147483647, %v7074_v20 }
 0x566   : > { %5146 = vmatmul.msk.f32.gmra.mxu0 %vm993_vm3, %v2805_v2  ;;  %v3985_v57 = vsel %vm3982_vm7, %v3984_v39, %v3980_v53  ;;  %v3988_v41 = vsub.f32 1.0, %v3987_v24  ;;  %vm4005_vm14 = vweird.f32 %v7074_v20  ;;  %v4012_v12 = vor.u32 1.1754944e-38, %v4011_v49 }
 0x567   : > { %v4608_v60 = vmul.f32 %v3985_v57, %v3584_v51  ;;  %v3332_v3 = vsub.f32 0.0, %v3268_v19  ;;  %vm4010_vm2 = vcmp.eq.f32.partialorder %v4009_v27, 8.507059e+37  ;;  %vm3523_vm8 = vcmp.ge.f32.partialorder %v7060_v56, 0.0 }
 0x568   : > { %v2696_v38 = vpop.f32.mrf.mxu3  ;;  %v3989_v36 = vmul.f32 %v5281_v40, %v3988_v41 }
 0x569   : > { %v2697_v17 = vadd.f32 %v6830_v6, %v2696_v38  ;;  %4672 = vst.msk [vmem:[%s6598_s20 + $0xa0] sm:$0xff] %vm516_vm0, %v4608_v60  ;;  %v3420_v50 = vmul.f32 1.442695, %v3332_v3 }
 0x56a   : > { %v5283_v0 = vpop.eup %5282  ;;  %v3990_v54 = vadd.f32 %v5281_v40, %v3989_v36  ;;  %v3127_v8 = vpop.f32.mrf.mxu0  ;;  %v7149_v36 = vld [vmem:[%s7818_s8] ss:$0 sm:$0xff] }
 0x56b   : > { %v2806_v58 = vmax.f32 %v2697_v17, 0.0  ;;  %v7098_v11 = vpop.eup %5284  ;;  %v4001_v37 = vmul.f32 %v5283_v0, %v7074_v20  ;;  %v7103_v52 = vadd.f32 %v6911_v10, %v3127_v8  ;;  %5286 = vpow2.f32 %v3420_v50 }
 0x56c   : > { %v3994_v46 = vsel %vm3993_vm11, %v5281_v40, %v3990_v54  ;;  %v7106_v21 = vadd.f32 1.0, %v7098_v11  ;;  %vm4006_vm13 = vweird.f32 %v5283_v0  ;;  %v2278_v20 = vadd.f32 %v6771_v4, %v6450_v48 }
 0x56d   : > { %5099 = vmatmul.msk.f32.gmra.mxu3 %vm1471_vm5, %v2347_v63  ;;  %v3999_v16 = vsel %vm3996_vm12, %v3998_v45, %v3994_v46  ;;  %v4002_v14 = vsub.f32 1.0, %v4001_v37  ;;  %v3269_v31 = vand.u32 2147483647, %v7103_v52  ;;  %vm4007_vm1 = vmor %vm4005_vm14, %vm4006_vm13  ;;  %v2281_v43 = vadd.f32 %v7149_v36, %v6454_v33 }
 0x56e   : > { %5147 = vmatmul.msk.f32.gmra.mxu0 %vm993_vm3, %v2806_v58  ;;  %v4609_v28 = vmul.f32 %v3999_v16, %v3585_v59  ;;  %5288 = vrcp.f32 %v7106_v21  ;;  %v2349_v4 = vmax.f32 %v2278_v20, 0.0  ;;  %v4025_v23 = vand.u32 2147483648, %v7106_v21 }
 0x56f   : > { %v4003_v30 = vmul.f32 %v5283_v0, %v4002_v14  ;;  %v3333_v47 = vsub.f32 0.0, %v3269_v31  ;;  %v4023_v41 = vand.u32 2147483647, %v7106_v21  ;;  %vm4019_vm6 = vweird.f32 %v7106_v21 }
 0x570   : > { %v2699_v44 = vpop.f32.mrf.mxu3  ;;  %4673 = vst.msk [vmem:[%s6598_s20 + $0xa8] sm:$0xff] %vm516_vm0, %v4609_v28  ;;  %v3587_v50 = vsel %vm3523_vm8, 1.0, %v7098_v11  ;;  %v2350_v46 = vmax.f32 %v2281_v43, 0.0  ;;  %v2284_v11 = vadd.f32 %v7149_v36, %v6458_v25  ;;  %vm3524_vm12 = vcmp.ge.f32.partialorder %v7081_v55, 0.0 }
 0x571   : > { %v2700_v15 = vadd.f32 %v6830_v6, %v2699_v44  ;;  %v4004_v42 = vadd.f32 %v5283_v0, %v4003_v30  ;;  %v3422_v61 = vmul.f32 1.442695, %v3333_v47  ;;  %v7118_v5 = vpop.eup %5286  ;;  %vm4024_vm9 = vcmp.eq.f32.partialorder %v4023_v41, 8.507059e+37 }
 0x572   : > { %v3130_v13 = vpop.f32.mrf.mxu0  ;;  %v7123_v2 = vadd.f32 1.0, %v7118_v5 }
 0x573   : > { %v2807_v35 = vmax.f32 %v2700_v15, 0.0  ;;  %v4008_v29 = vsel %vm4007_vm1, %v5283_v0, %v4004_v42  ;;  %5290 = vpow2.f32 %v3422_v61  ;;  %v7129_v1 = vadd.f32 %v6911_v10, %v3130_v13 }
 0x574   : > { %v5289_v62 = vpop.eup %5288  ;;  %v4013_v40 = vsel %vm4010_vm2, %v4012_v12, %v4008_v29  ;;  %5292 = vrcp.f32 %v7123_v2  ;;  %v4026_v0 = vor.u32 1.1754944e-38, %v4025_v23  ;;  %v4039_v59 = vand.u32 2147483648, %v7123_v2 }
 0x575   : > { %5100 = vmatmul.msk.f32.gmra.mxu3 %vm1471_vm5, %v2348_v34  ;;  %v4610_v22 = vmul.f32 %v4013_v40, %v3586_v26  ;;  %v4015_v32 = vmul.f32 %v5289_v62, %v7106_v21  ;;  %v3270_v24 = vand.u32 2147483647, %v7129_v1  ;;  %vm4020_vm4 = vweird.f32 %v5289_v62 }
 0x576   : > { %5148 = vmatmul.msk.f32.gmra.mxu0 %vm993_vm3, %v2807_v35  ;;  %vm4021_vm7 = vmor %vm4019_vm6, %vm4020_vm4  ;;  %v4037_v14 = vand.u32 2147483647, %v7123_v2  ;;  %vm4033_vm11 = vweird.f32 %v7123_v2  ;;  %v4040_v15 = vor.u32 1.1754944e-38, %v4039_v59  ;;  %v3588_v35 = vsel %vm3524_vm12, 1.0, %v7118_v5 }
 0x577   : > { %4674 = vst.msk [vmem:[%s6598_s20 + $0xb0] sm:$0xff] %vm516_vm0, %v4610_v22  ;;  %v4016_v53 = vsub.f32 1.0, %v4015_v32  ;;  %v3334_v38 = vsub.f32 0.0, %v3270_v24  ;;  %v2351_v5 = vmax.f32 %v2284_v11, 0.0  ;;  %vm3525_vm2 = vcmp.ge.f32.partialorder %v7103_v52, 0.0 }
 0x578   : > { %v2702_v39 = vpop.f32.mrf.mxu3  ;;  %vm4038_vm14 = vcmp.eq.f32.partialorder %v4037_v14, 8.507059e+37 }
 0x579   : > { %v2703_v48 = vadd.f32 %v6830_v6, %v2702_v39  ;;  %v7139_v51 = vpop.eup %5290  ;;  %v4017_v57 = vmul.f32 %v5289_v62, %v4016_v53  ;;  %v3424_v60 = vmul.f32 1.442695, %v3334_v38 }
 0x57a   : > { %v7143_v63 = vadd.f32 1.0, %v7139_v51  ;;  %v5293_v17 = vpop.eup %5292  ;;  %v3589_v41 = vsel %vm3525_vm2, 1.0, %v7139_v51 }
 0x57b   : > { %v2808_v19 = vmax.f32 %v2703_v48, 0.0  ;;  %v3133_v18 = vpop.f32.mrf.mxu0  ;;  %v4018_v3 = vadd.f32 %v5289_v62, %v4017_v57  ;;  %v4029_v9 = vmul.f32 %v5293_v17, %v7123_v2  ;;  %vm4034_vm10 = vweird.f32 %v5293_v17 }
 0x57c   : > { %v7155_v58 = vadd.f32 %v6911_v10, %v3133_v18  ;;  %5294 = vrcp.f32 %v7143_v63  ;;  %vm4035_vm13 = vmor %vm4033_vm11, %vm4034_vm10  ;;  %v4053_v20 = vand.u32 2147483648, %v7143_v63  ;;  %vm4047_vm1 = vweird.f32 %v7143_v63 }
 0x57d   : > { %5101 = vmatmul.msk.f32.gmra.mxu3 %vm1471_vm5, %v2349_v4  ;;  %v4022_v54 = vsel %vm4021_vm7, %v5289_v62, %v4018_v3  ;;  %5296 = vpow2.f32 %v3424_v60  ;;  %v4030_v45 = vsub.f32 1.0, %v4029_v9  ;;  %v4051_v62 = vand.u32 2147483647, %v7143_v63 }
 0x57e   : > { %5149 = vmatmul.msk.f32.gmra.mxu0 %vm993_vm3, %v2808_v19  ;;  %v4027_v8 = vsel %vm4024_vm9, %v4026_v0, %v4022_v54  ;;  %v3271_v37 = vand.u32 2147483647, %v7155_v58  ;;  %v4054_v48 = vor.u32 1.1754944e-38, %v4053_v20  ;;  %v2287_v57 = vadd.f32 %v7149_v36, %v6462_v7  ;;  %v7214_v7 = vld [vmem:[%s7820_s10] ss:$0 sm:$0xff] }
 0x57f   : > { %v4611_v21 = vmul.f32 %v4027_v8, %v3587_v50  ;;  %v4031_v56 = vmul.f32 %v5293_v17, %v4030_v45  ;;  %vm4052_vm6 = vcmp.eq.f32.partialorder %v4051_v62, 8.507059e+37  ;;  %vm3526_vm10 = vcmp.ge.f32.partialorder %v7129_v1, 0.0 }
 0x580   : > { %v2705_v33 = vpop.f32.mrf.mxu3  ;;  %v3335_v31 = vsub.f32 0.0, %v3271_v37  ;;  %v2352_v36 = vmax.f32 %v2287_v57, 0.0 }
 0x581   : > { %v2706_v16 = vadd.f32 %v6830_v6, %v2705_v33  ;;  %4675 = vst.msk [vmem:[%s6598_s20 + $0xb8] sm:$0xff] %vm516_vm0, %v4611_v21  ;;  %v4032_v27 = vadd.f32 %v5293_v17, %v4031_v56 }
 0x582   : > { %v5295_v28 = vpop.eup %5294  ;;  %v3426_v49 = vmul.f32 1.442695, %v3335_v31 }
 0x583   : > { %v2809_v44 = vmax.f32 %v2706_v16, 0.0  ;;  %v3136_v30 = vpop.f32.mrf.mxu0  ;;  %v7172_v47 = vpop.eup %5296  ;;  %v4043_v34 = vmul.f32 %v5295_v28, %v7143_v63  ;;  %v4036_v61 = vsel %vm4035_vm13, %v5293_v17, %v4032_v27  ;;  %vm4048_vm15 = vweird.f32 %v5295_v28 }
 0x584   : > { %v7177_v42 = vadd.f32 %v6911_v10, %v3136_v30  ;;  %v7180_v25 = vadd.f32 1.0, %v7172_v47  ;;  %5298 = vpow2.f32 %v3426_v49  ;;  %v4041_v12 = vsel %vm4038_vm14, %v4040_v15, %v4036_v61  ;;  %vm4049_vm4 = vmor %vm4047_vm1, %vm4048_vm15 }
 0x585   : > { %5102 = vmatmul.msk.f32.gmra.mxu3 %vm1471_vm5, %v2350_v46  ;;  %v4044_v13 = vsub.f32 1.0, %v4043_v34  ;;  %v4612_v2 = vmul.f32 %v4041_v12, %v3588_v35  ;;  %vm3527_vm13 = vcmp.ge.f32.partialorder %v7155_v58, 0.0 }
 0x586   : > { %v3272_v55 = vand.u32 2147483647, %v7177_v42  ;;  %5150 = vmatmul.msk.f32.gmra.mxu0 %vm993_vm3, %v2809_v44  ;;  %5300 = vrcp.f32 %v7180_v25  ;;  %v4067_v3 = vand.u32 2147483648, %v7180_v25  ;;  %v4065_v33 = vand.u32 2147483647, %v7180_v25 }
 0x587   : > { %v4045_v26 = vmul.f32 %v5295_v28, %v4044_v13  ;;  %4676 = vst.msk [vmem:[%s6598_s20 + $0xc0] sm:$0xff] %vm516_vm0, %v4612_v2  ;;  %vm4061_vm8 = vweird.f32 %v7180_v25  ;;  %v3590_v44 = vsel %vm3526_vm10, 1.0, %v7172_v47 }
 0x588   : > { %v2708_v29 = vpop.f32.mrf.mxu3  ;;  %v3336_v40 = vsub.f32 0.0, %v3272_v55  ;;  %v4068_v16 = vor.u32 1.1754944e-38, %v4067_v3  ;;  %vm4066_vm11 = vcmp.eq.f32.partialorder %v4065_v33, 8.507059e+37 }
 0x589   : > { %v2709_v22 = vadd.f32 %v6830_v6, %v2708_v29  ;;  %v4046_v32 = vadd.f32 %v5295_v28, %v4045_v26 }
 0x58a   : > { %v3428_v39 = vmul.f32 1.442695, %v3336_v40  ;;  %v7192_v53 = vpop.eup %5298 }
 0x58b   : > { %v2810_v24 = vmax.f32 %v2709_v22, 0.0  ;;  %v3139_v4 = vpop.f32.mrf.mxu0  ;;  %v4050_v23 = vsel %vm4049_vm4, %v5295_v28, %v4046_v32  ;;  %v7197_v6 = vadd.f32 1.0, %v7192_v53  ;;  %v3591_v40 = vsel %vm3527_vm13, 1.0, %v7192_v53 }
 0x58c   : > { %5302 = vpow2.f32 %v3428_v39  ;;  %v5301_v38 = vpop.eup %5300  ;;  %v4055_v19 = vsel %vm4052_vm6, %v4054_v48, %v4050_v23  ;;  %v7203_v52 = vadd.f32 %v6911_v10, %v3139_v4  ;;  %vm3528_vm4 = vcmp.ge.f32.partialorder %v7177_v42, 0.0 }
 0x58d   : > { %5103 = vmatmul.msk.f32.gmra.mxu3 %vm1471_vm5, %v2351_v5  ;;  %v4613_v63 = vmul.f32 %v4055_v19, %v3589_v41  ;;  %v4057_v60 = vmul.f32 %v5301_v38, %v7180_v25  ;;  %5304 = vrcp.f32 %v7197_v6  ;;  %vm4062_vm7 = vweird.f32 %v5301_v38 }
 0x58e   : > { %5151 = vmatmul.msk.f32.gmra.mxu0 %vm993_vm3, %v2810_v24  ;;  %v3273_v17 = vand.u32 2147483647, %v7203_v52  ;;  %vm4063_vm9 = vmor %vm4061_vm8, %vm4062_vm7  ;;  %v4081_v30 = vand.u32 2147483648, %v7197_v6  ;;  %v4079_v1 = vand.u32 2147483647, %v7197_v6  ;;  %vm4075_vm12 = vweird.f32 %v7197_v6 }
 0x58f   : > { %4677 = vst.msk [vmem:[%s6598_s20 + $0xc8] sm:$0xff] %vm516_vm0, %v4613_v63  ;;  %v4058_v43 = vsub.f32 1.0, %v4057_v60 }
 0x590   : > { %v2711_v18 = vpop.f32.mrf.mxu3  ;;  %v3337_v0 = vsub.f32 0.0, %v3273_v17  ;;  %v4082_v29 = vor.u32 1.1754944e-38, %v4081_v30  ;;  %vm4080_vm15 = vcmp.eq.f32.partialorder %v4079_v1, 8.507059e+37 }
 0x591   : > { %v2712_v51 = vadd.f32 %v7214_v7, %v2711_v18  ;;  %v4059_v54 = vmul.f32 %v5301_v38, %v4058_v43 }
 0x592   : > { %v7218_v9 = vpop.eup %5302  ;;  %v3430_v45 = vmul.f32 1.442695, %v3337_v0 }
 0x593   : > { %v2811_v50 = vmax.f32 %v2712_v51, 0.0  ;;  %v7222_v8 = vadd.f32 1.0, %v7218_v9  ;;  %v3142_v37 = vpop.f32.mrf.mxu0  ;;  %v5305_v46 = vpop.eup %5304  ;;  %v4060_v21 = vadd.f32 %v5301_v38, %v4059_v54  ;;  %v3592_v43 = vsel %vm3528_vm4, 1.0, %v7218_v9 }
 0x594   : > { %v7227_v59 = vadd.f32 %v6911_v10, %v3142_v37  ;;  %v4071_v56 = vmul.f32 %v5305_v46, %v7197_v6 }
 0x595   : > { %5104 = vmatmul.msk.f32.gmra.mxu3 %vm1471_vm5, %v2352_v36  ;;  %5306 = vrcp.f32 %v7222_v8  ;;  %v4064_v14 = vsel %vm4063_vm9, %v5301_v38, %v4060_v21  ;;  %vm4076_vm5 = vweird.f32 %v5305_v46  ;;  %v4093_v24 = vand.u32 2147483647, %v7222_v8 }
 0x596   : > { %5308 = vpow2.f32 %v3430_v45  ;;  %5152 = vmatmul.msk.f32.gmra.mxu0 %vm993_vm3, %v2811_v50  ;;  %v4069_v28 = vsel %vm4066_vm11, %v4068_v16, %v4064_v14  ;;  %v4072_v11 = vsub.f32 1.0, %v4071_v56  ;;  %v3274_v27 = vand.u32 2147483647, %v7227_v59  ;;  %vm4077_vm14 = vmor %vm4075_vm12, %vm4076_vm5 }
 0x597   : > { %v4614_v49 = vmul.f32 %v4069_v28, %v3590_v44  ;;  %v4095_v48 = vand.u32 2147483648, %v7222_v8  ;;  %vm4089_vm2 = vweird.f32 %v7222_v8  ;;  %vm4094_vm7 = vcmp.eq.f32.partialorder %v4093_v24, 8.507059e+37  ;;  %v7289_v44 = vld [vmem:[%s7822_s12] ss:$0 sm:$0xff] }
 0x598   : > { %v2714_v31 = vpop.f32.mrf.mxu3  ;;  %v4073_v34 = vmul.f32 %v5305_v46, %v4072_v11  ;;  %v3338_v61 = vsub.f32 0.0, %v3274_v27  ;;  %vm3529_vm11 = vcmp.ge.f32.partialorder %v7203_v52, 0.0 }
 0x599   : > { %v2715_v15 = vadd.f32 %v7214_v7, %v2714_v31  ;;  %4678 = vst.msk [vmem:[%s6598_s20 + $0xd0] sm:$0xff] %vm516_vm0, %v4614_v49  ;;  %v4096_v19 = vor.u32 1.1754944e-38, %v4095_v48 }
 0x59a   : > { %v4074_v12 = vadd.f32 %v5305_v46, %v4073_v34  ;;  %v3432_v47 = vmul.f32 1.442695, %v3338_v61 }
 0x59b   : > { %v2812_v25 = vmax.f32 %v2715_v15, 0.0  ;;  %v5307_v35 = vpop.eup %5306  ;;  %v3145_v13 = vpop.f32.mrf.mxu0 }
 0x59c   : > { %v7241_v55 = vpop.eup %5308  ;;  %v4085_v2 = vmul.f32 %v5307_v35, %v7222_v8  ;;  %v7246_v62 = vadd.f32 %v6911_v10, %v3145_v13  ;;  %v4078_v20 = vsel %vm4077_vm14, %v5305_v46, %v4074_v12  ;;  %5310 = vpow2.f32 %v3432_v47 }
 0x59d   : > { %v7249_v26 = vadd.f32 1.0, %v7241_v55  ;;  %v4083_v22 = vsel %vm4080_vm15, %v4082_v29, %v4078_v20  ;;  %vm4090_vm1 = vweird.f32 %v5307_v35  ;;  %v3593_v15 = vsel %vm3529_vm11, 1.0, %v7241_v55 }
 0x59e   : > { %v4086_v5 = vsub.f32 1.0, %v4085_v2  ;;  %v3275_v58 = vand.u32 2147483647, %v7246_v62  ;;  %5153 = vmatmul.msk.f32.gmra.mxu0 %vm993_vm3, %v2812_v25  ;;  %v4615_v39 = vmul.f32 %v4083_v22, %v3591_v40  ;;  %vm4091_vm6 = vmor %vm4089_vm2, %vm4090_vm1  ;;  %vm3530_vm14 = vcmp.ge.f32.partialorder %v7227_v59, 0.0 }
 0x59f   : > { %5312 = vrcp.f32 %v7249_v26  ;;  %v4109_v9 = vand.u32 2147483648, %v7249_v26  ;;  %v4107_v37 = vand.u32 2147483647, %v7249_v26  ;;  %vm4103_vm9 = vweird.f32 %v7249_v26 }
 0x5a0   : > { %v2717_v32 = vpop.f32.mrf.mxu3  ;;  %v4087_v4 = vmul.f32 %v5307_v35, %v4086_v5  ;;  %v3339_v23 = vsub.f32 0.0, %v3275_v58  ;;  %4679 = vst.msk [vmem:[%s6598_s20 + $0xd8] sm:$0xff] %vm516_vm0, %v4615_v39 }
 0x5a1   : > { %v2718_v6 = vadd.f32 %v7214_v7, %v2717_v32  ;;  %v4110_v11 = vor.u32 1.1754944e-38, %v4109_v9  ;;  %vm4108_vm5 = vcmp.eq.f32.partialorder %v4107_v37, 8.507059e+37 }
 0x5a2   : > { %v4088_v53 = vadd.f32 %v5307_v35, %v4087_v4  ;;  %v3434_v38 = vmul.f32 1.442695, %v3339_v23  ;;  %v7261_v41 = vpop.eup %5310 }
 0x5a3   : > { %v2813_v57 = vmax.f32 %v2718_v6, 0.0  ;;  %v3148_v63 = vpop.f32.mrf.mxu0  ;;  %v7265_v18 = vadd.f32 1.0, %v7261_v41  ;;  %v3594_v24 = vsel %vm3530_vm14, 1.0, %v7261_v41 }
 0x5a4   : > { %v4092_v60 = vsel %vm4091_vm6, %v5307_v35, %v4088_v53  ;;  %5314 = vpow2.f32 %v3434_v38  ;;  %v7269_v36 = vadd.f32 %v6911_v10, %v3148_v63  ;;  %vm3531_vm6 = vcmp.ge.f32.partialorder %v7246_v62, 0.0 }
 0x5a5   : > { %v5313_v17 = vpop.eup %5312  ;;  %v4097_v51 = vsel %vm4094_vm7, %v4096_v19, %v4092_v60  ;;  %5316 = vrcp.f32 %v7265_v18  ;;  %v4123_v35 = vand.u32 2147483648, %v7265_v18  ;;  %v4121_v52 = vand.u32 2147483647, %v7265_v18 }
 0x5a6   : > { %v4616_v3 = vmul.f32 %v4097_v51, %v3592_v43  ;;  %v4099_v42 = vmul.f32 %v5313_v17, %v7249_v26  ;;  %5154 = vmatmul.msk.f32.gmra.mxu0 %vm993_vm3, %v2813_v57  ;;  %v3276_v54 = vand.u32 2147483647, %v7269_v36  ;;  %vm4104_vm8 = vweird.f32 %v5313_v17 }
 0x5a7   : > { %vm4105_vm10 = vmor %vm4103_vm9, %vm4104_vm8  ;;  %vm4117_vm13 = vweird.f32 %v7265_v18  ;;  %v4124_v22 = vor.u32 1.1754944e-38, %v4123_v35  ;;  %vm4122_vm1 = vcmp.eq.f32.partialorder %v4121_v52, 8.507059e+37 }
 0x5a8   : > { %v2720_v0 = vpop.f32.mrf.mxu3  ;;  %4680 = vst.msk [vmem:[%s6598_s20 + $0xe0] sm:$0xff] %vm516_vm0, %v4616_v3  ;;  %v4100_v33 = vsub.f32 1.0, %v4099_v42  ;;  %v3340_v8 = vsub.f32 0.0, %v3276_v54 }
 0x5a9   : > { %v2721_v50 = vadd.f32 %v7214_v7, %v2720_v0 }
 0x5aa   : > { %v7279_v10 = vpop.eup %5314  ;;  %v4101_v45 = vmul.f32 %v5313_v17, %v4100_v33  ;;  %v3436_v16 = vmul.f32 1.442695, %v3340_v8 }
 0x5ab   : > { %v2814_v46 = vmax.f32 %v2721_v50, 0.0  ;;  %v7283_v21 = vadd.f32 1.0, %v7279_v10  ;;  %v3151_v56 = vpop.f32.mrf.mxu0  ;;  %v5317_v14 = vpop.eup %5316  ;;  %v3595_v54 = vsel %vm3531_vm6, 1.0, %v7279_v10 }
 0x5ac   : > { %v4102_v31 = vadd.f32 %v5313_v17, %v4101_v45  ;;  %v7292_v28 = vadd.f32 %v7289_v44, %v3151_v56  ;;  %v4113_v27 = vmul.f32 %v5317_v14, %v7265_v18  ;;  %vm4118_vm12 = vweird.f32 %v5317_v14 }
 0x5ad   : > { %5318 = vrcp.f32 %v7283_v21  ;;  %vm4119_vm15 = vmor %vm4117_vm13, %vm4118_vm12  ;;  %v4135_v53 = vand.u32 2147483647, %v7283_v21  ;;  %v4137_v38 = vand.u32 2147483648, %v7283_v21  ;;  %vm4131_vm4 = vweird.f32 %v7283_v21 }
 0x5ae   : > { %v4106_v49 = vsel %vm4105_vm10, %v5313_v17, %v4102_v31  ;;  %5320 = vpow2.f32 %v3436_v16  ;;  %5155 = vmatmul.msk.f32.gmra.mxu0 %vm993_vm3, %v2814_v46  ;;  %v4114_v1 = vsub.f32 1.0, %v4113_v27  ;;  %v3277_v61 = vand.u32 2147483647, %v7292_v28 }
 0x5af   : > { %v4111_v34 = vsel %vm4108_vm5, %v4110_v11, %v4106_v49  ;;  %v4138_v43 = vor.u32 1.1754944e-38, %v4137_v38  ;;  %vm4136_vm8 = vcmp.eq.f32.partialorder %v4135_v53, 8.507059e+37  ;;  %vm3532_vm5 = vcmp.ge.f32.partialorder %v7269_v36, 0.0 }
 0x5b0   : > { %v2723_v30 = vpop.f32.mrf.mxu3  ;;  %v4617_v25 = vmul.f32 %v4111_v34, %v3593_v15  ;;  %v4115_v47 = vmul.f32 %v5317_v14, %v4114_v1  ;;  %v3341_v13 = vsub.f32 0.0, %v3277_v61 }
 0x5b1   : > { %v2724_v12 = vadd.f32 %v7214_v7, %v2723_v30 }
 0x5b2   : > { %4681 = vst.msk [vmem:[%s6598_s20 + $0xe8] sm:$0xff] %vm516_vm0, %v4617_v25  ;;  %v4116_v20 = vadd.f32 %v5317_v14, %v4115_v47  ;;  %v3438_v55 = vmul.f32 1.442695, %v3341_v13 }
 0x5b3   : > { %v2815_v29 = vmax.f32 %v2724_v12, 0.0  ;;  %v5319_v2 = vpop.eup %5318  ;;  %v3154_v26 = vpop.f32.mrf.mxu0 }
 0x5b4   : > { %v7306_v40 = vpop.eup %5320  ;;  %v4127_v5 = vmul.f32 %v5319_v2, %v7283_v21  ;;  %v7311_v58 = vadd.f32 %v7289_v44, %v3154_v26  ;;  %v4120_v32 = vsel %vm4119_vm15, %v5317_v14, %v4116_v20  ;;  %5322 = vpow2.f32 %v3438_v55 }
 0x5b5   : > { %v7314_v39 = vadd.f32 1.0, %v7306_v40  ;;  %v4125_v48 = vsel %vm4122_vm1, %v4124_v22, %v4120_v32  ;;  %vm4132_vm2 = vweird.f32 %v5319_v2  ;;  %v3596_v12 = vsel %vm3532_vm5, 1.0, %v7306_v40 }
 0x5b6   : > { %v4128_v4 = vsub.f32 1.0, %v4127_v5  ;;  %v3278_v59 = vand.u32 2147483647, %v7311_v58  ;;  %5156 = vmatmul.msk.f32.gmra.mxu0 %vm993_vm3, %v2815_v29  ;;  %v4618_v6 = vmul.f32 %v4125_v48, %v3594_v24  ;;  %vm4133_vm7 = vmor %vm4131_vm4, %vm4132_vm2  ;;  %vm3533_vm15 = vcmp.ge.f32.partialorder %v7292_v28, 0.0 }
 0x5b7   : > { %5324 = vrcp.f32 %v7314_v39  ;;  %v4151_v10 = vand.u32 2147483648, %v7314_v39  ;;  %v4149_v14 = vand.u32 2147483647, %v7314_v39  ;;  %vm4145_vm10 = vweird.f32 %v7314_v39 }
 0x5b8   : > { %v2726_v23 = vpop.f32.mrf.mxu3  ;;  %v4129_v57 = vmul.f32 %v5319_v2, %v4128_v4  ;;  %v3342_v19 = vsub.f32 0.0, %v3278_v59  ;;  %4682 = vst.msk [vmem:[%s6598_s20 + $0xf0] sm:$0xff] %vm516_vm0, %v4618_v6 }
 0x5b9   : > { %v2727_v63 = vadd.f32 %v7214_v7, %v2726_v23  ;;  %v4152_v1 = vor.u32 1.1754944e-38, %v4151_v10  ;;  %vm4150_vm12 = vcmp.eq.f32.partialorder %v4149_v14, 8.507059e+37 }
 0x5ba   : > { %v4130_v41 = vadd.f32 %v5319_v2, %v4129_v57  ;;  %v3440_v60 = vmul.f32 1.442695, %v3342_v19  ;;  %v7326_v17 = vpop.eup %5322 }
 0x5bb   : > { %v2816_v18 = vmax.f32 %v2727_v63, 0.0  ;;  %v3157_v51 = vpop.f32.mrf.mxu0  ;;  %v7330_v42 = vadd.f32 1.0, %v7326_v17  ;;  %v3597_v53 = vsel %vm3533_vm15, 1.0, %v7326_v17 }
 0x5bc   : > { %v4134_v3 = vsel %vm4133_vm7, %v5319_v2, %v4130_v41  ;;  %5326 = vpow2.f32 %v3440_v60  ;;  %v7334_v50 = vadd.f32 %v7289_v44, %v3157_v51  ;;  %vm3534_vm7 = vcmp.ge.f32.partialorder %v7311_v58, 0.0 }
 0x5bd   : > { %v5325_v0 = vpop.eup %5324  ;;  %v4139_v33 = vsel %vm4136_vm8, %v4138_v43, %v4134_v3  ;;  %5328 = vrcp.f32 %v7330_v42  ;;  %v4165_v2 = vand.u32 2147483648, %v7330_v42  ;;  %v4163_v36 = vand.u32 2147483647, %v7330_v42 }
 0x5be   : > { %v4619_v9 = vmul.f32 %v4139_v33, %v3595_v54  ;;  %v4141_v62 = vmul.f32 %v5325_v0, %v7314_v39  ;;  %5157 = vmatmul.msk.f32.gmra.mxu0 %vm993_vm3, %v2816_v18  ;;  %v3279_v45 = vand.u32 2147483647, %v7334_v50  ;;  %vm4146_vm9 = vweird.f32 %v5325_v0 }
 0x5bf   : > { %vm4147_vm11 = vmor %vm4145_vm10, %vm4146_vm9  ;;  %vm4159_vm14 = vweird.f32 %v7330_v42  ;;  %v4166_v48 = vor.u32 1.1754944e-38, %v4165_v2  ;;  %vm4164_vm2 = vcmp.eq.f32.partialorder %v4163_v36, 8.507059e+37 }
 0x5c0   : > { %v2729_v8 = vpop.f32.mrf.mxu3  ;;  %4683 = vst.msk [vmem:[%s6598_s20 + $0xf8] sm:$0xff] %vm516_vm0, %v4619_v9  ;;  %v4142_v37 = vsub.f32 1.0, %v4141_v62  ;;  %v3343_v21 = vsub.f32 0.0, %v3279_v45 }
 0x5c1   : > { %v2730_v46 = vadd.f32 %v7214_v7, %v2729_v8 }
 0x5c2   : > { %v7344_v16 = vpop.eup %5326  ;;  %v4143_v56 = vmul.f32 %v5325_v0, %v4142_v37  ;;  %v3442_v27 = vmul.f32 1.442695, %v3343_v21 }
 0x5c3   : > { %v2817_v31 = vmax.f32 %v2730_v46, 0.0  ;;  %v7348_v11 = vadd.f32 1.0, %v7344_v16  ;;  %v3160_v49 = vpop.f32.mrf.mxu0  ;;  %v5329_v30 = vpop.eup %5328  ;;  %v3598_v45 = vsel %vm3534_vm7, 1.0, %v7344_v16 }
 0x5c4   : > { %v4144_v15 = vadd.f32 %v5325_v0, %v4143_v56  ;;  %v7352_v34 = vadd.f32 %v7289_v44, %v3160_v49  ;;  %v4155_v61 = vmul.f32 %v5329_v30, %v7330_v42  ;;  %vm4160_vm13 = vweird.f32 %v5329_v30 }
 0x5c5   : > { %5330 = vrcp.f32 %v7348_v11  ;;  %vm4161_vm1 = vmor %vm4159_vm14, %vm4160_vm13  ;;  %v4177_v41 = vand.u32 2147483647, %v7348_v11  ;;  %v4179_v60 = vand.u32 2147483648, %v7348_v11  ;;  %vm4173_vm6 = vweird.f32 %v7348_v11 }
 0x5c6   : > { %v4148_v25 = vsel %vm4147_vm11, %v5325_v0, %v4144_v15  ;;  %5332 = vpow2.f32 %v3442_v27  ;;  %5158 = vmatmul.msk.f32.gmra.mxu0 %vm993_vm3, %v2817_v31  ;;  %v4156_v52 = vsub.f32 1.0, %v4155_v61  ;;  %v3280_v13 = vand.u32 2147483647, %v7352_v34 }
 0x5c7   : > { %v4153_v47 = vsel %vm4150_vm12, %v4152_v1, %v4148_v25  ;;  %v4180_v54 = vor.u32 1.1754944e-38, %v4179_v60  ;;  %vm4178_vm9 = vcmp.eq.f32.partialorder %v4177_v41, 8.507059e+37  ;;  %vm3535_vm12 = vcmp.ge.f32.partialorder %v7334_v50, 0.0 }
 0x5c8   : > { %v2732_v35 = vpop.f32.mrf.mxu3  ;;  %v4620_v29 = vmul.f32 %v4153_v47, %v3596_v12  ;;  %v4157_v55 = vmul.f32 %v5329_v30, %v4156_v52  ;;  %v3344_v26 = vsub.f32 0.0, %v3280_v13 }
 0x5c9   : > { %v2733_v20 = vadd.f32 %v7214_v7, %v2732_v35 }
 0x5ca   : > { %4684 = vst.msk [vmem:[%s6598_s20 + $0x100] sm:$0xff] %vm516_vm0, %v4620_v29  ;;  %v4158_v32 = vadd.f32 %v5329_v30, %v4157_v55  ;;  %v3444_v40 = vmul.f32 1.442695, %v3344_v26 }
 0x5cb   : > { %v2818_v22 = vmax.f32 %v2733_v20, 0.0  ;;  %v5331_v5 = vpop.eup %5330  ;;  %v3163_v39 = vpop.f32.mrf.mxu0 }
 0x5cc   : > { %v7366_v24 = vpop.eup %5332  ;;  %v4169_v4 = vmul.f32 %v5331_v5, %v7348_v11  ;;  %v7371_v59 = vadd.f32 %v7289_v44, %v3163_v39  ;;  %v4162_v23 = vsel %vm4161_vm1, %v5329_v30, %v4158_v32  ;;  %5334 = vpow2.f32 %v3444_v40 }
 0x5cd   : > { %v7374_v6 = vadd.f32 1.0, %v7366_v24  ;;  %v4167_v38 = vsel %vm4164_vm2, %v4166_v48, %v4162_v23  ;;  %vm4174_vm4 = vweird.f32 %v5331_v5  ;;  %v3599_v20 = vsel %vm3535_vm12, 1.0, %v7366_v24 }
 0x5ce   : > { %v4170_v57 = vsub.f32 1.0, %v4169_v4  ;;  %v3281_v28 = vand.u32 2147483647, %v7371_v59  ;;  %5159 = vmatmul.msk.f32.gmra.mxu0 %vm993_vm3, %v2818_v22  ;;  %v4621_v63 = vmul.f32 %v4167_v38, %v3597_v53  ;;  %vm4175_vm8 = vmor %vm4173_vm6, %vm4174_vm4  ;;  %vm3536_vm1 = vcmp.ge.f32.partialorder %v7352_v34, 0.0 }
 0x5cf   : > { %5336 = vrcp.f32 %v7374_v6  ;;  %v4193_v16 = vand.u32 2147483648, %v7374_v6  ;;  %v4191_v30 = vand.u32 2147483647, %v7374_v6  ;;  %vm4187_vm11 = vweird.f32 %v7374_v6 }
 0x5d0   : > { %v2735_v19 = vpop.f32.mrf.mxu3  ;;  %v4171_v18 = vmul.f32 %v5331_v5, %v4170_v57  ;;  %v3345_v43 = vsub.f32 0.0, %v3281_v28  ;;  %4685 = vst.msk [vmem:[%s6598_s20 + $0x108] sm:$0xff] %vm516_vm0, %v4621_v63 }
 0x5d1   : > { %v2736_v51 = vadd.f32 %v7214_v7, %v2735_v19  ;;  %v4194_v52 = vor.u32 1.1754944e-38, %v4193_v16  ;;  %vm4192_vm13 = vcmp.eq.f32.partialorder %v4191_v30, 8.507059e+37 }
 0x5d2   : > { %v4172_v17 = vadd.f32 %v5331_v5, %v4171_v18  ;;  %v3446_v3 = vmul.f32 1.442695, %v3345_v43  ;;  %v7386_v0 = vpop.eup %5334 }
 0x5d3   : > { %v2819_v42 = vmax.f32 %v2736_v51, 0.0  ;;  %v3166_v33 = vpop.f32.mrf.mxu0  ;;  %v7390_v62 = vadd.f32 1.0, %v7386_v0  ;;  %v3600_v41 = vsel %vm3536_vm1, 1.0, %v7386_v0 }
 0x5d4   : > { %v4176_v9 = vsel %vm4175_vm8, %v5331_v5, %v4172_v17  ;;  %5338 = vpow2.f32 %v3446_v3  ;;  %v7394_v46 = vadd.f32 %v7289_v44, %v3166_v33  ;;  %vm3537_vm8 = vcmp.ge.f32.partialorder %v7371_v59, 0.0 }
 0x5d5   : > { %v5337_v8 = vpop.eup %5336  ;;  %v4181_v37 = vsel %vm4178_vm9, %v4180_v54, %v4176_v9  ;;  %5340 = vrcp.f32 %v7390_v62  ;;  %v4207_v5 = vand.u32 2147483648, %v7390_v62  ;;  %v4205_v50 = vand.u32 2147483647, %v7390_v62 }
 0x5d6   : > { %v4622_v10 = vmul.f32 %v4181_v37, %v3598_v45  ;;  %v4183_v58 = vmul.f32 %v5337_v8, %v7374_v6  ;;  %5160 = vmatmul.msk.f32.gmra.mxu0 %vm993_vm3, %v2819_v42  ;;  %v3282_v56 = vand.u32 2147483647, %v7394_v46  ;;  %vm4188_vm10 = vweird.f32 %v5337_v8 }
 0x5d7   : > { %vm4189_vm5 = vmor %vm4187_vm11, %vm4188_vm10  ;;  %vm4201_vm15 = vweird.f32 %v7390_v62  ;;  %v4208_v38 = vor.u32 1.1754944e-38, %v4207_v5  ;;  %vm4206_vm4 = vcmp.eq.f32.partialorder %v4205_v50, 8.507059e+37 }
 0x5d8   : > { %v2738_v21 = vpop.f32.mrf.mxu3  ;;  %4686 = vst.msk [vmem:[%s6598_s20 + $0x110] sm:$0xff] %vm516_vm0, %v4622_v10  ;;  %v4184_v14 = vsub.f32 1.0, %v4183_v58  ;;  %v3346_v11 = vsub.f32 0.0, %v3282_v56 }
 0x5d9   : > { %v2739_v31 = vadd.f32 %v7214_v7, %v2738_v21 }
 0x5da   : > { %v7404_v27 = vpop.eup %5338  ;;  %v4185_v49 = vmul.f32 %v5337_v8, %v4184_v14  ;;  %v3448_v61 = vmul.f32 1.442695, %v3346_v11 }
 0x5db   : > { %v2820_v15 = vmax.f32 %v2739_v31, 0.0  ;;  %v7408_v1 = vadd.f32 1.0, %v7404_v27  ;;  %v3169_v25 = vpop.f32.mrf.mxu0  ;;  %v5341_v35 = vpop.eup %5340  ;;  %v3601_v56 = vsel %vm3537_vm8, 1.0, %v7404_v27 }
 0x5dc   : > { %v4186_v12 = vadd.f32 %v5337_v8, %v4185_v49  ;;  %v7412_v47 = vadd.f32 %v7289_v44, %v3169_v25  ;;  %v4197_v13 = vmul.f32 %v5341_v35, %v7390_v62  ;;  %vm4202_vm14 = vweird.f32 %v5341_v35 }
 0x5dd   : > { %5342 = vrcp.f32 %v7408_v1  ;;  %vm4203_vm2 = vmor %vm4201_vm15, %vm4202_vm14  ;;  %v4219_v17 = vand.u32 2147483647, %v7408_v1  ;;  %v4221_v3 = vand.u32 2147483648, %v7408_v1  ;;  %vm4215_vm7 = vweird.f32 %v7408_v1 }
 0x5de   : > { %v4190_v29 = vsel %vm4189_vm5, %v5337_v8, %v4186_v12  ;;  %5344 = vpow2.f32 %v3448_v61  ;;  %5161 = vmatmul.msk.f32.gmra.mxu0 %vm993_vm3, %v2820_v15  ;;  %v4198_v36 = vsub.f32 1.0, %v4197_v13  ;;  %v3283_v26 = vand.u32 2147483647, %v7412_v47 }
 0x5df   : > { %v4195_v55 = vsel %vm4192_vm13, %v4194_v52, %v4190_v29  ;;  %v4222_v45 = vor.u32 1.1754944e-38, %v4221_v3  ;;  %vm4220_vm10 = vcmp.eq.f32.partialorder %v4219_v17, 8.507059e+37  ;;  %vm3538_vm13 = vcmp.ge.f32.partialorder %v7394_v46, 0.0 }
 0x5e0   : > { %v2741_v2 = vpop.f32.mrf.mxu3  ;;  %v4623_v22 = vmul.f32 %v4195_v55, %v3599_v20  ;;  %v4199_v40 = vmul.f32 %v5341_v35, %v4198_v36  ;;  %v3347_v39 = vsub.f32 0.0, %v3283_v26 }
 0x5e1   : > { %v2742_v32 = vadd.f32 %v7214_v7, %v2741_v2 }
 0x5e2   : > { %4687 = vst.msk [vmem:[%s6598_s20 + $0x118] sm:$0xff] %vm516_vm0, %v4623_v22  ;;  %v4200_v23 = vadd.f32 %v5341_v35, %v4199_v40  ;;  %v3450_v24 = vmul.f32 1.442695, %v3347_v39 }
 0x5e3   : > { %v2821_v48 = vmax.f32 %v2742_v32, 0.0  ;;  %v5343_v4 = vpop.eup %5342  ;;  %v3172_v6 = vpop.f32.mrf.mxu0 }
 0x5e4   : > { %v7426_v53 = vpop.eup %5344  ;;  %v4211_v57 = vmul.f32 %v5343_v4, %v7408_v1  ;;  %v7431_v28 = vadd.f32 %v7289_v44, %v3172_v6  ;;  %v4204_v19 = vsel %vm4203_vm2, %v5341_v35, %v4200_v23  ;;  %5346 = vpow2.f32 %v3450_v24 }
 0x5e5   : > { %v7434_v63 = vadd.f32 1.0, %v7426_v53  ;;  %v4209_v60 = vsel %vm4206_vm4, %v4208_v38, %v4204_v19  ;;  %vm4216_vm6 = vweird.f32 %v5343_v4  ;;  %v3602_v32 = vsel %vm3538_vm13, 1.0, %v7426_v53 }
 0x5e6   : > { %v4212_v18 = vsub.f32 1.0, %v4211_v57  ;;  %v3284_v34 = vand.u32 2147483647, %v7431_v28  ;;  %5162 = vmatmul.msk.f32.gmra.mxu0 %vm993_vm3, %v2821_v48  ;;  %v4624_v51 = vmul.f32 %v4209_v60, %v3600_v41  ;;  %vm4217_vm9 = vmor %vm4215_vm7, %vm4216_vm6  ;;  %vm3539_vm2 = vcmp.ge.f32.partialorder %v7412_v47, 0.0 }
 0x5e7   : > { %5348 = vrcp.f32 %v7434_v63  ;;  %v4235_v27 = vand.u32 2147483648, %v7434_v63  ;;  %v4233_v35 = vand.u32 2147483647, %v7434_v63  ;;  %vm4229_vm5 = vweird.f32 %v7434_v63 }
 0x5e8   : > { %v2744_v43 = vpop.f32.mrf.mxu3  ;;  %v4213_v42 = vmul.f32 %v5343_v4, %v4212_v18  ;;  %v3348_v54 = vsub.f32 0.0, %v3284_v34  ;;  %4688 = vst.msk [vmem:[%s6598_s20 + $0x120] sm:$0xff] %vm516_vm0, %v4624_v51 }
 0x5e9   : > { %v2745_v33 = vadd.f32 %v7214_v7, %v2744_v43  ;;  %v4236_v36 = vor.u32 1.1754944e-38, %v4235_v27  ;;  %vm4234_vm14 = vcmp.eq.f32.partialorder %v4233_v35, 8.507059e+37 }
 0x5ea   : > { %v4214_v0 = vadd.f32 %v5343_v4, %v4213_v42  ;;  %v3452_v9 = vmul.f32 1.442695, %v3348_v54  ;;  %v7446_v8 = vpop.eup %5346 }
 0x5eb   : > { %v2822_v62 = vmax.f32 %v2745_v33, 0.0  ;;  %v3175_v37 = vpop.f32.mrf.mxu0  ;;  %v7450_v58 = vadd.f32 1.0, %v7446_v8  ;;  %v3603_v17 = vsel %vm3539_vm2, 1.0, %v7446_v8 }
 0x5ec   : > { %v4218_v10 = vsel %vm4217_vm9, %v5343_v4, %v4214_v0  ;;  %5350 = vpow2.f32 %v3452_v9  ;;  %v7454_v31 = vadd.f32 %v7289_v44, %v3175_v37  ;;  %vm3540_vm9 = vcmp.ge.f32.partialorder %v7431_v28, 0.0 }
 0x5ed   : > { %v5349_v21 = vpop.eup %5348  ;;  %v4223_v14 = vsel %vm4220_vm10, %v4222_v45, %v4218_v10  ;;  %5352 = vrcp.f32 %v7450_v58  ;;  %v4249_v4 = vand.u32 2147483648, %v7450_v58  ;;  %v4247_v46 = vand.u32 2147483647, %v7450_v58 }
 0x5ee   : > { %v4625_v16 = vmul.f32 %v4223_v14, %v3601_v56  ;;  %v4225_v59 = vmul.f32 %v5349_v21, %v7434_v63  ;;  %5163 = vmatmul.msk.f32.gmra.mxu0 %vm993_vm3, %v2822_v62  ;;  %v3285_v49 = vand.u32 2147483647, %v7454_v31  ;;  %vm4230_vm11 = vweird.f32 %v5349_v21 }
 0x5ef   : > { %vm4231_vm12 = vmor %vm4229_vm5, %vm4230_vm11  ;;  %vm4243_vm1 = vweird.f32 %v7450_v58  ;;  %v4250_v60 = vor.u32 1.1754944e-38, %v4249_v4  ;;  %vm4248_vm6 = vcmp.eq.f32.partialorder %v4247_v46, 8.507059e+37 }
 0x5f0   : > { %v2747_v11 = vpop.f32.mrf.mxu3  ;;  %4689 = vst.msk [vmem:[%s6598_s20 + $0x128] sm:$0xff] %vm516_vm0, %v4625_v16  ;;  %v4226_v30 = vsub.f32 1.0, %v4225_v59  ;;  %v3349_v1 = vsub.f32 0.0, %v3285_v49 }
 0x5f1   : > { %v2748_v15 = vadd.f32 %v7214_v7, %v2747_v11 }
 0x5f2   : > { %v7464_v61 = vpop.eup %5350  ;;  %v4227_v25 = vmul.f32 %v5349_v21, %v4226_v30  ;;  %v3454_v13 = vmul.f32 1.442695, %v3349_v1 }
 0x5f3   : > { %v2823_v12 = vmax.f32 %v2748_v15, 0.0  ;;  %v7468_v52 = vadd.f32 1.0, %v7464_v61  ;;  %v3178_v29 = vpop.f32.mrf.mxu0  ;;  %v5353_v2 = vpop.eup %5352  ;;  %v3604_v49 = vsel %vm3540_vm9, 1.0, %v7464_v61 }
 0x5f4   : > { %v4228_v20 = vadd.f32 %v5349_v21, %v4227_v25  ;;  %v7472_v55 = vadd.f32 %v7289_v44, %v3178_v29  ;;  %v4239_v26 = vmul.f32 %v5353_v2, %v7450_v58  ;;  %vm4244_vm15 = vweird.f32 %v5353_v2 }
 0x5f5   : > { %5354 = vrcp.f32 %v7468_v52  ;;  %vm4245_vm4 = vmor %vm4243_vm1, %vm4244_vm15  ;;  %v4261_v0 = vand.u32 2147483647, %v7468_v52  ;;  %v4263_v9 = vand.u32 2147483648, %v7468_v52  ;;  %vm4257_vm8 = vweird.f32 %v7468_v52 }
 0x5f6   : > { %v4232_v22 = vsel %vm4231_vm12, %v5349_v21, %v4228_v20  ;;  %5356 = vpow2.f32 %v3454_v13  ;;  %5164 = vmatmul.msk.f32.gmra.mxu0 %vm993_vm3, %v2823_v12  ;;  %v4240_v50 = vsub.f32 1.0, %v4239_v26  ;;  %v3286_v39 = vand.u32 2147483647, %v7472_v55 }
 0x5f7   : > { %v4237_v40 = vsel %vm4234_vm14, %v4236_v36, %v4232_v22  ;;  %v4264_v56 = vor.u32 1.1754944e-38, %v4263_v9  ;;  %vm4262_vm11 = vcmp.eq.f32.partialorder %v4261_v0, 8.507059e+37  ;;  %vm3541_vm14 = vcmp.ge.f32.partialorder %v7454_v31, 0.0 }
 0x5f8   : > { %v2750_v5 = vpop.f32.mrf.mxu3  ;;  %v4626_v48 = vmul.f32 %v4237_v40, %v3602_v32  ;;  %v4241_v24 = vmul.f32 %v5353_v2, %v4240_v50  ;;  %v3350_v6 = vsub.f32 0.0, %v3286_v39 }
 0x5f9   : > { %v2751_v23 = vadd.f32 %v7214_v7, %v2750_v5 }
 0x5fa   : > { %4690 = vst.msk [vmem:[%s6598_s20 + $0x130] sm:$0xff] %vm516_vm0, %v4626_v48  ;;  %v4242_v19 = vadd.f32 %v5353_v2, %v4241_v24  ;;  %v3456_v53 = vmul.f32 1.442695, %v3350_v6 }
 0x5fb   : > { %v2824_v38 = vmax.f32 %v2751_v23, 0.0  ;;  %v5355_v57 = vpop.eup %5354  ;;  %v3181_v63 = vpop.f32.mrf.mxu0 }
 0x5fc   : > { %v7486_v41 = vpop.eup %5356  ;;  %v4253_v18 = vmul.f32 %v5355_v57, %v7468_v52  ;;  %v7491_v34 = vadd.f32 %v7289_v44, %v3181_v63  ;;  %v4246_v43 = vsel %vm4245_vm4, %v5353_v2, %v4242_v19  ;;  %5358 = vpow2.f32 %v3456_v53 }
 0x5fd   : > { %v7494_v51 = vadd.f32 1.0, %v7486_v41  ;;  %v4251_v3 = vsel %vm4248_vm6, %v4250_v60, %v4246_v43  ;;  %vm4258_vm7 = vweird.f32 %v5355_v57  ;;  %v3605_v23 = vsel %vm3541_vm14, 1.0, %v7486_v41 }
 0x5fe   : > { %v4254_v42 = vsub.f32 1.0, %v4253_v18  ;;  %v3287_v47 = vand.u32 2147483647, %v7491_v34  ;;  %5165 = vmatmul.msk.f32.gmra.mxu0 %vm993_vm3, %v2824_v38  ;;  %v4627_v33 = vmul.f32 %v4251_v3, %v3603_v17  ;;  %vm4259_vm10 = vmor %vm4257_vm8, %vm4258_vm7  ;;  %vm3542_vm4 = vcmp.ge.f32.partialorder %v7472_v55, 0.0 }
 0x5ff   : > { %5360 = vrcp.f32 %v7494_v51  ;;  %v4277_v61 = vand.u32 2147483648, %v7494_v51  ;;  %v4275_v2 = vand.u32 2147483647, %v7494_v51  ;;  %vm4271_vm12 = vweird.f32 %v7494_v51 }
 0x600   : > { %v2753_v54 = vpop.f32.mrf.mxu3  ;;  %v4255_v62 = vmul.f32 %v5355_v57, %v4254_v42  ;;  %v3351_v45 = vsub.f32 0.0, %v3287_v47  ;;  %4691 = vst.msk [vmem:[%s6598_s20 + $0x138] sm:$0xff] %vm516_vm0, %v4627_v33 }
 0x601   : > { %v2754_v37 = vadd.f32 %v7214_v7, %v2753_v54  ;;  %v4278_v50 = vor.u32 1.1754944e-38, %v4277_v61  ;;  %vm4276_vm15 = vcmp.eq.f32.partialorder %v4275_v2, 8.507059e+37 }
 0x602   : > { %v4256_v8 = vadd.f32 %v5355_v57, %v4255_v62  ;;  %v3458_v10 = vmul.f32 1.442695, %v3351_v45  ;;  %v7506_v21 = vpop.eup %5358 }
 0x603   : > { %v2825_v58 = vmax.f32 %v2754_v37, 0.0  ;;  %v3184_v14 = vpop.f32.mrf.mxu0  ;;  %v7510_v59 = vadd.f32 1.0, %v7506_v21  ;;  %v3606_v33 = vsel %vm3542_vm4, 1.0, %v7506_v21  ;;  %v5456_v21 = vld [vmem:[%s7820_s10] ss:$0 sm:$0xff] }
 0x604   : > { %v4260_v16 = vsel %vm4259_vm10, %v5355_v57, %v4256_v8  ;;  %5362 = vpow2.f32 %v3458_v10  ;;  %v7514_v15 = vadd.f32 %v7289_v44, %v3184_v14  ;;  %vm3543_vm10 = vcmp.ge.f32.partialorder %v7491_v34, 0.0 }
 0x605   : > { %v5361_v11 = vpop.eup %5360  ;;  %v4265_v30 = vsel %vm4262_vm11, %v4264_v56, %v4260_v16  ;;  %5364 = vrcp.f32 %v7510_v59  ;;  %v4291_v57 = vand.u32 2147483648, %v7510_v59  ;;  %v4289_v31 = vand.u32 2147483647, %v7510_v59 }
 0x606   : > { %v4628_v27 = vmul.f32 %v4265_v30, %v3604_v49  ;;  %v4267_v28 = vmul.f32 %v5361_v11, %v7494_v51  ;;  %5166 = vmatmul.msk.f32.gmra.mxu0 %vm993_vm3, %v2825_v58  ;;  %v3288_v25 = vand.u32 2147483647, %v7514_v15  ;;  %vm4272_vm5 = vweird.f32 %v5361_v11 }
 0x607   : > { %vm4273_vm13 = vmor %vm4271_vm12, %vm4272_vm5  ;;  %vm4285_vm2 = vweird.f32 %v7510_v59  ;;  %vm4290_vm7 = vcmp.eq.f32.partialorder %v4289_v31, 8.507059e+37  ;;  %vm3544_vm14 = vcmp.ge.f32.partialorder %v7514_v15, 0.0 }
 0x608   : > { %v2756_v1 = vpop.f32.mrf.mxu3  ;;  %4692 = vst.msk [vmem:[%s6598_s20 + $0x140] sm:$0xff] %vm516_vm0, %v4628_v27  ;;  %v4268_v35 = vsub.f32 1.0, %v4267_v28  ;;  %v3352_v52 = vsub.f32 0.0, %v3288_v25 }
 0x609   : > { %v2757_v12 = vadd.f32 %v7214_v7, %v2756_v1 }
 0x60a   : > { %v7524_v13 = vpop.eup %5362  ;;  %v4269_v29 = vmul.f32 %v5361_v11, %v4268_v35  ;;  %v3460_v26 = vmul.f32 1.442695, %v3352_v52 }
 0x60b   : > { %v2826_v20 = vmax.f32 %v2757_v12, 0.0  ;;  %v7528_v36 = vadd.f32 1.0, %v7524_v13  ;;  %v3187_v22 = vpop.f32.mrf.mxu0  ;;  %v5365_v5 = vpop.eup %5364  ;;  %v3607_v25 = vsel %vm3543_vm10, 1.0, %v7524_v13 }
 0x60c   : > { %v4270_v32 = vadd.f32 %v5361_v11, %v4269_v29  ;;  %v7532_v40 = vadd.f32 %v7289_v44, %v3187_v22  ;;  %v4281_v39 = vmul.f32 %v5365_v5, %v7510_v59  ;;  %vm4286_vm1 = vweird.f32 %v5365_v5 }
 0x60d   : > { %5366 = vrcp.f32 %v7528_v36  ;;  %vm4287_vm6 = vmor %vm4285_vm2, %vm4286_vm1  ;;  %v4303_v37 = vand.u32 2147483647, %v7528_v36  ;;  %v4305_v8 = vand.u32 2147483648, %v7528_v36  ;;  %vm4299_vm9 = vweird.f32 %v7528_v36 }
 0x60e   : > { %v4274_v48 = vsel %vm4273_vm13, %v5361_v11, %v4270_v32  ;;  %5368 = vpow2.f32 %v3460_v26  ;;  %5167 = vmatmul.msk.f32.gmra.mxu0 %vm993_vm3, %v2826_v20  ;;  %v4282_v46 = vsub.f32 1.0, %v4281_v39  ;;  %v3289_v6 = vand.u32 2147483647, %v7532_v40 }
 0x60f   : > { %v4279_v24 = vsel %vm4276_vm15, %v4278_v50, %v4274_v48  ;;  %v4306_v49 = vor.u32 1.1754944e-38, %v4305_v8  ;;  %vm4304_vm5 = vcmp.eq.f32.partialorder %v4303_v37, 8.507059e+37  ;;  %vm3545_vm4 = vcmp.ge.f32.partialorder %v7532_v40, 0.0 }
 0x610   : > { %v2759_v4 = vpop.f32.mrf.mxu3  ;;  %v4629_v38 = vmul.f32 %v4279_v24, %v3605_v23  ;;  %v4283_v53 = vmul.f32 %v5365_v5, %v4282_v46  ;;  %v3353_v63 = vsub.f32 0.0, %v3289_v6 }
 0x611   : > { %v2760_v19 = vadd.f32 %v7214_v7, %v2759_v4  ;;  %v4292_v7 = vor.u32 1.1754944e-38, %v4291_v57 }
 0x612   : > { %4693 = vst.msk [vmem:[%s6598_s20 + $0x148] sm:$0xff] %vm516_vm0, %v4629_v38  ;;  %v4284_v43 = vadd.f32 %v5365_v5, %v4283_v53  ;;  %v3462_v41 = vmul.f32 1.442695, %v3353_v63 }
 0x613   : > { %v2827_v60 = vmax.f32 %v2760_v19, 0.0  ;;  %v5367_v18 = vpop.eup %5366  ;;  %v3190_v51 = vpop.f32.mrf.mxu0 }
 0x614   : > { %v7546_v17 = vpop.eup %5368  ;;  %v4295_v3 = vmul.f32 %v5367_v18, %v7528_v36  ;;  %v7551_v42 = vadd.f32 %v7289_v44, %v3190_v51  ;;  %v4288_v47 = vsel %vm4287_vm6, %v5365_v5, %v4284_v43  ;;  %5370 = vpow2.f32 %v3462_v41 }
 0x615   : > { %v3672_v54 = vadd.f32 1.0, %v7546_v17  ;;  %v4293_v0 = vsel %vm4290_vm7, %v4292_v7, %v4288_v47  ;;  %vm4300_vm8 = vweird.f32 %v5367_v18  ;;  %v3608_v46 = vsel %vm3544_vm14, 1.0, %v7546_v17 }
 0x616   : > { %v4296_v9 = vsub.f32 1.0, %v4295_v3  ;;  %v3290_v62 = vand.u32 2147483647, %v7551_v42  ;;  %5168 = vmatmul.msk.f32.gmra.mxu0 %vm993_vm3, %v2827_v60  ;;  %v4630_v45 = vmul.f32 %v4293_v0, %v3606_v33  ;;  %vm4301_vm11 = vmor %vm4299_vm9, %vm4300_vm8  ;;  %vm3546_vm10 = vcmp.ge.f32.partialorder %v7551_v42, 0.0 }
 0x617   : > { %5372 = vrcp.f32 %v3672_v54  ;;  %v4319_v2 = vand.u32 2147483648, %v3672_v54  ;;  %v4317_v13 = vand.u32 2147483647, %v3672_v54 }
 0x618   : > { %v2762_v55 = vpop.f32.mrf.mxu3  ;;  %v4297_v10 = vmul.f32 %v5367_v18, %v4296_v9  ;;  %v3354_v58 = vsub.f32 0.0, %v3290_v62  ;;  %4694 = vst.msk [vmem:[%s6598_s20 + $0x150] sm:$0xff] %vm516_vm0, %v4630_v45 }
 0x619   : > { %v2763_v56 = vadd.f32 %v5456_v21, %v2762_v55  ;;  %v4320_v4 = vor.u32 1.1754944e-38, %v4319_v2  ;;  %vm4318_vm15 = vcmp.eq.f32.partialorder %v4317_v13, 8.507059e+37 }
 0x61a   : > { %v4298_v14 = vadd.f32 %v5367_v18, %v4297_v10  ;;  %v3464_v16 = vmul.f32 1.442695, %v3354_v58  ;;  %v7565_v11 = vpop.eup %5370 }
 0x61b   : > { %v2828_v59 = vmax.f32 %v2763_v56, 0.0  ;;  %v3193_v30 = vpop.f32.mrf.mxu0  ;;  %v3673_v28 = vadd.f32 1.0, %v7565_v11  ;;  %v3609_v33 = vsel %vm3545_vm4, 1.0, %v7565_v11 }
 0x61c   : > { %v4302_v27 = vsel %vm4301_vm11, %v5367_v18, %v4298_v14  ;;  %5374 = vpow2.f32 %v3464_v16  ;;  %v7571_v12 = vadd.f32 %v7289_v44, %v3193_v30  ;;  %v7614_v30 = vld [vmem:[%s7822_s12] ss:$0 sm:$0xff] }
 0x61d   : > { %v5373_v1 = vpop.eup %5372  ;;  %v4307_v35 = vsel %vm4304_vm5, %v4306_v49, %v4302_v27  ;;  %5376 = vrcp.f32 %v3673_v28  ;;  %v4333_v53 = vand.u32 2147483648, %v3673_v28  ;;  %v4331_v63 = vand.u32 2147483647, %v3673_v28 }
 0x61e   : > { %v4631_v61 = vmul.f32 %v4307_v35, %v3607_v25  ;;  %v4309_v52 = vmul.f32 %v5373_v1, %v3672_v54  ;;  %5169 = vmatmul.msk.f32.gmra.mxu0 %vm993_vm3, %v2828_v59  ;;  %v3291_v34 = vand.u32 2147483647, %v7571_v12  ;;  %vm4314_vm12 = vweird.f32 %v5373_v1 }
 0x61f   : > { %vm4313_vm3 = vweird.f32 %v3672_v54  ;;  %vm4327_vm2 = vweird.f32 %v3673_v28  ;;  %v4334_v17 = vor.u32 1.1754944e-38, %v4333_v53  ;;  %vm4332_vm7 = vcmp.eq.f32.partialorder %v4331_v63, 8.507059e+37 }
 0x620   : > { %4695 = vst.msk [vmem:[%s6598_s20 + $0x158] sm:$0xff] %vm516_vm0, %v4631_v61  ;;  %v4310_v29 = vsub.f32 1.0, %v4309_v52  ;;  %v3355_v20 = vsub.f32 0.0, %v3291_v34  ;;  %vm4315_vm13 = vmor %vm4313_vm3, %vm4314_vm12  ;;  %vm3547_vm14 = vcmp.ge.f32.partialorder %v7571_v12, 0.0 }
 0x622   : > { %v7577_v36 = vpop.eup %5374  ;;  %v4311_v26 = vmul.f32 %v5373_v1, %v4310_v29  ;;  %v3466_v5 = vmul.f32 1.442695, %v3355_v20 }
 0x623   : > { %v7580_v22 = vadd.f32 1.0, %v7577_v36  ;;  %v3196_v32 = vpop.f32.mrf.mxu0  ;;  %v5377_v50 = vpop.eup %5376  ;;  %v3610_v11 = vsel %vm3546_vm10, 1.0, %v7577_v36 }
 0x624   : > { %v4312_v39 = vadd.f32 %v5373_v1, %v4311_v26  ;;  %v7583_v48 = vadd.f32 %v7289_v44, %v3196_v32  ;;  %v4323_v23 = vmul.f32 %v5377_v50, %v3673_v28  ;;  %vm4328_vm1 = vweird.f32 %v5377_v50 }
 0x625   : > { %5378 = vrcp.f32 %v7580_v22  ;;  %vm4329_vm6 = vmor %vm4327_vm2, %vm4328_vm1  ;;  %v4347_v55 = vand.u32 2147483648, %v7580_v22  ;;  %vm4341_vm9 = vweird.f32 %v7580_v22 }
 0x626   : > { %v4316_v24 = vsel %vm4315_vm13, %v5373_v1, %v4312_v39  ;;  %5380 = vpow2.f32 %v3466_v5  ;;  %v4324_v38 = vsub.f32 1.0, %v4323_v23  ;;  %v3292_v57 = vand.u32 2147483647, %v7583_v48 }
 0x627   : > { %v4321_v6 = vsel %vm4318_vm15, %v4320_v4, %v4316_v24  ;;  %v4348_v21 = vor.u32 1.1754944e-38, %v4347_v55  ;;  %vm3548_vm4 = vcmp.ge.f32.partialorder %v7583_v48, 0.0 }
 0x628   : > { %v4632_v19 = vmul.f32 %v4321_v6, %v3608_v46  ;;  %v4325_v31 = vmul.f32 %v5377_v50, %v4324_v38  ;;  %v3356_v60 = vsub.f32 0.0, %v3292_v57 }
 0x62a   : > { %4696 = vst.msk [vmem:[%s6598_s20 + $0x160] sm:$0xff] %vm516_vm0, %v4632_v19  ;;  %v4326_v43 = vadd.f32 %v5377_v50, %v4325_v31  ;;  %v3468_v15 = vmul.f32 1.442695, %v3356_v60 }
 0x62b   : > { %v5379_v18 = vpop.eup %5378  ;;  %v3199_v41 = vpop.f32.mrf.mxu0 }
 0x62c   : > { %v7591_v51 = vpop.eup %5380  ;;  %v4337_v7 = vmul.f32 %v5379_v18, %v7580_v22  ;;  %v7596_v3 = vadd.f32 %v7289_v44, %v3199_v41  ;;  %v4330_v47 = vsel %vm4329_vm6, %v5377_v50, %v4326_v43  ;;  %5382 = vpow2.f32 %v3468_v15 }
 0x62d   : > { %v3675_v54 = vadd.f32 1.0, %v7591_v51  ;;  %v4335_v0 = vsel %vm4332_vm7, %v4334_v17, %v4330_v47  ;;  %vm4342_vm8 = vweird.f32 %v5379_v18  ;;  %v4345_v44 = vand.u32 2147483647, %v7580_v22 }
 0x62e   : > { %v4338_v9 = vsub.f32 1.0, %v4337_v7  ;;  %v3293_v62 = vand.u32 2147483647, %v7596_v3  ;;  %v4633_v40 = vmul.f32 %v4335_v0, %v3609_v33  ;;  %vm4343_vm11 = vmor %vm4341_vm9, %vm4342_vm8  ;;  %v3611_v39 = vsel %vm3547_vm14, 1.0, %v7591_v51 }
 0x62f   : > { %5384 = vrcp.f32 %v3675_v54  ;;  %vm4346_vm5 = vcmp.eq.f32.partialorder %v4345_v44, 8.507059e+37  ;;  %v4361_v35 = vand.u32 2147483648, %v3675_v54  ;;  %v4359_v29 = vand.u32 2147483647, %v3675_v54 }
 0x630   : > { %v4339_v45 = vmul.f32 %v5379_v18, %v4338_v9  ;;  %v3357_v37 = vsub.f32 0.0, %v3293_v62  ;;  %4697 = vst.msk [vmem:[%s6598_s20 + $0x168] sm:$0xff] %vm516_vm0, %v4633_v40  ;;  %vm4355_vm3 = vweird.f32 %v3675_v54  ;;  %vm3549_vm10 = vcmp.ge.f32.partialorder %v7596_v3, 0.0 }
 0x631   : > { %v4362_v5 = vor.u32 1.1754944e-38, %v4361_v35  ;;  %vm4360_vm15 = vcmp.eq.f32.partialorder %v4359_v29, 8.507059e+37 }
 0x632   : > { %v4340_v8 = vadd.f32 %v5379_v18, %v4339_v45  ;;  %v3470_v10 = vmul.f32 1.442695, %v3357_v37  ;;  %v7606_v58 = vpop.eup %5382 }
 0x633   : > { %v3202_v56 = vpop.f32.mrf.mxu0  ;;  %v3676_v16 = vadd.f32 1.0, %v7606_v58  ;;  %v3612_v17 = vsel %vm3548_vm4, 1.0, %v7606_v58 }
 0x634   : > { %v4344_v14 = vsel %vm4343_vm11, %v5379_v18, %v4340_v8  ;;  %5386 = vpow2.f32 %v3470_v10  ;;  %v7617_v42 = vadd.f32 %v7614_v30, %v3202_v56 }
 0x635   : > { %v5385_v59 = vpop.eup %5384  ;;  %v4349_v49 = vsel %vm4346_vm5, %v4348_v21, %v4344_v14  ;;  %5388 = vrcp.f32 %v3676_v16  ;;  %v4375_v6 = vand.u32 2147483648, %v3676_v16  ;;  %v4373_v57 = vand.u32 2147483647, %v3676_v16 }
 0x636   : > { %v4634_v27 = vmul.f32 %v4349_v49, %v3610_v11  ;;  %v4351_v28 = vmul.f32 %v5385_v59, %v3675_v54  ;;  %v3294_v1 = vand.u32 2147483647, %v7617_v42  ;;  %vm4356_vm12 = vweird.f32 %v5385_v59 }
 0x637   : > { %vm4357_vm13 = vmor %vm4355_vm3, %vm4356_vm12  ;;  %vm4369_vm2 = vweird.f32 %v3676_v16  ;;  %v4376_v18 = vor.u32 1.1754944e-38, %v4375_v6  ;;  %vm4374_vm7 = vcmp.eq.f32.partialorder %v4373_v57, 8.507059e+37  ;;  %vm3550_vm14 = vcmp.ge.f32.partialorder %v7617_v42, 0.0 }
 0x638   : > { %4698 = vst.msk [vmem:[%s6598_s20 + $0x170] sm:$0xff] %vm516_vm0, %v4634_v27  ;;  %v4352_v25 = vsub.f32 1.0, %v4351_v28  ;;  %v3358_v61 = vsub.f32 0.0, %v3294_v1 }
 0x63a   : > { %v7622_v52 = vpop.eup %5386  ;;  %v4353_v34 = vmul.f32 %v5385_v59, %v4352_v25  ;;  %v3472_v20 = vmul.f32 1.442695, %v3358_v61 }
 0x63b   : > { %v7625_v2 = vadd.f32 1.0, %v7622_v52  ;;  %v3205_v36 = vpop.f32.mrf.mxu0  ;;  %v5389_v26 = vpop.eup %5388  ;;  %v3613_v21 = vsel %vm3549_vm10, 1.0, %v7622_v52 }
 0x63c   : > { %v4354_v13 = vadd.f32 %v5385_v59, %v4353_v34  ;;  %v7628_v22 = vadd.f32 %v7614_v30, %v3205_v36  ;;  %v4365_v32 = vmul.f32 %v5389_v26, %v3676_v16  ;;  %vm4370_vm1 = vweird.f32 %v5389_v26 }
 0x63d   : > { %5390 = vrcp.f32 %v7625_v2  ;;  %vm4371_vm6 = vmor %vm4369_vm2, %vm4370_vm1  ;;  %v4389_v33 = vand.u32 2147483648, %v7625_v2  ;;  %v4387_v9 = vand.u32 2147483647, %v7625_v2  ;;  %vm4383_vm9 = vweird.f32 %v7625_v2 }
 0x63e   : > { %v4358_v50 = vsel %vm4357_vm13, %v5385_v59, %v4354_v13  ;;  %5392 = vpow2.f32 %v3472_v20  ;;  %v4366_v23 = vsub.f32 1.0, %v4365_v32  ;;  %v3295_v24 = vand.u32 2147483647, %v7628_v22 }
 0x63f   : > { %v4363_v4 = vsel %vm4360_vm15, %v4362_v5, %v4358_v50  ;;  %v4390_v44 = vor.u32 1.1754944e-38, %v4389_v33  ;;  %vm4388_vm5 = vcmp.eq.f32.partialorder %v4387_v9, 8.507059e+37  ;;  %vm3551_vm4 = vcmp.ge.f32.partialorder %v7628_v22, 0.0 }
 0x640   : > { %v4635_v46 = vmul.f32 %v4363_v4, %v3611_v39  ;;  %v4367_v38 = vmul.f32 %v5389_v26, %v4366_v23  ;;  %v3359_v19 = vsub.f32 0.0, %v3295_v24 }
 0x642   : > { %4699 = vst.msk [vmem:[%s6598_s20 + $0x178] sm:$0xff] %vm516_vm0, %v4635_v46  ;;  %v4368_v31 = vadd.f32 %v5389_v26, %v4367_v38  ;;  %v3474_v12 = vmul.f32 1.442695, %v3359_v19 }
 0x643   : > { %v5391_v53 = vpop.eup %5390  ;;  %v3208_v63 = vpop.f32.mrf.mxu0 }
 0x644   : > { %v7636_v60 = vpop.eup %5392  ;;  %v4379_v43 = vmul.f32 %v5391_v53, %v7625_v2  ;;  %v7641_v15 = vadd.f32 %v7614_v30, %v3208_v63  ;;  %v4372_v41 = vsel %vm4371_vm6, %v5389_v26, %v4368_v31  ;;  %5394 = vpow2.f32 %v3474_v12 }
 0x645   : > { %v3678_v51 = vadd.f32 1.0, %v7636_v60  ;;  %v4377_v7 = vsel %vm4374_vm7, %v4376_v18, %v4372_v41  ;;  %vm4384_vm8 = vweird.f32 %v5391_v53  ;;  %v3614_v13 = vsel %vm3550_vm14, 1.0, %v7636_v60 }
 0x646   : > { %v4380_v47 = vsub.f32 1.0, %v4379_v43  ;;  %v3296_v54 = vand.u32 2147483647, %v7641_v15  ;;  %v4636_v48 = vmul.f32 %v4377_v7, %v3612_v17  ;;  %vm4385_vm11 = vmor %vm4383_vm9, %vm4384_vm8  ;;  %vm3552_vm10 = vcmp.ge.f32.partialorder %v7641_v15, 0.0 }
 0x647   : > { %5396 = vrcp.f32 %v3678_v51  ;;  %v4403_v49 = vand.u32 2147483648, %v3678_v51  ;;  %v4401_v25 = vand.u32 2147483647, %v3678_v51  ;;  %vm4397_vm3 = vweird.f32 %v3678_v51 }
 0x648   : > { %v4381_v0 = vmul.f32 %v5391_v53, %v4380_v47  ;;  %v3360_v62 = vsub.f32 0.0, %v3296_v54  ;;  %4700 = vst.msk [vmem:[%s6598_s20 + $0x180] sm:$0xff] %vm516_vm0, %v4636_v48 }
 0x649   : > { %v4404_v20 = vor.u32 1.1754944e-38, %v4403_v49  ;;  %vm4402_vm15 = vcmp.eq.f32.partialorder %v4401_v25, 8.507059e+37 }
 0x64a   : > { %v4382_v40 = vadd.f32 %v5391_v53, %v4381_v0  ;;  %v3476_v55 = vmul.f32 1.442695, %v3360_v62  ;;  %v7651_v45 = vpop.eup %5394 }
 0x64b   : > { %v3211_v37 = vpop.f32.mrf.mxu0  ;;  %v3679_v10 = vadd.f32 1.0, %v7651_v45  ;;  %v3615_v18 = vsel %vm3551_vm4, 1.0, %v7651_v45 }
 0x64c   : > { %v4386_v8 = vsel %vm4385_vm11, %v5391_v53, %v4382_v40  ;;  %5398 = vpow2.f32 %v3476_v55  ;;  %v7657_v14 = vadd.f32 %v7614_v30, %v3211_v37 }
 0x64d   : > { %v5397_v58 = vpop.eup %5396  ;;  %v4391_v56 = vsel %vm4388_vm5, %v4390_v44, %v4386_v8  ;;  %5400 = vrcp.f32 %v3679_v10  ;;  %v4417_v4 = vand.u32 2147483648, %v3679_v10  ;;  %v4415_v24 = vand.u32 2147483647, %v3679_v10 }
 0x64e   : > { %v4637_v16 = vmul.f32 %v4391_v56, %v3613_v21  ;;  %v4393_v59 = vmul.f32 %v5397_v58, %v3678_v51  ;;  %v3297_v3 = vand.u32 2147483647, %v7657_v14  ;;  %vm4398_vm12 = vweird.f32 %v5397_v58 }
 0x64f   : > { %vm4399_vm13 = vmor %vm4397_vm3, %vm4398_vm12  ;;  %vm4411_vm2 = vweird.f32 %v3679_v10  ;;  %v4418_v53 = vor.u32 1.1754944e-38, %v4417_v4  ;;  %vm4416_vm7 = vcmp.eq.f32.partialorder %v4415_v24, 8.507059e+37  ;;  %vm3553_vm14 = vcmp.ge.f32.partialorder %v7657_v14, 0.0 }
 0x650   : > { %4701 = vst.msk [vmem:[%s6598_s20 + $0x188] sm:$0xff] %vm516_vm0, %v4637_v16  ;;  %v4394_v11 = vsub.f32 1.0, %v4393_v59  ;;  %v3361_v27 = vsub.f32 0.0, %v3297_v3 }
 0x652   : > { %v7662_v28 = vpop.eup %5398  ;;  %v4395_v1 = vmul.f32 %v5397_v58, %v4394_v11  ;;  %v3478_v61 = vmul.f32 1.442695, %v3361_v27 }
 0x653   : > { %v7665_v35 = vadd.f32 1.0, %v7662_v28  ;;  %v3214_v52 = vpop.f32.mrf.mxu0  ;;  %v5401_v34 = vpop.eup %5400  ;;  %v3616_v44 = vsel %vm3552_vm10, 1.0, %v7662_v28 }
 0x654   : > { %v4396_v29 = vadd.f32 %v5397_v58, %v4395_v1  ;;  %v7668_v2 = vadd.f32 %v7614_v30, %v3214_v52  ;;  %v4407_v36 = vmul.f32 %v5401_v34, %v3679_v10  ;;  %vm4412_vm1 = vweird.f32 %v5401_v34 }
 0x655   : > { %5402 = vrcp.f32 %v7665_v35  ;;  %vm4413_vm6 = vmor %vm4411_vm2, %vm4412_vm1  ;;  %v4431_v17 = vand.u32 2147483648, %v7665_v35  ;;  %v4429_v47 = vand.u32 2147483647, %v7665_v35  ;;  %vm4425_vm9 = vweird.f32 %v7665_v35 }
 0x656   : > { %v4400_v26 = vsel %vm4399_vm13, %v5397_v58, %v4396_v29  ;;  %5404 = vpow2.f32 %v3478_v61  ;;  %v4408_v32 = vsub.f32 1.0, %v4407_v36  ;;  %v3298_v50 = vand.u32 2147483647, %v7668_v2 }
 0x657   : > { %v4405_v5 = vsel %vm4402_vm15, %v4404_v20, %v4400_v26  ;;  %v4432_v9 = vor.u32 1.1754944e-38, %v4431_v17  ;;  %vm4430_vm5 = vcmp.eq.f32.partialorder %v4429_v47, 8.507059e+37  ;;  %vm3554_vm4 = vcmp.ge.f32.partialorder %v7668_v2, 0.0 }
 0x658   : > { %v4638_v39 = vmul.f32 %v4405_v5, %v3614_v13  ;;  %v4409_v23 = vmul.f32 %v5401_v34, %v4408_v32  ;;  %v3362_v46 = vsub.f32 0.0, %v3298_v50 }
 0x65a   : > { %4702 = vst.msk [vmem:[%s6598_s20 + $0x190] sm:$0xff] %vm516_vm0, %v4638_v39  ;;  %v4410_v38 = vadd.f32 %v5401_v34, %v4409_v23  ;;  %v3480_v42 = vmul.f32 1.442695, %v3362_v46 }
 0x65b   : > { %v5403_v6 = vpop.eup %5402  ;;  %v3217_v57 = vpop.f32.mrf.mxu0 }
 0x65c   : > { %v7676_v19 = vpop.eup %5404  ;;  %v4421_v31 = vmul.f32 %v5403_v6, %v7665_v35  ;;  %v7681_v12 = vadd.f32 %v7614_v30, %v3217_v57  ;;  %v4414_v63 = vsel %vm4413_vm6, %v5401_v34, %v4410_v38  ;;  %5406 = vpow2.f32 %v3480_v42 }
 0x65d   : > { %v3681_v60 = vadd.f32 1.0, %v7676_v19  ;;  %v4419_v43 = vsel %vm4416_vm7, %v4418_v53, %v4414_v63  ;;  %vm4426_vm8 = vweird.f32 %v5403_v6  ;;  %v3617_v29 = vsel %vm3553_vm14, 1.0, %v7676_v19 }
 0x65e   : > { %v4422_v41 = vsub.f32 1.0, %v4421_v31  ;;  %v3299_v51 = vand.u32 2147483647, %v7681_v12  ;;  %v4639_v22 = vmul.f32 %v4419_v43, %v3615_v18  ;;  %vm4427_vm11 = vmor %vm4425_vm9, %vm4426_vm8  ;;  %vm3555_vm10 = vcmp.ge.f32.partialorder %v7681_v12, 0.0 }
 0x65f   : > { %5408 = vrcp.f32 %v3681_v60  ;;  %v4445_v56 = vand.u32 2147483648, %v3681_v60  ;;  %v4443_v11 = vand.u32 2147483647, %v3681_v60  ;;  %vm4439_vm3 = vweird.f32 %v3681_v60 }
 0x660   : > { %v4423_v7 = vmul.f32 %v5403_v6, %v4422_v41  ;;  %v3363_v54 = vsub.f32 0.0, %v3299_v51  ;;  %4703 = vst.msk [vmem:[%s6598_s20 + $0x198] sm:$0xff] %vm516_vm0, %v4639_v22 }
 0x661   : > { %v4446_v61 = vor.u32 1.1754944e-38, %v4445_v56  ;;  %vm4444_vm15 = vcmp.eq.f32.partialorder %v4443_v11, 8.507059e+37 }
 0x662   : > { %v4424_v48 = vadd.f32 %v5403_v6, %v4423_v7  ;;  %v3482_v33 = vmul.f32 1.442695, %v3363_v54  ;;  %v7691_v0 = vpop.eup %5406 }
 0x663   : > { %v3220_v62 = vpop.f32.mrf.mxu0  ;;  %v3682_v55 = vadd.f32 1.0, %v7691_v0  ;;  %v3618_v53 = vsel %vm3554_vm4, 1.0, %v7691_v0 }
 0x664   : > { %v4428_v40 = vsel %vm4427_vm11, %v5403_v6, %v4424_v48  ;;  %5410 = vpow2.f32 %v3482_v33  ;;  %v7697_v8 = vadd.f32 %v7614_v30, %v3220_v62 }
 0x665   : > { %v5409_v45 = vpop.eup %5408  ;;  %v4433_v37 = vsel %vm4430_vm5, %v4432_v9, %v4428_v40  ;;  %5412 = vrcp.f32 %v3682_v55  ;;  %v4459_v5 = vand.u32 2147483648, %v3682_v55  ;;  %v4457_v50 = vand.u32 2147483647, %v3682_v55 }
 0x666   : > { %v4640_v10 = vmul.f32 %v4433_v37, %v3616_v44  ;;  %v4435_v58 = vmul.f32 %v5409_v45, %v3681_v60  ;;  %v3300_v15 = vand.u32 2147483647, %v7697_v8  ;;  %vm4440_vm12 = vweird.f32 %v5409_v45 }
 0x667   : > { %vm4441_vm13 = vmor %vm4439_vm3, %vm4440_vm12  ;;  %vm4453_vm2 = vweird.f32 %v3682_v55  ;;  %v4460_v6 = vor.u32 1.1754944e-38, %v4459_v5  ;;  %vm4458_vm7 = vcmp.eq.f32.partialorder %v4457_v50, 8.507059e+37  ;;  %vm3556_vm14 = vcmp.ge.f32.partialorder %v7697_v8, 0.0 }
 0x668   : > { %4704 = vst.msk [vmem:[%s6598_s20 + $0x1a0] sm:$0xff] %vm516_vm0, %v4640_v10  ;;  %v4436_v21 = vsub.f32 1.0, %v4435_v58  ;;  %v3364_v16 = vsub.f32 0.0, %v3300_v15 }
 0x66a   : > { %v7702_v59 = vpop.eup %5410  ;;  %v4437_v3 = vmul.f32 %v5409_v45, %v4436_v21  ;;  %v3484_v27 = vmul.f32 1.442695, %v3364_v16 }
 0x66b   : > { %v7705_v49 = vadd.f32 1.0, %v7702_v59  ;;  %v3223_v28 = vpop.f32.mrf.mxu0  ;;  %v5413_v1 = vpop.eup %5412  ;;  %v3619_v9 = vsel %vm3555_vm10, 1.0, %v7702_v59 }
 0x66c   : > { %v4438_v25 = vadd.f32 %v5409_v45, %v4437_v3  ;;  %v7708_v35 = vadd.f32 %v7614_v30, %v3223_v28  ;;  %v4449_v52 = vmul.f32 %v5413_v1, %v3682_v55  ;;  %vm4454_vm1 = vweird.f32 %v5413_v1 }
 0x66d   : > { %5414 = vrcp.f32 %v7705_v49  ;;  %vm4455_vm6 = vmor %vm4453_vm2, %vm4454_vm1  ;;  %v4473_v18 = vand.u32 2147483648, %v7705_v49  ;;  %v4471_v41 = vand.u32 2147483647, %v7705_v49  ;;  %vm4467_vm9 = vweird.f32 %v7705_v49 }
 0x66e   : > { %v4442_v34 = vsel %vm4441_vm13, %v5409_v45, %v4438_v25  ;;  %5416 = vpow2.f32 %v3484_v27  ;;  %v4450_v36 = vsub.f32 1.0, %v4449_v52  ;;  %v3301_v26 = vand.u32 2147483647, %v7708_v35 }
 0x66f   : > { %v4447_v20 = vsel %vm4444_vm15, %v4446_v61, %v4442_v34  ;;  %v4474_v47 = vor.u32 1.1754944e-38, %v4473_v18  ;;  %vm4472_vm5 = vcmp.eq.f32.partialorder %v4471_v41, 8.507059e+37  ;;  %vm3557_vm4 = vcmp.ge.f32.partialorder %v7708_v35, 0.0 }
 0x670   : > { %v4641_v13 = vmul.f32 %v4447_v20, %v3617_v29  ;;  %v4451_v32 = vmul.f32 %v5413_v1, %v4450_v36  ;;  %v3365_v39 = vsub.f32 0.0, %v3301_v26 }
 0x672   : > { %4705 = vst.msk [vmem:[%s6598_s20 + $0x1a8] sm:$0xff] %vm516_vm0, %v4641_v13  ;;  %v4452_v23 = vadd.f32 %v5413_v1, %v4451_v32  ;;  %v3486_v14 = vmul.f32 1.442695, %v3365_v39 }
 0x673   : > { %v5415_v4 = vpop.eup %5414  ;;  %v3226_v24 = vpop.f32.mrf.mxu0 }
 0x674   : > { %v7716_v46 = vpop.eup %5416  ;;  %v4463_v38 = vmul.f32 %v5415_v4, %v7705_v49  ;;  %v7721_v42 = vadd.f32 %v7614_v30, %v3226_v24  ;;  %v4456_v57 = vsel %vm4455_vm6, %v5413_v1, %v4452_v23  ;;  %5418 = vpow2.f32 %v3486_v14 }
 0x675   : > { %v3684_v19 = vadd.f32 1.0, %v7716_v46  ;;  %v4461_v31 = vsel %vm4458_vm7, %v4460_v6, %v4456_v57  ;;  %vm4468_vm8 = vweird.f32 %v5415_v4  ;;  %v3620_v25 = vsel %vm3556_vm14, 1.0, %v7716_v46 }
 0x676   : > { %v4464_v63 = vsub.f32 1.0, %v4463_v38  ;;  %v3302_v60 = vand.u32 2147483647, %v7721_v42  ;;  %v4642_v2 = vmul.f32 %v4461_v31, %v3618_v53  ;;  %vm4469_vm11 = vmor %vm4467_vm9, %vm4468_vm8  ;;  %vm3558_vm10 = vcmp.ge.f32.partialorder %v7721_v42, 0.0 }
 0x677   : > { %5420 = vrcp.f32 %v3684_v19  ;;  %v4487_v37 = vand.u32 2147483648, %v3684_v19  ;;  %v4485_v21 = vand.u32 2147483647, %v3684_v19  ;;  %vm4481_vm3 = vweird.f32 %v3684_v19 }
 0x678   : > { %v4465_v43 = vmul.f32 %v5415_v4, %v4464_v63  ;;  %v3366_v51 = vsub.f32 0.0, %v3302_v60  ;;  %4706 = vst.msk [vmem:[%s6598_s20 + $0x1b0] sm:$0xff] %vm516_vm0, %v4642_v2 }
 0x679   : > { %v4488_v27 = vor.u32 1.1754944e-38, %v4487_v37  ;;  %vm4486_vm15 = vcmp.eq.f32.partialorder %v4485_v21, 8.507059e+37 }
 0x67a   : > { %v4466_v22 = vadd.f32 %v5415_v4, %v4465_v43  ;;  %v3488_v17 = vmul.f32 1.442695, %v3366_v51  ;;  %v7731_v7 = vpop.eup %5418 }
 0x67b   : > { %v3229_v54 = vpop.f32.mrf.mxu0  ;;  %v3685_v33 = vadd.f32 1.0, %v7731_v7  ;;  %v3621_v6 = vsel %vm3557_vm4, 1.0, %v7731_v7 }
 0x67c   : > { %v4470_v48 = vsel %vm4469_vm11, %v5415_v4, %v4466_v22  ;;  %5422 = vpow2.f32 %v3488_v17  ;;  %v7737_v40 = vadd.f32 %v7614_v30, %v3229_v54 }
 0x67d   : > { %v5421_v0 = vpop.eup %5420  ;;  %v4475_v62 = vsel %vm4472_vm5, %v4474_v47, %v4470_v48  ;;  %5424 = vrcp.f32 %v3685_v33  ;;  %v4501_v20 = vand.u32 2147483648, %v3685_v33  ;;  %v4499_v26 = vand.u32 2147483647, %v3685_v33 }
 0x67e   : > { %v4643_v55 = vmul.f32 %v4475_v62, %v3619_v9  ;;  %v4477_v45 = vmul.f32 %v5421_v0, %v3684_v19  ;;  %v3303_v12 = vand.u32 2147483647, %v7737_v40  ;;  %vm4482_vm12 = vweird.f32 %v5421_v0 }
 0x67f   : > { %vm4483_vm13 = vmor %vm4481_vm3, %vm4482_vm12  ;;  %vm4495_vm2 = vweird.f32 %v3685_v33  ;;  %v4502_v4 = vor.u32 1.1754944e-38, %v4501_v20  ;;  %vm4500_vm7 = vcmp.eq.f32.partialorder %v4499_v26, 8.507059e+37  ;;  %vm3559_vm14 = vcmp.ge.f32.partialorder %v7737_v40, 0.0 }
 0x680   : > { %4707 = vst.msk [vmem:[%s6598_s20 + $0x1b8] sm:$0xff] %vm516_vm0, %v4643_v55  ;;  %v4478_v44 = vsub.f32 1.0, %v4477_v45  ;;  %v3367_v10 = vsub.f32 0.0, %v3303_v12 }
 0x682   : > { %v7742_v58 = vpop.eup %5422  ;;  %v4479_v15 = vmul.f32 %v5421_v0, %v4478_v44  ;;  %v3490_v16 = vmul.f32 1.442695, %v3367_v10 }
 0x683   : > { %v7745_v56 = vadd.f32 1.0, %v7742_v58  ;;  %v3232_v59 = vpop.f32.mrf.mxu0  ;;  %v5425_v3 = vpop.eup %5424  ;;  %v3622_v47 = vsel %vm3558_vm10, 1.0, %v7742_v58 }
 0x684   : > { %v4480_v11 = vadd.f32 %v5421_v0, %v4479_v15  ;;  %v7748_v49 = vadd.f32 %v7614_v30, %v3232_v59  ;;  %v4491_v28 = vmul.f32 %v5425_v3, %v3685_v33  ;;  %vm4496_vm1 = vweird.f32 %v5425_v3 }
 0x685   : > { %5426 = vrcp.f32 %v7745_v56  ;;  %vm4497_vm6 = vmor %vm4495_vm2, %vm4496_vm1  ;;  %v4515_v53 = vand.u32 2147483648, %v7745_v56  ;;  %v4513_v63 = vand.u32 2147483647, %v7745_v56  ;;  %vm4509_vm9 = vweird.f32 %v7745_v56 }
 0x686   : > { %v4484_v1 = vsel %vm4483_vm13, %v5421_v0, %v4480_v11  ;;  %5428 = vpow2.f32 %v3490_v16  ;;  %v4492_v52 = vsub.f32 1.0, %v4491_v28  ;;  %v3304_v34 = vand.u32 2147483647, %v7748_v49 }
 0x687   : > { %v4489_v61 = vsel %vm4486_vm15, %v4488_v27, %v4484_v1  ;;  %v4516_v41 = vor.u32 1.1754944e-38, %v4515_v53  ;;  %vm4514_vm5 = vcmp.eq.f32.partialorder %v4513_v63, 8.507059e+37  ;;  %vm3560_vm4 = vcmp.ge.f32.partialorder %v7748_v49, 0.0 }
 0x688   : > { %v4644_v29 = vmul.f32 %v4489_v61, %v3620_v25  ;;  %v4493_v36 = vmul.f32 %v5425_v3, %v4492_v52  ;;  %v3368_v13 = vsub.f32 0.0, %v3304_v34 }
 0x68a   : > { %4708 = vst.msk [vmem:[%s6598_s20 + $0x1c0] sm:$0xff] %vm516_vm0, %v4644_v29  ;;  %v4494_v32 = vadd.f32 %v5425_v3, %v4493_v36  ;;  %v3492_v8 = vmul.f32 1.442695, %v3368_v13 }
 0x68b   : > { %v5427_v5 = vpop.eup %5426  ;;  %v3235_v50 = vpop.f32.mrf.mxu0 }
 0x68c   : > { %v7756_v39 = vpop.eup %5428  ;;  %v4505_v23 = vmul.f32 %v5427_v5, %v7745_v56  ;;  %v7761_v14 = vadd.f32 %v7614_v30, %v3235_v50  ;;  %v4498_v24 = vsel %vm4497_vm6, %v5425_v3, %v4494_v32  ;;  %5430 = vpow2.f32 %v3492_v8 }
 0x68d   : > { %v3687_v46 = vadd.f32 1.0, %v7756_v39  ;;  %v4503_v38 = vsel %vm4500_vm7, %v4502_v4, %v4498_v24  ;;  %vm4510_vm8 = vweird.f32 %v5427_v5  ;;  %v3623_v11 = vsel %vm3559_vm14, 1.0, %v7756_v39 }
 0x68e   : > { %v4506_v57 = vsub.f32 1.0, %v4505_v23  ;;  %v3305_v19 = vand.u32 2147483647, %v7761_v14  ;;  %v4645_v35 = vmul.f32 %v4503_v38, %v3621_v6  ;;  %vm4511_vm11 = vmor %vm4509_vm9, %vm4510_vm8 }
 0x68f   : > { %5432 = vrcp.f32 %v3687_v46  ;;  %v4529_v62 = vand.u32 2147483648, %v3687_v46  ;;  %v4527_v44 = vand.u32 2147483647, %v3687_v46  ;;  %vm4523_vm3 = vweird.f32 %v3687_v46 }
 0x690   : > { %v4507_v31 = vmul.f32 %v5427_v5, %v4506_v57  ;;  %v3369_v60 = vsub.f32 0.0, %v3305_v19  ;;  %4709 = vst.msk [vmem:[%s6598_s20 + $0x1c8] sm:$0xff] %vm516_vm0, %v4645_v35 }
 0x691   : > { %v4530_v16 = vor.u32 1.1754944e-38, %v4529_v62  ;;  %vm4528_vm15 = vcmp.eq.f32.partialorder %v4527_v44, 8.507059e+37 }
 0x692   : > { %v4508_v2 = vadd.f32 %v5427_v5, %v4507_v31  ;;  %v3494_v18 = vmul.f32 1.442695, %v3369_v60  ;;  %v7771_v43 = vpop.eup %5430 }
 0x693   : > { %v3238_v51 = vpop.f32.mrf.mxu0  ;;  %v3688_v17 = vadd.f32 1.0, %v7771_v43  ;;  %v3624_v8 = vsel %vm3560_vm4, 1.0, %v7771_v43 }
 0x694   : > { %v4512_v22 = vsel %vm4511_vm11, %v5427_v5, %v4508_v2  ;;  %5434 = vpow2.f32 %v3494_v18  ;;  %v7777_v48 = vadd.f32 %v7614_v30, %v3238_v51  ;;  %vm3561_vm11 = vcmp.ge.f32.partialorder %v7761_v14, 0.0 }
 0x695   : > { %v5433_v7 = vpop.eup %5432  ;;  %v4517_v54 = vsel %vm4514_vm5, %v4516_v41, %v4512_v22  ;;  %5436 = vrcp.f32 %v3688_v17  ;;  %v4543_v61 = vand.u32 2147483648, %v3688_v17  ;;  %v4541_v52 = vand.u32 2147483647, %v3688_v17 }
 0x696   : > { %v4646_v33 = vmul.f32 %v4517_v54, %v3622_v47  ;;  %v4519_v0 = vmul.f32 %v5433_v7, %v3687_v46  ;;  %v3306_v42 = vand.u32 2147483647, %v7777_v48  ;;  %vm4524_vm12 = vweird.f32 %v5433_v7 }
 0x697   : > { %vm4525_vm13 = vmor %vm4523_vm3, %vm4524_vm12  ;;  %vm4537_vm2 = vweird.f32 %v3688_v17  ;;  %v4544_v26 = vor.u32 1.1754944e-38, %v4543_v61  ;;  %vm4542_vm7 = vcmp.eq.f32.partialorder %v4541_v52, 8.507059e+37  ;;  %vm3562_vm14 = vcmp.ge.f32.partialorder %v7777_v48, 0.0 }
 0x698   : > { %4710 = vst.msk [vmem:[%s6598_s20 + $0x1d0] sm:$0xff] %vm516_vm0, %v4646_v33  ;;  %v4520_v9 = vsub.f32 1.0, %v4519_v0  ;;  %v3370_v55 = vsub.f32 0.0, %v3306_v42 }
 0x69a   : > { %v7782_v45 = vpop.eup %5434  ;;  %v4521_v12 = vmul.f32 %v5433_v7, %v4520_v9  ;;  %v3496_v10 = vmul.f32 1.442695, %v3370_v55 }
 0x69b   : > { %v3689_v37 = vadd.f32 1.0, %v7782_v45  ;;  %v3241_v58 = vpop.f32.mrf.mxu0  ;;  %v5437_v15 = vpop.eup %5436  ;;  %v3625_v53 = vsel %vm3561_vm11, 1.0, %v7782_v45 }
 0x69c   : > { %v4522_v21 = vadd.f32 %v5433_v7, %v4521_v12  ;;  %v7786_v56 = vadd.f32 %v7614_v30, %v3241_v58  ;;  %v4533_v59 = vmul.f32 %v5437_v15, %v3688_v17  ;;  %vm4538_vm1 = vweird.f32 %v5437_v15 }
 0x69d   : > { %5438 = vrcp.f32 %v3689_v37  ;;  %vm4539_vm6 = vmor %vm4537_vm2, %vm4538_vm1  ;;  %v4557_v23 = vand.u32 2147483648, %v3689_v37  ;;  %v4555_v46 = vand.u32 2147483647, %v3689_v37  ;;  %vm4551_vm9 = vweird.f32 %v3689_v37 }
 0x69e   : > { %v4526_v3 = vsel %vm4525_vm13, %v5433_v7, %v4522_v21  ;;  %5440 = vpow2.f32 %v3496_v10  ;;  %v4534_v28 = vsub.f32 1.0, %v4533_v59  ;;  %v3307_v1 = vand.u32 2147483647, %v7786_v56 }
 0x69f   : > { %v4531_v27 = vsel %vm4528_vm15, %v4530_v16, %v4526_v3  ;;  %v4558_v38 = vor.u32 1.1754944e-38, %v4557_v23  ;;  %vm4556_vm5 = vcmp.eq.f32.partialorder %v4555_v46, 8.507059e+37 }
 0x6a0   : > { %v4647_v25 = vmul.f32 %v4531_v27, %v3623_v11  ;;  %v4535_v30 = vmul.f32 %v5437_v15, %v4534_v28  ;;  %v3371_v34 = vsub.f32 0.0, %v3307_v1 }
 0x6a2   : > { %4711 = vst.msk [vmem:[%s6598_s20 + $0x1d8] sm:$0xff] %vm516_vm0, %v4647_v25  ;;  %v4536_v20 = vadd.f32 %v5437_v15, %v4535_v30  ;;  %v3498_v40 = vmul.f32 1.442695, %v3371_v34 }
 0x6a3   : > { %v5439_v29 = vpop.eup %5438 }
 0x6a4   : > { %v5441_v36 = vpop.eup %5440  ;;  %v4547_v13 = vmul.f32 %v5439_v29, %v3689_v37  ;;  %v4540_v5 = vsel %vm4539_vm6, %v5437_v15, %v4536_v20  ;;  %5442 = vpow2.f32 %v3498_v40  ;;  %vm4552_vm8 = vweird.f32 %v5439_v29 }
 0x6a5   : > { %v3690_v32 = vadd.f32 1.0, %v5441_v36  ;;  %v4545_v50 = vsel %vm4542_vm7, %v4544_v26, %v4540_v5  ;;  %vm4553_vm10 = vmor %vm4551_vm9, %vm4552_vm8  ;;  %v3626_v47 = vsel %vm3562_vm14, 1.0, %v5441_v36  ;;  %vm3563_vm6 = vcmp.ge.f32.partialorder %v7786_v56, 0.0 }
 0x6a6   : > { %v4548_v39 = vsub.f32 1.0, %v4547_v13  ;;  %v4648_v4 = vmul.f32 %v4545_v50, %v3624_v8 }
 0x6a7   : > { %5444 = vrcp.f32 %v3690_v32  ;;  %v4571_v18 = vand.u32 2147483648, %v3690_v32  ;;  %v4569_v41 = vand.u32 2147483647, %v3690_v32  ;;  %vm4565_vm3 = vweird.f32 %v3690_v32 }
 0x6a8   : > { %v4549_v24 = vmul.f32 %v5439_v29, %v4548_v39  ;;  %4712 = vst.msk [vmem:[%s6598_s20 + $0x1e0] sm:$0xff] %vm516_vm0, %v4648_v4 }
 0x6a9   : > { %v4572_v14 = vor.u32 1.1754944e-38, %v4571_v18  ;;  %vm4570_vm15 = vcmp.eq.f32.partialorder %v4569_v41, 8.507059e+37 }
 0x6aa   : > { %v4550_v49 = vadd.f32 %v5439_v29, %v4549_v24  ;;  %v5443_v6 = vpop.eup %5442 }
 0x6ab   : > { %v3691_v19 = vadd.f32 1.0, %v5443_v6  ;;  %v3627_v12 = vsel %vm3563_vm6, 1.0, %v5443_v6 }
 0x6ac   : > { %v4554_v57 = vsel %vm4553_vm10, %v5439_v29, %v4550_v49 }
 0x6ad   : > { %v5445_v35 = vpop.eup %5444  ;;  %v4559_v31 = vsel %vm4556_vm5, %v4558_v38, %v4554_v57  ;;  %5446 = vrcp.f32 %v3691_v19  ;;  %v4585_v42 = vand.u32 2147483648, %v3691_v19  ;;  %v4583_v62 = vand.u32 2147483647, %v3691_v19 }
 0x6ae   : > { %v4649_v63 = vmul.f32 %v4559_v31, %v3625_v53  ;;  %v4561_v60 = vmul.f32 %v5445_v35, %v3690_v32  ;;  %vm4566_vm12 = vweird.f32 %v5445_v35  ;;  %vm4579_vm2 = vweird.f32 %v3691_v19 }
 0x6af   : > { %vm4567_vm13 = vmor %vm4565_vm3, %vm4566_vm12  ;;  %v4586_v45 = vor.u32 1.1754944e-38, %v4585_v42  ;;  %vm4584_vm7 = vcmp.eq.f32.partialorder %v4583_v62, 8.507059e+37 }
 0x6b0   : > { %4713 = vst.msk [vmem:[%s6598_s20 + $0x1e8] sm:$0xff] %vm516_vm0, %v4649_v63  ;;  %v4562_v2 = vsub.f32 1.0, %v4561_v60 }
 0x6b2   : > { %v4563_v43 = vmul.f32 %v5445_v35, %v4562_v2 }
 0x6b3   : > { %v5447_v51 = vpop.eup %5446 }
 0x6b4   : > { %v4564_v22 = vadd.f32 %v5445_v35, %v4563_v43  ;;  %v4575_v17 = vmul.f32 %v5447_v51, %v3691_v19  ;;  %vm4580_vm1 = vweird.f32 %v5447_v51 }
 0x6b5   : > { %vm4581_vm4 = vmor %vm4579_vm2, %vm4580_vm1 }
 0x6b6   : > { %v4568_v7 = vsel %vm4567_vm13, %v5445_v35, %v4564_v22  ;;  %v4576_v33 = vsub.f32 1.0, %v4575_v17 }
 0x6b7   : > { %v4573_v54 = vsel %vm4570_vm15, %v4572_v14, %v4568_v7 }
 0x6b8   : > { %v4650_v0 = vmul.f32 %v4573_v54, %v3626_v47  ;;  %v4577_v9 = vmul.f32 %v5447_v51, %v4576_v33 }
 0x6ba   : > { %4714 = vst.msk [vmem:[%s6598_s20 + $0x1f0] sm:$0xff] %vm516_vm0, %v4650_v0  ;;  %v4578_v55 = vadd.f32 %v5447_v51, %v4577_v9 }
 0x6bc   : > { %v4582_v48 = vsel %vm4581_vm4, %v5447_v51, %v4578_v55 }
 0x6bd   : > { %v4587_v44 = vsel %vm4584_vm7, %v4586_v45, %v4582_v48 }
 0x6be   : > { %v4651_v37 = vmul.f32 %v4587_v44, %v3627_v12 }
 0x6c0   : > { %4715 = vst.msk [vmem:[%s6598_s20 + $0x1f8] sm:$0xff] %vm516_vm0, %v4651_v37 }
 0x6c1 PF: > { %s23_s25 = sadd.s32 1, %s5464_s25  }
 0x6c2   : > { %p20_p4 = scmp.ge.s32.totalorder %s23_s25, 4  }
 0x6c4   :  { %22 = sbr.rel (!%p20_p4) target bundleno = 1 (0x1), region = 102 }

</bundles_post_ra>
